<compile_context>
chip_gen: v5e
topology: v5e:2x2
jax: 0.10.0
libtpu: 0.0.40
codegen_flags: <defaults>
</compile_context>

<pallas_src>
import jax
import jax.numpy as jnp
import numpy as np
from jax.experimental import pallas as pl
from jax.experimental.pallas import tpu as pltpu


_LANES = 128            # lane (fast) dimension
_SUBLANES = 8           # sublane alignment for f32
_MAX_BLOCK_ROWS = 4096  # (4096, 128) f32 block = 2 MiB per array per buffer
_OUTER_BLOCK_ROWS = 512
_OUTER_BLOCK_COLS = 1024  # 512 x 1024 f32 output block = 2 MiB


def _choose_block_rows(rows: int) -> int:
    """Block rows for the (rows, 128) streaming slab.

    Single full-extent block when it fits the 2 MiB cap; otherwise force an
    even number (>= 4) of roughly equal grid steps so the 'parallel' axis
    load-balances across v7x's two TensorCores (avoids grid=2/3 imbalance).
    """
    if rows <= _MAX_BLOCK_ROWS:
        return rows
    steps = -(-rows // _MAX_BLOCK_ROWS)
    steps = max(4, steps + (steps & 1))          # even, at least 4
    tm = -(-rows // steps)
    tm = -(-tm // _SUBLANES) * _SUBLANES         # round up to sublane multiple
    return min(tm, rows)


def _make_kernels(sqrt_lambda: float, alpha: float):
    """Build the elementwise kernels with compile-time constants baked in."""
    k = float(sqrt_lambda)
    c = float(-(sqrt_lambda * sqrt_lambda) * alpha)

    def tx_kernel(t_ref, x_ref, o_ref):
        # Full case: 2 reads + 1 write. exp -> EUP slot (free filler),
        # sin -> VPU polynomial, mul -> VPU.
        o_ref[...] = (jnp.sin(k * x_ref[...]) * jnp.exp(c * t_ref[...])).astype(o_ref.dtype)

    def x_kernel(s_ref, x_ref, o_ref):
        # t is a single element: s = exp(c * t0) lives in SMEM, only x streams.
        o_ref[...] = (jnp.sin(k * x_ref[...]) * s_ref[0]).astype(o_ref.dtype)

    def t_kernel(s_ref, t_ref, o_ref):
        # x is a single element: s = sin(k * x0) lives in SMEM, only t streams.
        o_ref[...] = (s_ref[0] * jnp.exp(c * t_ref[...])).astype(o_ref.dtype)

    def outer_kernel(col_ref, row_ref, o_ref):
        # Separable grid: col = exp/sin factor (tm, 1), row = (1, tn).
        shape = o_ref.shape
        o_ref[...] = (jnp.broadcast_to(col_ref[...], shape)
                      * jnp.broadcast_to(row_ref[...], shape)).astype(o_ref.dtype)

    return tx_kernel, x_kernel, t_kernel, outer_kernel


class HeatConduction1D:
    """JAX/Pallas port of the PyTorch HeatConduction1D module."""

    def __init__(self, alpha=1.0, length=1.0, maxtime=1.0, n=1,
                 out_dtype=jnp.float32, min_pallas_elements=8192):
        self.alpha = float(abs(alpha))
        self.length = float(abs(length))
        self.maxtime = float(abs(maxtime))
        self.n = int(abs(int(n)))
        self.out_dtype = jnp.dtype(out_dtype)
        # Below this many output elements, XLA's fused elementwise beats
        # pallas_call launch + pipeline priming. Raise for production sizes.
        self.min_pallas_elements = int(min_pallas_elements)
        (self._tx_kernel, self._x_kernel,
         self._t_kernel, self._outer_kernel) = _make_kernels(self.sqrt_lambda, self.alpha)

    # ----------------------------- module API --------------------------------
    @property
    def sqrt_lambda(self):
        return self.n * np.pi / self.length

    @staticmethod
    def boundary_condition(t):
        return jnp.zeros_like(jnp.asarray(t, dtype=jnp.float32))

    def initial_condition(self, x):
        # Exact solution at t = 0: exp(0) = 1, so this is sin(sqrt_lambda * x).
        # Goes through the degenerate-t (single-stream) Pallas path.
        return self.exact_solution(jnp.float32(0.0), x)

    def __call__(self, t, x):
        return self.exact_solution(t=t, x=x)

    # --------------------------- pallas helpers -------------------------------
    def _pallas_stream(self, kernel, slabs, rows, smem_scalar=None):
        """Elementwise kernel over lane-dense (rows, 128) slabs."""
        tm = _choose_block_rows(rows)
        grid = (pl.cdiv(rows, tm),)
        vspec = pl.BlockSpec((tm, _LANES), lambda i: (i, 0))
        in_specs, args = [], []
        if smem_scalar is not None:
            in_specs.append(pl.BlockSpec(memory_space=pltpu.MemorySpace.SMEM))
            args.append(smem_scalar)
        in_specs.extend([vspec] * len(slabs))
        args.extend(slabs)
        return pl.pallas_call(
            kernel,
            out_shape=jax.ShapeDtypeStruct((rows, _LANES), self.out_dtype),
            grid_spec=pltpu.PrefetchScalarGridSpec(
                num_scalar_prefetch=0,
                grid=grid,
                in_specs=in_specs,
                out_specs=vspec,
            ),
            compiler_params=pltpu.CompilerParams(
                dimension_semantics=("parallel",),
            ),
        )(*args)

    def _pallas_outer(self, col, row):
        """Outer product of a (N,1) column factor and a (1,M) row factor."""
        n, m = int(col.shape[0]), int(row.shape[1])
        tm = n if n <= _OUTER_BLOCK_ROWS else _OUTER_BLOCK_ROWS
        tn = m if m <= _OUTER_BLOCK_COLS else _OUTER_BLOCK_COLS
        grid = (pl.cdiv(n, tm), pl.cdiv(m, tn))
        return pl.pallas_call(
            self._outer_kernel,
            out_shape=jax.ShapeDtypeStruct((n, m), self.out_dtype),
            grid_spec=pltpu.PrefetchScalarGridSpec(
                num_scalar_prefetch=0,
                grid=grid,
                in_specs=[pl.BlockSpec((tm, 1), lambda i, j: (i, 0)),
                          pl.BlockSpec((1, tn), lambda i, j: (0, j))],
                out_specs=pl.BlockSpec((tm, tn), lambda i, j: (i, j)),
            ),
            compiler_params=pltpu.CompilerParams(
                dimension_semantics=("parallel", "parallel"),
            ),
        )(col, row)

    def _elementwise_flat(self, flats, pallas_kernel, jnp_tail_fn, n_elem,
                          smem_scalar=None):
        """Pallas over the lane-aligned prefix, plain jnp over the <128-elem tail.

        Avoids jnp.pad's full-array copy of every input for misaligned sizes.
        """
        n_lane = (n_elem // _LANES) * _LANES
        pieces = []
        if n_lane:
            rows = n_lane // _LANES
            slabs = [f[:n_lane].reshape(rows, _LANES) for f in flats]
            out_slab = self._pallas_stream(pallas_kernel, slabs, rows, smem_scalar)
            pieces.append(out_slab.reshape(-1))
        if n_lane != n_elem:
            tail = jnp_tail_fn(*[f[n_lane:] for f in flats]).astype(self.out_dtype)
            pieces.append(tail)
        return pieces[0] if len(pieces) == 1 else jnp.concatenate(pieces)

    # ----------------------------- forward ------------------------------------
    def exact_solution(self, t, x):
        t = jnp.asarray(t, dtype=jnp.float32)
        x = jnp.asarray(x, dtype=jnp.float32)
        k = self.sqrt_lambda
        c = -(k * k) * self.alpha

        out_shape = jnp.broadcast_shapes(t.shape, x.shape)
        n_elem = int(np.prod(out_shape)) if out_shape else 1

        # Tiny-output fast path: pallas_call launch overhead dwarfs the work.
        if n_elem < self.min_pallas_elements:
            return (jnp.sin(k * x) * jnp.exp(c * t)).astype(self.out_dtype)

        # Degenerate broadcast: fold the single-element factor into an SMEM
        # scalar and drop that HBM input stream entirely (12 -> 8 B/elem).
        if t.size == 1:
            s = jnp.exp(c * t.reshape(-1))                       # (1,) f32
            x_flat = jnp.broadcast_to(x, out_shape).reshape(-1)
            flat = self._elementwise_flat(
                [x_flat], self._x_kernel,
                lambda xt: jnp.sin(k * xt) * s, n_elem, smem_scalar=s)
            return flat.reshape(out_shape)
        if x.size == 1:
            s = jnp.sin(k * x.reshape(-1))                       # (1,) f32
            t_flat = jnp.broadcast_to(t, out_shape).reshape(-1)
            flat = self._elementwise_flat(
                [t_flat], self._t_kernel,
                lambda tt: s * jnp.exp(c * tt), n_elem, smem_scalar=s)
            return flat.reshape(out_shape)

        # Separable (N,1) x (1,M) grid: precompute the O(N+M) sin/exp factors,
        # Pallas only writes the full output slab (~4 B/elem HBM traffic).
        if (t.ndim == 2 and x.ndim == 2
                and t.shape[1] == 1 and x.shape[0] == 1
                and t.shape[0] > 1 and x.shape[1] > 1):
            return self._pallas_outer(jnp.exp(c * t), jnp.sin(k * x)).reshape(out_shape)
        if (t.ndim == 2 and x.ndim == 2
                and x.shape[1] == 1 and t.shape[0] == 1
                and x.shape[0] > 1 and t.shape[1] > 1):
            return self._pallas_outer(jnp.sin(k * x), jnp.exp(c * t)).reshape(out_shape)
        # TODO(synk): generalize the outer-product path to arbitrary N-D
        # broadcasts where t and x vary along disjoint axes.

        # General case: both operands vary per element; stream both inputs.
        t_flat = jnp.broadcast_to(t, out_shape).reshape(-1)
        x_flat = jnp.broadcast_to(x, out_shape).reshape(-1)
        flat = self._elementwise_flat(
            [t_flat, x_flat], self._tx_kernel,
            lambda tt, xt: jnp.sin(k * xt) * jnp.exp(c * tt), n_elem)
        return flat.reshape(out_shape)


# ------------------------------- Main ----------------------------------------
if __name__ == "__main__":
    key = jax.random.PRNGKey(0)
    k_t, k_x, k_t2, k_x2 = jax.random.split(key, 4)

    model = HeatConduction1D(alpha=1.0, length=1.0, maxtime=1.0, n=1)
    sqrt_lam = model.sqrt_lambda
    c = -(sqrt_lam ** 2) * model.alpha

    def ref(t, x):
        t = np.asarray(t, dtype=np.float32)
        x = np.asarray(x, dtype=np.float32)
        return np.sin(sqrt_lam * x) * np.exp(c * t)

    # 1) PINN-style collocation points (lane-aligned): two-input streaming kernel.
    N = 16384
    t1 = jax.random.uniform(k_t, (N, 1), dtype=jnp.float32) * model.maxtime
    x1 = jax.random.uniform(k_x, (N, 1), dtype=jnp.float32) * model.length
    u1 = jax.block_until_ready(model(t1, x1))
    assert u1.shape == (N, 1)
    np.testing.assert_allclose(np.asarray(u1), ref(t1, x1), rtol=1e-5, atol=1e-5)

    # 2) Misaligned element count: Pallas prefix + jnp tail (no jnp.pad copies).
    M = 16384 + 100
    t2 = jax.random.uniform(k_t2, (M,), dtype=jnp.float32) * model.maxtime
    x2 = jax.random.uniform(k_x2, (M,), dtype=jnp.float32) * model.length
    u2 = jax.block_until_ready(model(t2, x2))
    np.testing.assert_allclose(np.asarray(u2), ref(t2, x2), rtol=1e-5, atol=1e-5)

    # 3) Degenerate broadcast (scalar t): single-stream kernel, exp factor in SMEM.
    u3 = jax.block_until_ready(model(jnp.float32(0.25), x1))
    np.testing.assert_allclose(np.asarray(u3), ref(0.25, x1), rtol=1e-5, atol=1e-5)

    # 4) Separable (N,1) x (1,M) space-time grid: outer-product kernel.
    tg = jnp.linspace(0.0, model.maxtime, 256, dtype=jnp.float32).reshape(256, 1)
    xg = jnp.linspace(0.0, model.length, 512, dtype=jnp.float32).reshape(1, 512)
    u4 = jax.block_until_ready(model(tg, xg))
    assert u4.shape == (256, 512)
    np.testing.assert_allclose(np.asarray(u4), ref(tg, xg), rtol=1e-5, atol=1e-5)

    # 5) Initial and boundary conditions.
    u0 = jax.block_until_ready(model.initial_condition(x1))
    np.testing.assert_allclose(np.asarray(u0), np.sin(sqrt_lam * np.asarray(x1)),
                               rtol=1e-5, atol=1e-5)
    b = jax.block_until_ready(model.boundary_condition(t1))
    assert float(np.abs(np.asarray(b)).max()) == 0.0

    print("KERNEL_OK")
</pallas_src>

<mosaic_0001>
module attributes {stable_mosaic.version = 11 : i64} {
  func.func @tx_kernel(%arg0: i32, %arg1: memref<128x128xf32, #tpu.memory_space<vmem>>, %arg2: memref<128x128xf32, #tpu.memory_space<vmem>>, %arg3: memref<128x128xf32, #tpu.memory_space<vmem>>) attributes {dimension_semantics = [#tpu.dimension_semantics<parallel>], iteration_bounds = array<i64: 1>, scalar_prefetch = 0 : i64, scratch_operands = 0 : i64, tpu.core_type = #tpu.core_type<tc>, window_params = [{transform_indices = @transform_0, window_bounds = array<i64: 128, 128>}, {transform_indices = @transform_1, window_bounds = array<i64: 128, 128>}, {transform_indices = @transform_2, window_bounds = array<i64: 128, 128>}]} {
    %c0 = arith.constant 0 : index
    %c0_0 = arith.constant 0 : index
    %0 = vector.load %arg2[%c0, %c0_0] : memref<128x128xf32, #tpu.memory_space<vmem>>, vector<128x128xf32>
    %cst = arith.constant 3.14159274 : f32
    %1 = vector.broadcast %cst : f32 to vector<128x128xf32>
    %2 = arith.mulf %1, %0 : vector<128x128xf32>
    %3 = math.sin %2 : vector<128x128xf32>
    %c0_1 = arith.constant 0 : index
    %c0_2 = arith.constant 0 : index
    %4 = vector.load %arg1[%c0_1, %c0_2] : memref<128x128xf32, #tpu.memory_space<vmem>>, vector<128x128xf32>
    %cst_3 = arith.constant -9.86960411 : f32
    %5 = vector.broadcast %cst_3 : f32 to vector<128x128xf32>
    %6 = arith.mulf %5, %4 : vector<128x128xf32>
    %7 = math.exp %6 : vector<128x128xf32>
    %8 = arith.mulf %3, %7 : vector<128x128xf32>
    %c0_4 = arith.constant 0 : index
    %c0_5 = arith.constant 0 : index
    %9 = vector.load %arg3[%c0_4, %c0_5] : memref<128x128xf32, #tpu.memory_space<vmem>>, vector<128x128xf32>
    tpu.vector_store %arg3[%c0_4, %c0_5], %8 {strides = array<i32>} : memref<128x128xf32, #tpu.memory_space<vmem>>, vector<128x128xf32>,
    return
  }
  func.func @transform_0(%arg0: i32) -> (i32, i32) {
    %c0_i32 = arith.constant 0 : i32
    %c0_i32_0 = arith.constant 0 : i32
    return %arg0, %c0_i32 : i32, i32
  }
  func.func @transform_1(%arg0: i32) -> (i32, i32) {
    %c0_i32 = arith.constant 0 : i32
    %c0_i32_0 = arith.constant 0 : i32
    return %arg0, %c0_i32 : i32, i32
  }
  func.func @transform_2(%arg0: i32) -> (i32, i32) {
    %c0_i32 = arith.constant 0 : i32
    %c0_i32_0 = arith.constant 0 : i32
    return %arg0, %c0_i32 : i32, i32
  }
}

</mosaic_0001>

<bundles_post_ra>
// kernel: tpu_custom_call.1
= control target key start
LH: loop header
LB: loop body
LE: loop exit
PB: predicated region body
PF: predicated region fallthrough
CT: control target
= control target key end

     0   :  { %7 = vsyncpa [#allocation3], 0  ;;  %s5732_s0 = inlined_call_operand.hbm [shape: f32[128,128], index: 0, kind: input, shape index: {}]   ;;  %s5733_s1 = inlined_call_operand.hbm [shape: f32[128,128], index: 1, kind: input, shape index: {}]   ;;  %s5734_s2 = inlined_call_operand.hbm [shape: f32[128,128], index: 2, kind: output, shape index: {}]  }
   0x1   :  { %8 = vsyncpa [#allocation6], 0 }
   0x2   :  { %9 = vsyncpa [#allocation4], 0  ;;  %s14_s11 = sshll.u32 %s5732_s0, 4  ;;  %s2842_s12 = smov [#allocation2]   ;;  %s15_s11 = int_to_ptr.hbm [resolvable:$true] %s14_s11 }
   0x3   :  { %s16_s13 = sshll.u32 %s2842_s12, 4  ;;  %s27_s16 = sshll.u32 %s5733_s1, 4  ;;  %s17_s13 = int_to_ptr.vmem [resolvable:$true] %s16_s13  ;;  %s28_s16 = int_to_ptr.hbm [resolvable:$true] %s27_s16 }
   0x4   :  { %s2843_s17 = smov 128   ;;  %s2844_s18 = smov 8  }
   0x5   :  { %22 = dma.hbm_to_vmem [thread:$0]  %s15_s11, 2048, %s17_s13, [#allocation3], %s2843_s17, %s2843_s17, %s2844_s18  }
   0x6   :  { %s2845_s19 = smov [#allocation5]  }
   0x7   :  { %s29_s20 = sshll.u32 %s2845_s19, 4  ;;  %s30_s20 = int_to_ptr.vmem [resolvable:$true] %s29_s20 }
   0x8   :  { %35 = dma.hbm_to_vmem [thread:$0]  %s28_s16, 2048, %s30_s20, [#allocation6], %s2843_s17, %s2843_s17, %s2844_s18  }
   0x9   :  { %2836 = dma.done.wait [#allocation3], 2048  }
   0xa   :  { %2837 = vsyncadd [#allocation3], 4294965248 }
   0xb   :  { %2838 = dma.done.wait [#allocation6], 2048  }
   0xc   :  { %2839 = vsyncadd [#allocation6], 4294965248  ;;  %v44_v0 = vld [vmem:[#allocation5] sm:$0xff]  ;;  %v45_v4 = vld [vmem:[#allocation5 + $0x8] sm:$0xff]  ;;  %v5750_v14 = vmov 683565275  }
   0xd   :  { %v2881_v1 = vmul.f32 3.1415927, %v44_v0  ;;  %v2884_v7 = vmul.f32 3.1415927, %v45_v4  ;;  %v5739_v16 = vmov 2475754826  }
   0xe   :  { %v5744_v18 = vmov 2131351028   ;;  %v5746_v21 = vmov 2102212464   ;;  %v5741_v23 = vmov 920167782  }
   0xf   :  { %5813 = vst [vmem:[#allocation11_spill] sm:$0xff] %v2881_v1  ;;  %v79_v2 = vand.u32 2139095040, %v2881_v1  ;;  %v76_v8 = vand.u32 2147483647, %v2881_v1  ;;  %v234_v12 = vand.u32 2139095040, %v2884_v7  ;;  %v46_v52 = vld [vmem:[#allocation5 + $0x10] sm:$0xff] }
  0x10   :  { %5814 = vst [vmem:[#allocation12_spill] sm:$0xff] %v2884_v7  ;;  %v5737_v29 = vmov 1326507024   ;;  %v2946_v58 = vmul.f32 3.1415927, %v46_v52  ;;  %s2853_s0 = smov [#allocation7]  }
  0x11   :  { %v80_v3 = vshrl.u32 %v79_v2, 23  ;;  %v83_v20 = vand.u32 8388607, %v76_v8  ;;  %v235_v31 = vshrl.u32 %v234_v12, 23  ;;  %v5743_v12 = vand.u32 2147483647, %v2884_v7 }
  0x12   :  { %v389_v4 = vand.u32 2139095040, %v2946_v58  ;;  %s2656_s1 = sshll.u32 %s2853_s0, 4  ;;  %s2658_s23 = sshll.u32 %s5734_s2, 4  ;;  %s2657_s1 = int_to_ptr.vmem [resolvable:$true] %s2656_s1  ;;  %s2659_s23 = int_to_ptr.hbm [resolvable:$true] %s2658_s23 }
  0x13   :  { %v2672_v5 = vadd.s32 4294967169, %v80_v3  ;;  %v84_v35 = vor.u32 8388608, %v83_v20  ;;  %v2675_v45 = vadd.s32 4294967169, %v235_v31 }
  0x15   :  { %v86_v6 = vadd.s32 1, %v2672_v5  ;;  %v2936_v44 = vshll.u32 %v84_v35, 8  ;;  %v241_v50 = vadd.s32 1, %v2675_v45 }
  0x17   :  { %vm87_vm0 = vcmp.gt.s32.totalorder %v86_v6, 0  ;;  %v125_v48 = vand.u32 65535, %v2936_v44  ;;  %v126_v53 = vshrl.u32 %v2936_v44, 16  ;;  %vm242_vm5 = vcmp.gt.s32.totalorder %v241_v50, 0 }
  0x18   :  { %v88_v9 = vsel %vm87_vm0, %v86_v6, 0  ;;  %v243_v59 = vsel %vm242_vm5, %v241_v50, 0 }
  0x19   :  { %v90_v10 = vand.u32 31, %v88_v9  ;;  %v2887_v11 = vshrl.u32 %v88_v9, 5  ;;  %v245_v3 = vand.u32 31, %v243_v59 }
  0x1b   :  { %v2890_v13 = vsub.s32 32, %v90_v10  ;;  %v93_v15 = vshll.u32 %v5750_v14, %v90_v10  ;;  %v96_v17 = vshll.u32 %v5739_v16, %v90_v10  ;;  %v99_v19 = vshll.u32 %v5744_v18, %v90_v10 }
  0x1c   :  { %v102_v22 = vshll.u32 %v5746_v21, %v90_v10  ;;  %v105_v24 = vshll.u32 %v5741_v23, %v90_v10  ;;  %vm108_vm1 = vcmp.lt.s32.totalorder %v2887_v11, 1  ;;  %vm111_vm2 = vcmp.lt.s32.totalorder %v2887_v11, 4 }
  0x1d   :  { %v94_v25 = vshrl.u32 %v5739_v16, %v2890_v13  ;;  %v97_v26 = vshrl.u32 %v5744_v18, %v2890_v13  ;;  %v100_v27 = vshrl.u32 %v5746_v21, %v2890_v13  ;;  %v103_v28 = vshrl.u32 %v5741_v23, %v2890_v13 }
  0x1e   :  { %v106_v30 = vshrl.u32 %v5737_v29, %v2890_v13  ;;  %vm110_vm3 = vcmp.lt.s32.totalorder %v2887_v11, 3  ;;  %vm109_vm4 = vcmp.lt.s32.totalorder %v2887_v11, 2 }
  0x1f   :  { %v2910_v32 = vor.u32 %v94_v25, %v93_v15  ;;  %v2912_v33 = vor.u32 %v97_v26, %v96_v17  ;;  %v2914_v34 = vor.u32 %v100_v27, %v99_v19  ;;  %v104_v36 = vor.u32 %v103_v28, %v102_v22 }
  0x20   :  { %v107_v37 = vor.u32 %v106_v30, %v105_v24  ;;  %v2957_v17 = vsub.s32 32, %v245_v3  ;;  %v390_v19 = vshrl.u32 %v389_v4, 23  ;;  %v5752_v22 = vmov 0  }
  0x21   :  { %v116_v38 = vsel %vm108_vm1, %v2910_v32, %v2912_v33  ;;  %v117_v39 = vsel %vm111_vm2, %v104_v36, 920167782  ;;  %v120_v42 = vsel %vm108_vm1, %v2912_v33, %v2914_v34  ;;  %v238_v26 = vand.u32 8388607, %v5743_v12 }
  0x22   :  { %v121_v40 = vsel %vm111_vm2, %v107_v37, 1326507024  ;;  %v118_v41 = vsel %vm110_vm3, %v2914_v34, %v117_v39  ;;  %v257_v28 = vshll.u32 %v5746_v21, %v245_v3  ;;  %v258_v30 = vshrl.u32 %v5741_v23, %v2957_v17 }
  0x23   :  { %v122_v43 = vsel %vm110_vm3, %v104_v36, %v121_v40  ;;  %v119_v46 = vsel %vm109_vm4, %v116_v38, %v118_v41  ;;  %v2678_v31 = vadd.s32 4294967169, %v390_v19  ;;  %v2969_v37 = vshrl.u32 %v243_v59, 5 }
  0x24   :  { %v123_v47 = vsel %vm109_vm4, %v120_v42, %v122_v43  ;;  %v150_v49 = vshrl.u32 %v119_v46, 16  ;;  %v149_v54 = vand.u32 65535, %v119_v46  ;;  %v248_v38 = vshll.u32 %v5750_v14, %v245_v3 }
  0x25   :  { %v128_v51 = vshrl.u32 %v123_v47, 16  ;;  %v127_v56 = vand.u32 65535, %v123_v47  ;;  %v249_v40 = vshrl.u32 %v5739_v16, %v2957_v17  ;;  %v260_v41 = vshll.u32 %v5741_v23, %v245_v3 }
  0x26   :  { %v152_v55 = vmul.u32 %v150_v49, %v125_v48  ;;  %v151_v60 = vmul.u32 %v149_v54, %v125_v48  ;;  %v2948_v61 = vmul.u32 %v149_v54, %v126_v53  ;;  %v154_v15 = vmul.u32 %v150_v49, %v126_v53 }
  0x27   :  { %v2944_v57 = vmul.u32 %v128_v51, %v125_v48  ;;  %v129_v63 = vmul.u32 %v127_v56, %v125_v48  ;;  %v2950_v0 = vmul.u32 %v127_v56, %v126_v53  ;;  %v132_v20 = vmul.u32 %v128_v51, %v126_v53 }
  0x28   :  { %v155_v62 = vshll.u32 %v152_v55, 16  ;;  %v157_v5 = vshll.u32 %v2948_v61, 16  ;;  %v261_v42 = vshrl.u32 %v5737_v29, %v2957_v17  ;;  %v251_v43 = vshll.u32 %v5739_v16, %v245_v3 }
  0x29   :  { %v133_v2 = vshll.u32 %v2944_v57, 16  ;;  %v135_v9 = vshll.u32 %v2950_v0, 16  ;;  %v252_v45 = vshrl.u32 %v5744_v18, %v2957_v17  ;;  %v254_v46 = vshll.u32 %v5744_v18, %v245_v3 }
  0x2a   :  { %vm159_vm6 = vc.u32 %v151_v60, %v155_v62  ;;  %v161_v6 = vadd.s32 %v155_v62, %v151_v60  ;;  %v255_v47 = vshrl.u32 %v5746_v21, %v2957_v17  ;;  %v156_v48 = vshrl.u32 %v152_v55, 16 }
  0x2b   :  { %vm137_vm7 = vc.u32 %v129_v63, %v133_v2  ;;  %v139_v10 = vadd.s32 %v133_v2, %v129_v63  ;;  %v160_v24 = vsel %vm159_vm6, 1, %v5752_v22  ;;  %v259_v50 = vor.u32 %v258_v30, %v257_v28 }
  0x2c   :  { %v138_v25 = vsel %vm137_vm7, 1, %v5752_v22  ;;  %vm163_vm8 = vc.u32 %v161_v6, %v157_v5  ;;  %v162_v27 = vadd.s32 %v160_v24, %v154_v15  ;;  %v134_v51 = vshrl.u32 %v2944_v57, 16 }
  0x2d   :  { %vm141_vm9 = vc.u32 %v139_v10, %v135_v9  ;;  %v140_v35 = vadd.s32 %v138_v25, %v132_v20  ;;  %v164_v36 = vsel %vm163_vm8, 1, %v5752_v22  ;;  %vm266_vm10 = vcmp.lt.s32.totalorder %v2969_v37, 4 }
  0x2e   :  { %v142_v39 = vsel %vm141_vm9, 1, %v5752_v22  ;;  %v166_v49 = vadd.s32 %v164_v36, %v162_v27  ;;  %v92_v53 = vshrl.u32 %v5750_v14, %v2890_v13  ;;  %v239_v54 = vor.u32 8388608, %v238_v26 }
  0x2f   :  { %v144_v52 = vadd.s32 %v142_v39, %v140_v35  ;;  %v262_v56 = vor.u32 %v261_v42, %v260_v41  ;;  %v396_v59 = vadd.s32 1, %v2678_v31  ;;  %v158_v60 = vshrl.u32 %v2948_v61, 16 }
  0x30   :  { %v2989_v62 = vor.u32 %v249_v40, %v248_v38  ;;  %v2991_v63 = vor.u32 %v252_v45, %v251_v43  ;;  %v2993_v55 = vor.u32 %v255_v47, %v254_v46  ;;  %v167_v2 = vadd.s32 %v166_v49, %v156_v48 }
  0x31   :  { %vm263_vm11 = vcmp.lt.s32.totalorder %v2969_v37, 1  ;;  %vm265_vm12 = vcmp.lt.s32.totalorder %v2969_v37, 3  ;;  %v272_v57 = vsel %vm266_vm10, %v259_v50, 920167782  ;;  %v113_v13 = vsel %vm111_vm2, %v2914_v34, 2102212464 }
  0x32   :  { %v136_v3 = vshrl.u32 %v2950_v0, 16  ;;  %v145_v4 = vadd.s32 %v144_v52, %v134_v51  ;;  %v276_v9 = vsel %vm266_vm10, %v262_v56, 1326507024  ;;  %vm264_vm13 = vcmp.lt.s32.totalorder %v2969_v37, 2 }
  0x33   :  { %v271_v10 = vsel %vm263_vm11, %v2989_v62, %v2991_v63  ;;  %v273_v15 = vsel %vm265_vm12, %v2993_v55, %v272_v57  ;;  %vm397_vm14 = vcmp.gt.s32.totalorder %v396_v59, 0  ;;  %v112_v34 = vsel %vm108_vm1, %v92_v53, %v2910_v32 }
  0x34   :  { %v114_v0 = vsel %vm110_vm3, %v2912_v33, %v113_v13  ;;  %v168_v19 = vadd.s32 %v167_v2, %v158_v60  ;;  %v3019_v20 = vshll.u32 %v239_v54, 8  ;;  %v3021_v24 = vadd.s32 %v145_v4, %v136_v3 }
  0x35   :  { %v3025_v25 = vadd.s32 %v161_v6, %v157_v5  ;;  %v275_v26 = vsel %vm263_vm11, %v2991_v63, %v2993_v55  ;;  %v277_v32 = vsel %vm265_vm12, %v259_v50, %v276_v9  ;;  %v274_v33 = vsel %vm264_vm13, %v271_v10, %v273_v15 }
  0x36   :  { %v398_v27 = vsel %vm397_vm14, %v396_v59, 0  ;;  %v115_v28 = vsel %vm109_vm4, %v112_v34, %v114_v0  ;;  %v172_v30 = vadd.s32 1, %v168_v19  ;;  %v278_v61 = vsel %vm264_vm13, %v275_v26, %v277_v32 }
  0x37   :  { %vm171_vm15 = vc.u32 %v3021_v24, %v3025_v25  ;;  %v280_v5 = vand.u32 65535, %v3019_v20  ;;  %v305_v6 = vshrl.u32 %v274_v33, 16  ;;  %v400_v31 = vand.u32 31, %v398_v27 }
  0x38   :  { %v169_v35 = vmul.u32 %v2936_v44, %v115_v28  ;;  %v283_v36 = vshrl.u32 %v278_v61, 16  ;;  %v173_v38 = vsel %vm171_vm15, %v172_v30, %v168_v19  ;;  %v304_v39 = vand.u32 65535, %v274_v33 }
  0x39   :  { %v5736_v40 = vand.u32 2147483647, %v2946_v58  ;;  %v281_v11 = vshrl.u32 %v3019_v20, 16  ;;  %v3045_v41 = vmul.u32 %v305_v6, %v280_v5  ;;  %v3047_v42 = vsub.s32 32, %v400_v31 }
  0x3a   :  { %v174_v43 = vadd.s32 %v173_v38, %v169_v35  ;;  %v282_v45 = vand.u32 65535, %v278_v61  ;;  %v3049_v46 = vmul.u32 %v283_v36, %v280_v5  ;;  %v306_v47 = vmul.u32 %v304_v39, %v280_v5 }
  0x3b   :  { %v393_v48 = vand.u32 8388607, %v5736_v40  ;;  %v3053_v44 = vmul.u32 %v304_v39, %v281_v11  ;;  %v310_v49 = vshll.u32 %v3045_v41, 16  ;;  %v415_v50 = vshll.u32 %v5741_v23, %v400_v31 }
  0x3c   :  { %v416_v51 = vshrl.u32 %v5737_v29, %v3047_v42  ;;  %v309_v52 = vmul.u32 %v305_v6, %v281_v11  ;;  %v3059_v53 = vshrl.u32 %v398_v27, 5  ;;  %v412_v54 = vshll.u32 %v5746_v21, %v400_v31 }
  0x3d   :  { %v413_v56 = vshrl.u32 %v5741_v23, %v3047_v42  ;;  %v175_v59 = vadd.s32 536870912, %v174_v43  ;;  %v284_v60 = vmul.u32 %v282_v45, %v280_v5  ;;  %v3064_v2 = vmul.u32 %v282_v45, %v281_v11 }
  0x3e   :  { %v288_v57 = vshll.u32 %v3049_v46, 16  ;;  %v406_v13 = vshll.u32 %v5739_v16, %v400_v31  ;;  %v407_v3 = vshrl.u32 %v5744_v18, %v3047_v42  ;;  %v409_v4 = vshll.u32 %v5744_v18, %v400_v31 }
  0x3f   :  { %v410_v9 = vshrl.u32 %v5746_v21, %v3047_v42  ;;  %vm314_vm0 = vc.u32 %v306_v47, %v310_v49  ;;  %v403_v10 = vshll.u32 %v5750_v14, %v400_v31  ;;  %v404_v15 = vshrl.u32 %v5739_v16, %v3047_v42 }
  0x40   :  { %v417_v34 = vor.u32 %v416_v51, %v415_v50  ;;  %v312_v0 = vshll.u32 %v3053_v44, 16  ;;  %v316_v19 = vadd.s32 %v310_v49, %v306_v47  ;;  %v414_v26 = vor.u32 %v413_v56, %v412_v54 }
  0x41   :  { %vm421_vm1 = vcmp.lt.s32.totalorder %v3059_v53, 4  ;;  %v3078_v32 = vshrl.u32 %v175_v59, 30  ;;  %v290_v33 = vshll.u32 %v3064_v2, 16  ;;  %vm292_vm2 = vc.u32 %v284_v60, %v288_v57 }
  0x42   :  { %v294_v27 = vadd.s32 %v288_v57, %v284_v60  ;;  %v287_v28 = vmul.u32 %v283_v36, %v281_v11  ;;  %v315_v30 = vsel %vm314_vm0, 1, %v5752_v22  ;;  %v3082_v61 = vor.u32 %v407_v3, %v406_v13  ;;  %v47_v13 = vld [vmem:[#allocation5 + $0x18] sm:$0xff] }
  0x43   :  { %v3084_v5 = vor.u32 %v410_v9, %v409_v4  ;;  %v3086_v6 = vor.u32 %v404_v15, %v403_v10  ;;  %vm418_vm3 = vcmp.lt.s32.totalorder %v3059_v53, 1  ;;  %vm420_vm4 = vcmp.lt.s32.totalorder %v3059_v53, 3 }
  0x44   :  { %v431_v31 = vsel %vm421_vm1, %v417_v34, 1326507024  ;;  %v293_v35 = vsel %vm292_vm2, 1, %v5752_v22  ;;  %vm318_vm5 = vc.u32 %v316_v19, %v312_v0  ;;  %v394_v36 = vor.u32 8388608, %v393_v48 }
  0x45   :  { %v427_v38 = vsel %vm421_vm1, %v414_v26, 920167782  ;;  %v177_v39 = vshll.u32 %v3078_v32, 30  ;;  %vm296_vm6 = vc.u32 %v294_v27, %v290_v33  ;;  %v317_v11 = vadd.s32 %v315_v30, %v309_v52 }
  0x46   :  { %vm419_vm7 = vcmp.lt.s32.totalorder %v3059_v53, 2  ;;  %v430_v45 = vsel %vm418_vm3, %v3082_v61, %v3084_v5  ;;  %v432_v47 = vsel %vm420_vm4, %v414_v26, %v431_v31  ;;  %v295_v49 = vadd.s32 %v293_v35, %v287_v28 }
  0x47   :  { %v319_v48 = vsel %vm318_vm5, 1, %v5752_v22  ;;  %v426_v50 = vsel %vm418_vm3, %v3086_v6, %v3082_v61  ;;  %v428_v51 = vsel %vm420_vm4, %v3084_v5, %v427_v38  ;;  %v297_v52 = vsel %vm296_vm6, 1, %v5752_v22 }
  0x48   :  { %v3114_v54 = vshll.u32 %v394_v36, 8  ;;  %v433_v56 = vsel %vm419_vm7, %v430_v45, %v432_v47  ;;  %v311_v59 = vshrl.u32 %v3045_v41, 16  ;;  %v321_v60 = vadd.s32 %v319_v48, %v317_v11 }
  0x49   :  { %v429_v57 = vsel %vm419_vm7, %v426_v50, %v428_v51  ;;  %v3121_v3 = vsub.s32 %v174_v43, %v177_v39  ;;  %v289_v4 = vshrl.u32 %v3049_v46, 16  ;;  %v299_v9 = vadd.s32 %v297_v52, %v295_v49 }
  0x4a   :  { %v435_v10 = vand.u32 65535, %v3114_v54  ;;  %v438_v15 = vshrl.u32 %v433_v56, 16  ;;  %v460_v34 = vshrl.u32 %v429_v57, 16  ;;  %v3125_v26 = vmul.f32 3.1415927, %v47_v13 }
  0x4b   :  { %v247_v33 = vshrl.u32 %v5750_v14, %v2957_v17  ;;  %v313_v41 = vshrl.u32 %v3053_v44, 16  ;;  %v322_v27 = vadd.s32 %v321_v60, %v311_v59  ;;  %v180_v28 = vsub.s32 0, %v3121_v3 }
  0x4c   :  { %5815 = vst [vmem:[#allocation13_spill] sm:$0xff] %v3125_v26  ;;  %v268_v43 = vsel %vm266_vm10, %v2993_v55, 2102212464  ;;  %v291_v46 = vshrl.u32 %v3064_v2, 16  ;;  %v300_v30 = vadd.s32 %v299_v9, %v289_v4  ;;  %vm179_vm8 = vcmp.lt.s32.totalorder %v3121_v3, 0 }
  0x4d   :  { %v436_v31 = vshrl.u32 %v3114_v54, 16  ;;  %v437_v35 = vand.u32 65535, %v433_v56  ;;  %v3137_v36 = vmul.u32 %v438_v15, %v435_v10  ;;  %v459_v17 = vand.u32 65535, %v429_v57 }
  0x4e   :  { %v3139_v38 = vmul.u32 %v460_v34, %v435_v10  ;;  %v267_v39 = vsel %vm263_vm11, %v247_v33, %v2989_v62  ;;  %v269_v55 = vsel %vm265_vm12, %v2991_v63, %v268_v43  ;;  %v323_v2 = vadd.s32 %v322_v27, %v313_v41 }
  0x4f   :  { %v544_v11 = vand.u32 2139095040, %v3125_v26  ;;  %v181_v45 = vsel %vm179_vm8, %v180_v28, %v3121_v3  ;;  %v3149_v47 = vadd.s32 %v300_v30, %v291_v46  ;;  %v3153_v49 = vadd.s32 %v316_v19, %v312_v0 }
  0x50   :  { %v439_v48 = vmul.u32 %v437_v35, %v435_v10  ;;  %v3155_v50 = vmul.u32 %v437_v35, %v436_v31  ;;  %v443_v62 = vshll.u32 %v3137_v36, 16  ;;  %v270_v63 = vsel %vm264_vm13, %v267_v39, %v269_v55 }
  0x51   :  { %v545_v51 = vshrl.u32 %v544_v11, 23  ;;  %v461_v52 = vmul.u32 %v459_v17, %v435_v10  ;;  %v3160_v56 = vmul.u32 %v459_v17, %v436_v31  ;;  %v465_v59 = vshll.u32 %v3139_v38, 16  ;;  %v48_v11 = vld [vmem:[#allocation5 + $0x20] sm:$0xff] }
  0x52   :  { %v327_v60 = vadd.s32 1, %v323_v2  ;;  %v182_v13 = vclz %v181_v45  ;;  %vm326_vm9 = vc.u32 %v3149_v47, %v3153_v49  ;;  %v324_v44 = vmul.u32 %v3019_v20, %v270_v63 }
  0x53   :  { %v2681_v57 = vadd.s32 4294967169, %v545_v51  ;;  %v445_v0 = vshll.u32 %v3155_v50, 16  ;;  %vm447_vm10 = vc.u32 %v439_v48, %v443_v62  ;;  %v449_v4 = vadd.s32 %v443_v62, %v439_v48 }
  0x54   :  { %v467_v37 = vshll.u32 %v3160_v56, 16  ;;  %vm469_vm11 = vc.u32 %v461_v52, %v465_v59  ;;  %v471_v9 = vadd.s32 %v465_v59, %v461_v52  ;;  %v328_v10 = vsel %vm326_vm9, %v327_v60, %v323_v2 }
  0x55   :  { %v551_v19 = vadd.s32 1, %v2681_v57  ;;  %v2673_v33 = vadd.s32 4294967294, %v182_v13  ;;  %v442_v41 = vmul.u32 %v438_v15, %v436_v31  ;;  %v464_v27 = vmul.u32 %v460_v34, %v436_v31 }
  0x56   :  { %v448_v28 = vsel %vm447_vm10, 1, %v5752_v22  ;;  %v470_v43 = vsel %vm469_vm11, 1, %v5752_v22  ;;  %v329_v20 = vadd.s32 %v328_v10, %v324_v44  ;;  %vm451_vm13 = vc.u32 %v449_v4, %v445_v0 }
  0x57   :  { %vm552_vm12 = vcmp.gt.s32.totalorder %v551_v19, 0  ;;  %vm473_vm14 = vc.u32 %v471_v9, %v467_v37  ;;  %vm2674_vm15 = vcmp.lt.s32.totalorder %v2673_v33, 0  ;;  %v450_v30 = vadd.s32 %v448_v28, %v442_v41 }
  0x58   :  { %v553_v46 = vsel %vm552_vm12, %v551_v19, 0  ;;  %v472_v35 = vadd.s32 %v470_v43, %v464_v27  ;;  %v452_v39 = vsel %vm451_vm13, 1, %v5752_v22  ;;  %v474_v55 = vsel %vm473_vm14, 1, %v5752_v22 }
  0x59   :  { %v555_v17 = vand.u32 31, %v553_v46  ;;  %v330_v2 = vadd.s32 536870912, %v329_v20  ;;  %v3172_v15 = vsel %vm2674_vm15, 0, %v2673_v33  ;;  %v402_v34 = vshrl.u32 %v5750_v14, %v3047_v42 }
  0x5a   :  { %v423_v31 = vsel %vm421_vm1, %v3084_v5, 2102212464  ;;  %v444_v45 = vshrl.u32 %v3137_v36, 16  ;;  %v454_v48 = vadd.s32 %v452_v39, %v450_v30  ;;  %v466_v62 = vshrl.u32 %v3139_v38, 16 }
  0x5b   :  { %v476_v51 = vadd.s32 %v474_v55, %v472_v35  ;;  %v3181_v63 = vsub.s32 32, %v555_v17  ;;  %v3183_v52 = vmul.f32 3.1415927, %v48_v11  ;;  %v190_v59 = vsub.s32 4294967266, %v3172_v15 }
  0x5c   :  { %v3186_v60 = vshrl.u32 %v330_v2, 30  ;;  %v422_v42 = vsel %vm418_vm3, %v402_v34, %v3086_v6  ;;  %v424_v5 = vsel %vm420_vm4, %v3082_v61, %v423_v31  ;;  %v446_v36 = vshrl.u32 %v3155_v50, 16 }
  0x5d   :  { %5816 = vst [vmem:[#allocation14_spill] sm:$0xff] %v3183_v52  ;;  %v468_v38 = vshrl.u32 %v3160_v56, 16  ;;  %v455_v57 = vadd.s32 %v454_v48, %v444_v45  ;;  %v477_v13 = vadd.s32 %v476_v51, %v466_v62  ;;  %v567_v44 = vshll.u32 %v5746_v21, %v555_v17 }
  0x5e   :  { %v568_v0 = vshrl.u32 %v5741_v23, %v3181_v63  ;;  %v5735_v19 = vand.u32 2147483647, %v3125_v26  ;;  %v3200_v4 = vshrl.u32 %v553_v46, 5  ;;  %v570_v6 = vshll.u32 %v5741_v23, %v555_v17 }
  0x5f   :  { %v571_v61 = vshrl.u32 %v5737_v29, %v3181_v63  ;;  %v332_v50 = vshll.u32 %v3186_v60, 30  ;;  %v558_v56 = vshll.u32 %v5750_v14, %v555_v17  ;;  %v561_v10 = vshll.u32 %v5739_v16, %v555_v17 }
  0x60   :  { %v699_v33 = vand.u32 2139095040, %v3183_v52  ;;  %v559_v41 = vshrl.u32 %v5739_v16, %v3181_v63  ;;  %v562_v27 = vshrl.u32 %v5744_v18, %v3181_v63  ;;  %v564_v28 = vshll.u32 %v5744_v18, %v555_v17 }
  0x61   :  { %v565_v43 = vshrl.u32 %v5746_v21, %v3181_v63  ;;  %v170_v46 = vadd.s32 %v3025_v25, %v3021_v24  ;;  %v3218_v30 = vadd.s32 %v455_v57, %v446_v36  ;;  %v478_v35 = vadd.s32 %v477_v13, %v468_v38 }
  0x62   :  { %v569_v39 = vor.u32 %v568_v0, %v567_v44  ;;  %v3220_v55 = vadd.s32 %v471_v9, %v467_v37  ;;  %v548_v2 = vand.u32 8388607, %v5735_v19  ;;  %v572_v11 = vor.u32 %v571_v61, %v570_v6 }
  0x63   :  { %vm576_vm0 = vcmp.lt.s32.totalorder %v3200_v4, 4  ;;  %v186_v17 = vsub.s32 32, %v3172_v15  ;;  %v191_v34 = vadd.s32 127, %v190_v59  ;;  %v425_v31 = vsel %vm419_vm7, %v422_v42, %v424_v5 }
  0x64   :  { %v700_v45 = vshrl.u32 %v699_v33, 23  ;;  %v3228_v24 = vsub.s32 %v329_v20, %v332_v50  ;;  %v3230_v25 = vor.u32 %v559_v41, %v558_v56  ;;  %v3232_v48 = vor.u32 %v562_v27, %v561_v10 }
  0x65   :  { %v3234_v37 = vor.u32 %v565_v43, %v564_v28  ;;  %v482_v9 = vadd.s32 1, %v478_v35  ;;  %vm573_vm1 = vcmp.lt.s32.totalorder %v3200_v4, 1  ;;  %vm575_vm2 = vcmp.lt.s32.totalorder %v3200_v4, 3 }
  0x66   :  { %v582_v62 = vsel %vm576_vm0, %v569_v39, 920167782  ;;  %vm481_vm3 = vc.u32 %v3218_v30, %v3220_v55  ;;  %v549_v53 = vor.u32 8388608, %v548_v2  ;;  %v586_v20 = vsel %vm576_vm0, %v572_v11, 1326507024 }
  0x67   :  { %v187_v51 = vshll.u32 %v3121_v3, %v3172_v15  ;;  %v188_v59 = vshrl.u32 %v170_v46, %v186_v17  ;;  %v192_v42 = vshll.u32 %v191_v34, 23  ;;  %v2684_v5 = vadd.s32 4294967169, %v700_v45 }
  0x68   :  { %v479_v36 = vmul.u32 %v3114_v54, %v425_v31  ;;  %vm574_vm4 = vcmp.lt.s32.totalorder %v3200_v4, 2  ;;  %v581_v38 = vsel %vm573_vm1, %v3230_v25, %v3232_v48  ;;  %v583_v57 = vsel %vm575_vm2, %v3234_v37, %v582_v62  ;;  %v49_v62 = vld [vmem:[#allocation5 + $0x28] sm:$0xff] }
  0x69   :  { %v335_v13 = vsub.s32 0, %v3228_v24  ;;  %v483_v44 = vsel %vm481_vm3, %v482_v9, %v478_v35  ;;  %v585_v3 = vsel %vm573_vm1, %v3232_v48, %v3234_v37  ;;  %v587_v54 = vsel %vm575_vm2, %v569_v39, %v586_v20 }
  0x6a   :  { %vm334_vm5 = vcmp.lt.s32.totalorder %v3228_v24, 0  ;;  %v3263_v15 = vshll.u32 %v549_v53, 8  ;;  %v189_v0 = vor.u32 %v188_v59, %v187_v51  ;;  %v193_v6 = vor.u32 4788187, %v192_v42  ;;  %v50_v51 = vld [vmem:[#allocation5 + $0x30] sm:$0xff]  ;;  %v51_v42 = vld [vmem:[#allocation5 + $0x38] sm:$0xff] }
  0x6b   :  { %v584_v61 = vsel %vm574_vm4, %v581_v38, %v583_v57  ;;  %v706_v50 = vadd.s32 1, %v2684_v5  ;;  %v484_v56 = vadd.s32 %v483_v44, %v479_v36  ;;  %v588_v10 = vsel %vm574_vm4, %v585_v3, %v587_v54  ;;  %v52_v5 = vld [vmem:[#allocation5 + $0x40] sm:$0xff] }
  0x6c   :  { %v336_v33 = vsel %vm334_vm5, %v335_v13, %v3228_v24  ;;  %v590_v41 = vand.u32 65535, %v3263_v15  ;;  %v615_v27 = vshrl.u32 %v584_v61, 16  ;;  %v194_v28 = vand.u32 2147483647, %v193_v6  ;;  %v53_v13 = vld [vmem:[#allocation5 + $0x48] sm:$0xff] }
  0x6d   :  { %v196_v43 = vcvt.s32.f32 %v189_v0  ;;  %v593_v46 = vshrl.u32 %v588_v10, 16  ;;  %vm707_vm6 = vcmp.gt.s32.totalorder %v706_v50, 0  ;;  %v337_v35 = vclz %v336_v33 }
  0x6e   :  { %v485_v39 = vadd.s32 536870912, %v484_v56  ;;  %v591_v2 = vshrl.u32 %v3263_v15, 16  ;;  %v614_v11 = vand.u32 65535, %v584_v61  ;;  %v3272_v17 = vmul.u32 %v615_v27, %v590_v41 }
  0x6f   :  { %v708_v34 = vsel %vm707_vm6, %v706_v50, 0  ;;  %v197_v31 = vmul.f32 %v196_v43, %v194_v28  ;;  %v592_v45 = vand.u32 65535, %v588_v10  ;;  %v3274_v9 = vmul.u32 %v593_v46, %v590_v41 }
  0x70   :  { %v2676_v53 = vadd.s32 4294967294, %v337_v35  ;;  %v3276_v20 = vshrl.u32 %v485_v39, 30  ;;  %v710_v59 = vand.u32 31, %v708_v34  ;;  %vm78_vm7 = vcmp.lt.s32.totalorder %v2881_v1, 0 }
  0x71   :  { %v616_v36 = vmul.u32 %v614_v11, %v590_v41  ;;  %v3279_v38 = vmul.u32 %v614_v11, %v591_v2  ;;  %v620_v57 = vshll.u32 %v3272_v17, 16  ;;  %v3282_v44 = vmul.f32 3.1415927, %v49_v62 }
  0x72   :  { %v198_v3 = vxor.u32 2147483648, %v197_v31  ;;  %v594_v54 = vmul.u32 %v592_v45, %v590_v41  ;;  %v598_v0 = vshll.u32 %v3274_v9, 16  ;;  %v3285_v6 = vmul.f32 3.1415927, %v50_v51 }
  0x73   :  { %5817 = vst [vmem:[#allocation15_spill] sm:$0xff] %v3282_v44  ;;  %vm2677_vm8 = vcmp.lt.s32.totalorder %v2676_v53, 0  ;;  %v487_v61 = vshll.u32 %v3276_v20, 30  ;;  %v3288_v50 = vmul.u32 %v592_v45, %v591_v2  ;;  %v3290_v10 = vmul.f32 3.1415927, %v51_v42 }
  0x74   :  { %5818 = vst [vmem:[#allocation16_spill] sm:$0xff] %v3285_v6  ;;  %v3292_v33 = vmul.f32 3.1415927, %v52_v5  ;;  %v3294_v28 = vsub.s32 32, %v710_v59  ;;  %v3296_v43 = vmul.f32 3.1415927, %v53_v13  ;;  %v325_v41 = vadd.s32 %v3153_v49, %v3149_v47 }
  0x75   :  { %5819 = vst [vmem:[#allocation17_spill] sm:$0xff] %v3290_v10  ;;  %v5748_v35 = vshll.u32 %v3279_v38, 16  ;;  %v3301_v39 = vadd.s32 %v620_v57, %v616_v36  ;;  %v3305_v11 = vsel %vm78_vm7, %v198_v3, %v197_v31  ;;  %v3307_v45 = vsel %vm2677_vm8, 0, %v2676_v53 }
  0x76   :  { %5820 = vst [vmem:[#allocation18_spill] sm:$0xff] %v3292_v33  ;;  %vm602_vm9 = vc.u32 %v594_v54, %v598_v0  ;;  %vm624_vm10 = vc.u32 %v616_v36, %v620_v57  ;;  %v3309_v62 = vsub.s32 %v484_v56, %v487_v61  ;;  %v597_v51 = vmul.u32 %v593_v46, %v591_v2 }
  0x77   :  { %5821 = vst [vmem:[#allocation19_spill] sm:$0xff] %v3296_v43  ;;  %v600_v42 = vshll.u32 %v3288_v50, 16  ;;  %v5749_v5 = vand.u32 2147483647, %v3183_v52  ;;  %v604_v47 = vadd.s32 %v598_v0, %v594_v54  ;;  %v619_v49 = vmul.u32 %v615_v27, %v591_v2 }
  0x78   :  { %v722_v13 = vshll.u32 %v5746_v21, %v710_v59  ;;  %v723_v19 = vshrl.u32 %v5741_v23, %v3294_v28  ;;  %v603_v31 = vsel %vm602_vm9, 1, %v5752_v22  ;;  %v625_v53 = vsel %vm624_vm10, 1, %v5752_v22 }
  0x79   :  { %vm3321_vm11 = vc.u32 %v3301_v39, %v5748_v35  ;;  %v3325_v46 = vshrl.u32 %v708_v34, 5  ;;  %v713_v27 = vshll.u32 %v5750_v14, %v710_v59  ;;  %v716_v2 = vshll.u32 %v5739_v16, %v710_v59 }
  0x7a   :  { %v725_v36 = vshll.u32 %v5741_v23, %v710_v59  ;;  %v726_v57 = vshrl.u32 %v5737_v29, %v3294_v28  ;;  %v714_v3 = vshrl.u32 %v5739_v16, %v3294_v28  ;;  %v717_v54 = vshrl.u32 %v5744_v18, %v3294_v28 }
  0x7b   :  { %v719_v0 = vshll.u32 %v5744_v18, %v710_v59  ;;  %v720_v34 = vshrl.u32 %v5746_v21, %v3294_v28  ;;  %vm3341_vm12 = vcmp.le.f32.partialorder %v76_v8, 0.7853982  ;;  %v341_v40 = vsub.s32 32, %v3307_v45 }
  0x7c   :  { %v345_v29 = vsub.s32 4294967266, %v3307_v45  ;;  %vm606_vm13 = vc.u32 %v604_v47, %v600_v42  ;;  %v724_v16 = vor.u32 %v723_v19, %v722_v13  ;;  %v490_v23 = vsub.s32 0, %v3309_v62 }
  0x7d   :  { %v627_v12 = vadd.s32 %v625_v53, %v619_v49  ;;  %v703_v59 = vand.u32 8388607, %v5749_v5  ;;  %vm731_vm14 = vcmp.lt.s32.totalorder %v3325_v46, 4  ;;  %vm489_vm15 = vcmp.lt.s32.totalorder %v3309_v62, 0 }
  0x7e   :  { %v605_v8 = vadd.s32 %v603_v31, %v597_v51  ;;  %v629_v18 = vsel %vm3321_vm11, 1, %v5752_v22  ;;  %v727_v21 = vor.u32 %v726_v57, %v725_v36  ;;  %v607_v35 = vsel %vm606_vm13, 1, %v5752_v22 }
  0x7f   :  { %v3356_v42 = vor.u32 %v714_v3, %v713_v27  ;;  %v3358_v19 = vor.u32 %v717_v54, %v716_v2  ;;  %v3360_v47 = vor.u32 %v720_v34, %v719_v0  ;;  %v346_v49 = vadd.s32 127, %v345_v29 }
  0x80   :  { %vm728_vm3 = vcmp.lt.s32.totalorder %v3325_v46, 1  ;;  %vm730_vm5 = vcmp.lt.s32.totalorder %v3325_v46, 3  ;;  %v737_v51 = vsel %vm731_vm14, %v724_v16, 920167782  ;;  %v491_v13 = vsel %vm489_vm15, %v490_v23, %v3309_v62 }
  0x81   :  { %v621_v31 = vshrl.u32 %v3272_v17, 16  ;;  %v631_v53 = vadd.s32 %v629_v18, %v627_v12  ;;  %v704_v56 = vor.u32 8388608, %v703_v59  ;;  %v342_v27 = vshll.u32 %v3228_v24, %v3307_v45  ;;  %v54_v12 = vld [vmem:[#allocation5 + $0x50] sm:$0xff]  ;;  %v55_v24 = vld [vmem:[#allocation5 + $0x58] sm:$0xff]  ;;  %v56_v59 = vld [vmem:[#allocation5 + $0x60] sm:$0xff] }
  0x82   :  { %v599_v2 = vshrl.u32 %v3274_v9, 16  ;;  %v609_v36 = vadd.s32 %v607_v35, %v605_v8  ;;  %v741_v29 = vsel %vm731_vm14, %v727_v21, 1326507024  ;;  %v343_v57 = vshrl.u32 %v325_v41, %v341_v40  ;;  %v57_v8 = vld [vmem:[#allocation5 + $0x68] sm:$0xff] }
  0x83   :  { %vm729_vm6 = vcmp.lt.s32.totalorder %v3325_v46, 2  ;;  %v736_v23 = vsel %vm728_vm3, %v3356_v42, %v3358_v19  ;;  %v738_v18 = vsel %vm730_vm5, %v3360_v47, %v737_v51  ;;  %v347_v17 = vshll.u32 %v346_v49, 23 }
  0x84   :  { %v492_v9 = vclz %v491_v13  ;;  %v557_v35 = vshrl.u32 %v5750_v14, %v3181_v63  ;;  %v623_v21 = vshrl.u32 %v3279_v38, 16  ;;  %v632_v40 = vadd.s32 %v631_v53, %v621_v31  ;;  %v58_v13 = vld [vmem:[#allocation5 + $0x70] sm:$0xff] }
  0x85   :  { %v740_v41 = vsel %vm728_vm3, %v3358_v19, %v3360_v47  ;;  %v742_v45 = vsel %vm730_vm5, %v724_v16, %v741_v29  ;;  %v3390_v3 = vshll.u32 %v704_v56, 8  ;;  %v578_v54 = vsel %vm576_vm0, %v3234_v37, 2102212464 }
  0x86   :  { %v601_v0 = vshrl.u32 %v3288_v50, 16  ;;  %v610_v63 = vadd.s32 %v609_v36, %v599_v2  ;;  %v3398_v34 = vsel %vm729_vm6, %v736_v23, %v738_v18  ;;  %v3400_v49 = vmul.f32 3.1415927, %v54_v12  ;;  %v59_v12 = vld [vmem:[#allocation5 + $0x78] sm:$0xff] }
  0x87   :  { %v3402_v51 = vmul.f32 3.1415927, %v55_v24  ;;  %v3408_v16 = vsel %vm3341_vm12, %v2881_v1, %v3305_v11  ;;  %v344_v37 = vor.u32 %v343_v57, %v342_v27  ;;  %v348_v50 = vor.u32 4788187, %v347_v17 }
  0x88   :  { %5826 = vst [vmem:[#allocation20_spill] sm:$0xff] %v3400_v49  ;;  %v2679_v31 = vadd.s32 4294967294, %v492_v9  ;;  %v577_v53 = vsel %vm573_vm1, %v557_v35, %v3230_v25  ;;  %v3415_v56 = vsel %vm729_vm6, %v740_v41, %v742_v45  ;;  %v579_v2 = vsel %vm575_vm2, %v3232_v48, %v578_v54 }
  0x89   :  { %5827 = vst [vmem:[#allocation21_spill] sm:$0xff] %v3402_v51  ;;  %v633_v36 = vadd.s32 %v632_v40, %v623_v21  ;;  %v745_v11 = vand.u32 65535, %v3390_v3  ;;  %v770_v27 = vshrl.u32 %v3398_v34, 16  ;;  %v3422_v29 = vmul.f32 3.1415927, %v56_v59 }
  0x8a   :  { %v3424_v57 = vmul.f32 3.1415927, %v57_v8  ;;  %v3426_v23 = vadd.s32 %v610_v63, %v601_v0  ;;  %v5830_v25 = vshll.u32 %v3279_v38, 16  ;;  %v3433_v24 = vmul.f32 3.1415927, %v58_v13 }
  0x8b   :  { %5828 = vst [vmem:[#allocation22_spill] sm:$0xff] %v3422_v29  ;;  %v200_v48 = vsub.s32 4, %v3078_v32  ;;  %v3438_v17 = vmul.f32 %v3408_v16, %v3408_v16  ;;  %v748_v9 = vshrl.u32 %v3415_v56, 16  ;;  %v349_v35 = vand.u32 2147483647, %v348_v50 }
  0x8c   :  { %5829 = vst [vmem:[#allocation23_spill] sm:$0xff] %v3424_v57  ;;  %v3431_v18 = vadd.s32 %v3301_v39, %v5830_v25  ;;  %v351_v21 = vcvt.s32.f32 %v344_v37  ;;  %vm2680_vm0 = vcmp.lt.s32.totalorder %v2679_v31, 0  ;;  %v580_v38 = vsel %vm574_vm4, %v577_v53, %v579_v2 }
  0x8d   :  { %5831 = vst [vmem:[#allocation24_spill] sm:$0xff] %v3433_v24  ;;  %v637_v40 = vadd.s32 1, %v633_v36  ;;  %v746_v39 = vshrl.u32 %v3390_v3, 16  ;;  %v769_v41 = vand.u32 65535, %v3398_v34  ;;  %v3445_v45 = vmul.u32 %v770_v27, %v745_v11 }
  0x8e   :  { %v3447_v54 = vmul.f32 3.1415927, %v59_v12  ;;  %vm636_vm1 = vc.u32 %v3426_v23, %v3431_v18  ;;  %v747_v0 = vand.u32 65535, %v3415_v56  ;;  %v854_v63 = vand.u32 2139095040, %v3282_v44 }
  0x8f   :  { %v201_v4 = vsel %vm78_vm7, %v200_v48, %v3078_v32  ;;  %v205_v59 = vmul.f32 -0.001358992, %v3438_v17  ;;  %v495_v8 = vsel %vm2680_vm0, 0, %v2679_v31  ;;  %v3457_v37 = vmul.u32 %v748_v9, %v745_v11 }
  0x90   :  { %5832 = vst [vmem:[#allocation25_spill] sm:$0xff] %v3447_v54  ;;  %v212_v34 = vmul.f32 -0.00019511016, %v3438_v17  ;;  %v352_v13 = vmul.f32 %v351_v21, %v349_v35  ;;  %v634_v50 = vmul.u32 %v3263_v15, %v580_v38  ;;  %v855_v53 = vshrl.u32 %v854_v63, 23 }
  0x91   :  { %v638_v2 = vsel %vm636_vm1, %v637_v40, %v633_v36  ;;  %v771_v25 = vmul.u32 %v769_v41, %v745_v11  ;;  %v3461_v56 = vmul.u32 %v769_v41, %v746_v39  ;;  %v775_v12 = vshll.u32 %v3445_v45, 16 }
  0x92   :  { %vm233_vm2 = vcmp.lt.s32.totalorder %v2884_v7, 0  ;;  %v500_v32 = vsub.s32 4294967266, %v495_v8  ;;  %v3465_v48 = vmul.u32 %v747_v0, %v746_v39  ;;  %v2687_v31 = vadd.s32 4294967169, %v855_v53 }
  0x93   :  { %v203_v5 = vsel %vm3341_vm12, 0, %v201_v4  ;;  %v206_v14 = vadd.f32 0.041655596, %v205_v59  ;;  %v749_v35 = vmul.u32 %v747_v0, %v745_v11  ;;  %v753_v15 = vshll.u32 %v3457_v37, 16 }
  0x94   :  { %v213_v21 = vadd.f32 0.008332121, %v212_v34  ;;  %v480_v36 = vadd.s32 %v3220_v55, %v3218_v30  ;;  %v3472_v38 = vadd.s32 %v638_v2, %v634_v50  ;;  %v861_v40 = vadd.s32 1, %v2687_v31 }
  0x95   :  { %v353_v41 = vxor.u32 2147483648, %v352_v13  ;;  %v5754_v63 = vshll.u32 %v3461_v56, 16  ;;  %vm779_vm4 = vc.u32 %v771_v25, %v775_v12  ;;  %v3475_v22 = vadd.s32 %v775_v12, %v771_v25 }
  0x96   :  { %v496_v53 = vsub.s32 32, %v495_v8  ;;  %v501_v61 = vadd.s32 127, %v500_v32  ;;  %v755_v4 = vshll.u32 %v3465_v48, 16  ;;  %vm862_vm7 = vcmp.gt.s32.totalorder %v861_v40, 0 }
  0x97   :  { %vm757_vm8 = vc.u32 %v749_v35, %v753_v15  ;;  %v759_v11 = vadd.s32 %v753_v15, %v749_v35  ;;  %v774_v0 = vmul.u32 %v770_v27, %v746_v39  ;;  %v863_v59 = vsel %vm862_vm7, %v861_v40, 0 }
  0x98   :  { %v220_v34 = vadd.s32 3, %v203_v5  ;;  %v640_v30 = vadd.s32 536870912, %v3472_v38  ;;  %v5833_v55 = vmov 0   ;;  %v865_v2 = vand.u32 31, %v863_v59 }
  0x99   :  { %v780_v50 = vsel %vm779_vm4, 1, %v5833_v55  ;;  %v207_v31 = vmul.f32 %v206_v14, %v3438_v17  ;;  %v214_v25 = vmul.f32 %v213_v21, %v3438_v17  ;;  %v752_v12 = vmul.u32 %v748_v9, %v746_v39 }
  0x9a   :  { %vm783_vm9 = vc.u32 %v3475_v22, %v5754_v63  ;;  %v497_v32 = vshll.u32 %v3309_v62, %v495_v8  ;;  %v498_v35 = vshrl.u32 %v480_v36, %v496_v53  ;;  %v502_v27 = vshll.u32 %v501_v61, 23 }
  0x9b   :  { %v758_v5 = vsel %vm757_vm8, 1, %v5833_v55  ;;  %v5834_v15 = vand.u32 2147483647, %v2884_v7  ;;  %v354_v14 = vsel %vm233_vm2, %v353_v41, %v352_v13  ;;  %vm761_vm11 = vc.u32 %v759_v11, %v755_v4 }
  0x9c   :  { %v782_v9 = vadd.s32 %v780_v50, %v774_v0  ;;  %v3495_v39 = vand.u32 3, %v220_v34  ;;  %v3497_v21 = vshrl.u32 %v640_v30, 30  ;;  %v784_v62 = vsel %vm783_vm9, 1, %v5833_v55 }
  0x9d   :  { %vm3489_vm10 = vcmp.le.f32.partialorder %v5834_v15, 0.7853982  ;;  %v3500_v8 = vsub.s32 32, %v865_v2  ;;  %v3502_v36 = vadd.f32 -0.4999988, %v207_v31  ;;  %v760_v15 = vadd.s32 %v758_v5, %v752_v12 }
  0x9e   :  { %5837 = vst [vmem:[#allocation26_spill] sm:$0xff] %v3497_v21  ;;  %v3504_v53 = vadd.f32 -0.16666654, %v214_v25  ;;  %v3510_v13 = vsel %vm3489_vm10, %v2884_v7, %v354_v14  ;;  %v3512_v41 = vor.u32 %v498_v35, %v497_v32  ;;  %v3514_v4 = vor.u32 4788187, %v502_v27 }
  0x9f   :  { %v762_v11 = vsel %vm761_vm11, 1, %v5833_v55  ;;  %v5838_v0 = vmov 683565275   ;;  %v776_v30 = vshrl.u32 %v3445_v45, 16  ;;  %v786_v50 = vadd.s32 %v784_v62, %v782_v9 }
  0xa0   :  { %v712_v34 = vshrl.u32 %v5838_v0, %v3294_v28  ;;  %v642_v25 = vshll.u32 %v3497_v21, 30  ;;  %v3522_v12 = vshrl.u32 %v863_v59, 5  ;;  %v5839_v5 = vmov 920167782  }
  0xa1   :  { %v880_v14 = vshll.u32 %v5839_v5, %v865_v2  ;;  %v5840_v32 = vmov 1326507024   ;;  %v754_v27 = vshrl.u32 %v3457_v37, 16  ;;  %v764_v61 = vadd.s32 %v762_v11, %v760_v15 }
  0xa2   :  { %v881_v35 = vshrl.u32 %v5840_v32, %v3500_v8  ;;  %v5841_v63 = vmov 2102212464   ;;  %v878_v28 = vshrl.u32 %v5839_v5, %v3500_v8  ;;  %v5842_v45 = vmov 2475754826  }
  0xa3   :  { %v877_v54 = vshll.u32 %v5841_v63, %v865_v2  ;;  %v871_v9 = vshll.u32 %v5842_v45, %v865_v2  ;;  %v5843_v62 = vmov 2131351028   ;;  %v875_v24 = vshrl.u32 %v5841_v63, %v3500_v8 }
  0xa4   :  { %v872_v31 = vshrl.u32 %v5843_v62, %v3500_v8  ;;  %v874_v59 = vshll.u32 %v5843_v62, %v865_v2  ;;  %v778_v57 = vshrl.u32 %v3461_v56, 16  ;;  %v787_v29 = vadd.s32 %v786_v50, %v776_v30 }
  0xa5   :  { %v5844_v37 = vand.u32 2147483647, %v3282_v44  ;;  %v882_v11 = vor.u32 %v881_v35, %v880_v14  ;;  %v868_v51 = vshll.u32 %v5838_v0, %v865_v2  ;;  %v869_v49 = vshrl.u32 %v5842_v45, %v3500_v8 }
  0xa6   :  { %vm886_vm12 = vcmp.lt.s32.totalorder %v3522_v12, 4  ;;  %v1009_v43 = vand.u32 2139095040, %v3285_v6  ;;  %v733_v52 = vsel %vm731_vm14, %v3360_v47, 2102212464  ;;  %v756_v33 = vshrl.u32 %v3465_v48, 16 }
  0xa7   :  { %v858_v15 = vand.u32 8388607, %v5844_v37  ;;  %v765_v30 = vadd.s32 %v764_v61, %v754_v27  ;;  %v879_v50 = vor.u32 %v878_v28, %v877_v54  ;;  %v3550_v37 = vsub.s32 %v3472_v38, %v642_v25 }
  0xa8   :  { %v732_v2 = vsel %vm728_vm3, %v712_v34, %v3356_v42  ;;  %v3555_v14 = vor.u32 %v872_v31, %v871_v9  ;;  %v3557_v35 = vor.u32 %v875_v24, %v874_v59  ;;  %vm883_vm13 = vcmp.lt.s32.totalorder %v3522_v12, 1 }
  0xa9   :  { %v859_v44 = vor.u32 8388608, %v858_v15  ;;  %vm885_vm14 = vcmp.lt.s32.totalorder %v3522_v12, 3  ;;  %v896_v47 = vsel %vm886_vm12, %v882_v11, 1326507024  ;;  %v734_v54 = vsel %vm730_vm5, %v3358_v19, %v733_v52 }
  0xaa   :  { %v788_v48 = vadd.s32 %v787_v29, %v778_v57  ;;  %v3566_v38 = vor.u32 %v869_v49, %v868_v51  ;;  %v1010_v42 = vshrl.u32 %v1009_v43, 23  ;;  %v506_v61 = vcvt.s32.f32 %v3512_v41 }
  0xab   :  { %v3569_v24 = vadd.s32 %v765_v30, %v756_v33  ;;  %v5845_v34 = vshll.u32 %v3461_v56, 16  ;;  %v892_v25 = vsel %vm886_vm12, %v879_v50, 920167782  ;;  %v504_v27 = vand.u32 2147483647, %v3514_v4 }
  0xac   :  { %vm884_vm15 = vcmp.lt.s32.totalorder %v3522_v12, 2  ;;  %v895_v52 = vsel %vm883_vm13, %v3555_v14, %v3557_v35  ;;  %v897_v33 = vsel %vm885_vm14, %v879_v50, %v896_v47  ;;  %vm644_vm3 = vcmp.lt.s32.totalorder %v3550_v37, 0 }
  0xad   :  { %v3574_v31 = vadd.s32 %v3475_v22, %v5845_v34  ;;  %v645_v22 = vsub.s32 0, %v3550_v37  ;;  %v735_v43 = vsel %vm729_vm6, %v732_v2, %v734_v54  ;;  %v3590_v19 = vshll.u32 %v859_v44, 8 }
  0xae   :  { %v792_v49 = vadd.s32 1, %v788_v48  ;;  %v891_v51 = vsel %vm883_vm13, %v3566_v38, %v3555_v14  ;;  %v893_v29 = vsel %vm885_vm14, %v3557_v35, %v892_v25  ;;  %v2690_v57 = vadd.s32 4294967169, %v1010_v42 }
  0xaf   :  { %5846 = vst [vmem:[#allocation27_spill] sm:$0xff] %v3574_v31  ;;  %v209_v56 = vmul.f32 %v3502_v36, %v3438_v17  ;;  %v216_v46 = vmul.f32 %v3504_v53, %v3438_v17  ;;  %vm791_vm5 = vc.u32 %v3569_v24, %v3574_v31  ;;  %v3607_v44 = vsel %vm884_vm15, %v895_v52, %v897_v33 }
  0xb0   :  { %vm226_vm6 = vcmp.eq.s32.totalorder %v3495_v39, 2  ;;  %v3612_v41 = vmul.f32 %v3510_v13, %v3510_v13  ;;  %vm388_vm0 = vcmp.lt.s32.totalorder %v2946_v58, 0  ;;  %v507_v4 = vmul.f32 %v506_v61, %v504_v27 }
  0xb1   :  { %v5847_v36 = vsub.s32 4, %v3186_v60  ;;  %v646_v53 = vsel %vm644_vm3, %v645_v22, %v3550_v37  ;;  %v789_v28 = vmul.u32 %v3390_v3, %v735_v43  ;;  %v3626_v9 = vsel %vm884_vm15, %v891_v51, %v893_v29 }
  0xb2   :  { %v793_v59 = vsel %vm791_vm5, %v792_v49, %v788_v48  ;;  %v900_v15 = vand.u32 65535, %v3590_v19  ;;  %v903_v11 = vshrl.u32 %v3607_v44, 16  ;;  %v1016_v30 = vadd.s32 1, %v2690_v57 }
  0xb3   :  { %v356_v17 = vsel %vm233_vm2, %v5847_v36, %v3186_v60  ;;  %v3630_v50 = vadd.f32 1.0, %v209_v56  ;;  %v217_v2 = vadd.f32 1.0, %v216_v46  ;;  %v360_v60 = vmul.f32 -0.001358992, %v3612_v41 }
  0xb4   :  { %v5848_v47 = vand.u32 2147483647, %v2946_v58  ;;  %v358_v3 = vsel %vm3489_vm10, 0, %v356_v17  ;;  %v367_v48 = vmul.f32 -0.00019511016, %v3612_v41  ;;  %v508_v42 = vxor.u32 2147483648, %v507_v4 }
  0xb5   :  { %v925_v61 = vshrl.u32 %v3626_v9, 16  ;;  %v647_v34 = vclz %v646_v53  ;;  %v3643_v25 = vadd.s32 %v793_v59, %v789_v28  ;;  %v901_v27 = vshrl.u32 %v3590_v19, 16 }
  0xb6   :  { %vm3635_vm1 = vcmp.le.f32.partialorder %v5848_v47, 0.7853982  ;;  %v5767_v52 = vand.u32 2147483647, %v3285_v6  ;;  %v902_v33 = vand.u32 65535, %v3607_v44  ;;  %v3648_v22 = vmul.u32 %v903_v11, %v900_v15 }
  0xb7   :  { %v924_v43 = vand.u32 65535, %v3626_v9  ;;  %vm1017_vm2 = vcmp.gt.s32.totalorder %v1016_v30, 0  ;;  %v3652_v40 = vmul.f32 %v217_v2, %v3408_v16  ;;  %v227_v49 = vxor.u32 2147483648, %v3630_v50 }
  0xb8   :  { %v361_v51 = vadd.f32 0.041655596, %v360_v60  ;;  %v375_v29 = vadd.s32 3, %v358_v3  ;;  %v368_v57 = vadd.f32 0.008332121, %v367_v48  ;;  %v509_v56 = vsel %vm388_vm0, %v508_v42, %v507_v4 }
  0xb9   :  { %v3657_v46 = vmul.u32 %v925_v61, %v900_v15  ;;  %v1018_v36 = vsel %vm1017_vm2, %v1016_v30, 0  ;;  %v2682_v44 = vadd.s32 4294967294, %v647_v34  ;;  %v795_v17 = vadd.s32 536870912, %v3643_v25 }
  0xba   :  { %v1013_v53 = vand.u32 8388607, %v5767_v52  ;;  %v1020_v28 = vand.u32 31, %v1018_v36  ;;  %v904_v16 = vmul.u32 %v902_v33, %v900_v15  ;;  %v3662_v9 = vmul.u32 %v902_v33, %v901_v27 }
  0xbb   :  { %v908_v59 = vshll.u32 %v3648_v22, 16  ;;  %v3665_v2 = vmul.u32 %v924_v43, %v901_v27  ;;  %v3671_v4 = vsel %vm226_vm6, %v227_v49, %v3652_v40  ;;  %v3673_v30 = vand.u32 3, %v375_v29 }
  0xbc   :  { %v3675_v47 = vsub.s32 32, %v1020_v28  ;;  %v362_v3 = vmul.f32 %v361_v51, %v3612_v41  ;;  %v369_v48 = vmul.f32 %v368_v57, %v3612_v41  ;;  %v926_v42 = vmul.u32 %v924_v43, %v900_v15 }
  0xbd   :  { %v930_v34 = vshll.u32 %v3657_v46, 16  ;;  %v3683_v33 = vsel %vm3635_vm1, %v2946_v58, %v509_v56  ;;  %vm2683_vm4 = vcmp.lt.s32.totalorder %v2682_v44, 0  ;;  %v3685_v52 = vshrl.u32 %v795_v17, 30 }
  0xbe   :  { %5851 = vst [vmem:[#allocation28_spill] sm:$0xff] %v3683_v33  ;;  %v1014_v49 = vor.u32 8388608, %v1013_v53  ;;  %v910_v29 = vshll.u32 %v3662_v9, 16  ;;  %vm3688_vm7 = vc.u32 %v904_v16, %v908_v59  ;;  %v914_v51 = vadd.s32 %v908_v59, %v904_v16 }
  0xbf   :  { %5852 = vst [vmem:[#allocation29_spill] sm:$0xff] %v3685_v52  ;;  %v1023_v43 = vshll.u32 %v5838_v0, %v1020_v28  ;;  %v1024_v57 = vshrl.u32 %v5842_v45, %v3675_v47  ;;  %v1026_v56 = vshll.u32 %v5842_v45, %v1020_v28  ;;  %v1027_v17 = vshrl.u32 %v5843_v62, %v3675_v47 }
  0xc0   :  { %vm934_vm8 = vc.u32 %v926_v42, %v930_v34  ;;  %v3699_v53 = vadd.s32 %v930_v34, %v926_v42  ;;  %v3701_v6 = vshrl.u32 %v1018_v36, 5  ;;  %v1032_v7 = vshll.u32 %v5841_v63, %v1020_v28 }
  0xc1   :  { %v1029_v16 = vshll.u32 %v5843_v62, %v1020_v28  ;;  %v1030_v59 = vshrl.u32 %v5841_v63, %v3675_v47  ;;  %v1033_v15 = vshrl.u32 %v5839_v5, %v3675_v47  ;;  %v1035_v21 = vshll.u32 %v5839_v5, %v1020_v28 }
  0xc2   :  { %v907_v1 = vmul.u32 %v903_v11, %v901_v27  ;;  %v913_v42 = vsel %vm3688_vm7, 1, %v5833_v55  ;;  %v929_v34 = vmul.u32 %v925_v61, %v901_v27  ;;  %v1036_v36 = vshrl.u32 %v5840_v32, %v3675_v47 }
  0xc3   :  { %v935_v45 = vsel %vm934_vm8, 1, %v5833_v55  ;;  %v3716_v62 = vor.u32 %v1024_v57, %v1023_v43  ;;  %v3718_v26 = vor.u32 %v1027_v17, %v1026_v56  ;;  %v1034_v63 = vor.u32 %v1033_v15, %v1032_v7 }
  0xc4   :  { %v797_v31 = vshll.u32 %v3685_v52, 30  ;;  %vm3721_vm9 = vc.u32 %v914_v51, %v910_v29  ;;  %v5857_v11 = vshll.u32 %v3665_v2, 16  ;;  %vm1038_vm11 = vcmp.lt.s32.totalorder %v3701_v6, 1 }
  0xc5   :  { %v3729_v61 = vor.u32 %v1030_v59, %v1029_v16  ;;  %v1037_v27 = vor.u32 %v1036_v36, %v1035_v21  ;;  %vm1041_vm3 = vcmp.lt.s32.totalorder %v3701_v6, 4  ;;  %v3732_v60 = vshll.u32 %v1014_v49, 8 }
  0xc6   :  { %vm938_vm10 = vc.u32 %v3699_v53, %v5857_v11  ;;  %v3734_v7 = vadd.f32 -0.4999988, %v362_v3  ;;  %v915_v15 = vadd.s32 %v913_v42, %v907_v1  ;;  %v937_v29 = vadd.s32 %v935_v45, %v929_v34 }
  0xc7   :  { %5858 = vst [vmem:[#allocation30_spill] sm:$0xff] %v3732_v60  ;;  %vm1040_vm5 = vcmp.lt.s32.totalorder %v3701_v6, 3  ;;  %v939_v51 = vsel %vm938_vm10, 1, %v5833_v55  ;;  %vm1039_vm6 = vcmp.lt.s32.totalorder %v3701_v6, 2  ;;  %v1046_v43 = vsel %vm1038_vm11, %v3716_v62, %v3718_v26 }
  0xc8   :  { %v1047_v21 = vsel %vm1041_vm3, %v1034_v63, 920167782  ;;  %v370_v49 = vadd.f32 -0.16666654, %v369_v48  ;;  %v3747_v3 = vmul.f32 %v3683_v33, %v3683_v33  ;;  %v3750_v1 = vsel %vm2683_vm4, 0, %v2682_v44 }
  0xc9   :  { %v917_v45 = vsel %vm3721_vm9, 1, %v5833_v55  ;;  %v3756_v57 = vsub.s32 %v3643_v25, %v797_v31  ;;  %v1048_v56 = vsel %vm1040_vm5, %v3729_v61, %v1047_v21  ;;  %v1051_v48 = vsel %vm1041_vm3, %v1037_v27, 1326507024 }
  0xca   :  { %v1055_v17 = vand.u32 65535, %v3732_v60  ;;  %v931_v16 = vshrl.u32 %v3657_v46, 16  ;;  %v941_v44 = vadd.s32 %v939_v51, %v937_v29  ;;  %v1049_v59 = vsel %vm1039_vm6, %v1046_v43, %v1048_v56 }
  0xcb   :  { %v1050_v31 = vsel %vm1038_vm11, %v3718_v26, %v3729_v61  ;;  %v909_v25 = vshrl.u32 %v3648_v22, 16  ;;  %v919_v42 = vadd.s32 %v917_v45, %v915_v15  ;;  %v1052_v34 = vsel %vm1040_vm5, %v1034_v63, %v1051_v48 }
  0xcc   :  { %v1080_v36 = vshrl.u32 %v1049_v59, 16  ;;  %v371_v28 = vmul.f32 %v370_v49, %v3612_v41  ;;  %v515_v46 = vmul.f32 -0.001358992, %v3747_v3  ;;  %v1056_v11 = vshrl.u32 %v3732_v60, 16 }
  0xcd   :  { %v1079_v27 = vand.u32 65535, %v1049_v59  ;;  %v522_v29 = vmul.f32 -0.00019511016, %v3747_v3  ;;  %v655_v51 = vsub.s32 4294967266, %v3750_v1  ;;  %v1053_v43 = vsel %vm1039_vm6, %v1050_v31, %v1052_v34 }
  0xce   :  { %v3781_v22 = vmul.u32 %v1080_v36, %v1055_v17  ;;  %v800_v15 = vsub.s32 0, %v3756_v57  ;;  %v867_v63 = vshrl.u32 %v5838_v0, %v3500_v8  ;;  %v933_v21 = vshrl.u32 %v3665_v2, 16 }
  0xcf   :  { %v942_v49 = vadd.s32 %v941_v44, %v931_v16  ;;  %v911_v45 = vshrl.u32 %v3662_v9, 16  ;;  %v920_v56 = vadd.s32 %v919_v42, %v909_v25  ;;  %v1057_v48 = vand.u32 65535, %v1053_v43 }
  0xd0   :  { %v1058_v59 = vshrl.u32 %v1053_v43, 16  ;;  %v888_v52 = vsel %vm886_vm12, %v3557_v35, 2102212464  ;;  %v1081_v31 = vmul.u32 %v1079_v27, %v1055_v17  ;;  %v3791_v34 = vmul.u32 %v1079_v27, %v1056_v11 }
  0xd1   :  { %v1085_v33 = vshll.u32 %v3781_v22, 16  ;;  %vm799_vm2 = vcmp.lt.s32.totalorder %v3756_v57, 0  ;;  %v1059_v8 = vmul.u32 %v1057_v48, %v1055_v17  ;;  %v3797_v16 = vmul.u32 %v1057_v48, %v1056_v11 }
  0xd2   :  { %v3795_v32 = vmul.u32 %v1058_v59, %v1055_v17  ;;  %vm223_vm4 = vcmp.eq.s32.totalorder %v3495_v39, 0  ;;  %v635_v9 = vadd.s32 %v3431_v18, %v3426_v23  ;;  %v651_v44 = vsub.s32 32, %v3750_v1 }
  0xd3   :  { %v887_v35 = vsel %vm883_vm13, %v867_v63, %v3566_v38  ;;  %v943_v25 = vadd.s32 %v942_v49, %v933_v21  ;;  %v889_v42 = vsel %vm885_vm14, %v3555_v14, %v888_v52  ;;  %v3809_v17 = vadd.s32 %v920_v56, %v911_v45 }
  0xd4   :  { %v5859_v27 = vshll.u32 %v3665_v2, 16  ;;  %v1063_v23 = vshll.u32 %v3795_v32, 16  ;;  %v656_v18 = vadd.s32 127, %v655_v51  ;;  %v801_v48 = vsel %vm799_vm2, %v800_v15, %v3756_v57 }
  0xd5   :  { %v1087_v60 = vshll.u32 %v3791_v34, 16  ;;  %vm1089_vm12 = vc.u32 %v1081_v31, %v1085_v33  ;;  %v652_v38 = vshll.u32 %v3550_v37, %v3750_v1  ;;  %v1065_v14 = vshll.u32 %v3797_v16, 16 }
  0xd6   :  { %v3814_v43 = vadd.s32 %v3699_v53, %v5859_v27  ;;  %vm1067_vm13 = vc.u32 %v1059_v8, %v1063_v23  ;;  %v1069_v52 = vadd.s32 %v1063_v23, %v1059_v8  ;;  %vm222_vm14 = vcmp.lt.s32.totalorder %v3495_v39, 2 }
  0xd7   :  { %v890_v2 = vsel %vm884_vm15, %v887_v35, %v889_v42  ;;  %v947_v53 = vadd.s32 1, %v943_v25  ;;  %v1084_v63 = vmul.u32 %v1080_v36, %v1056_v11  ;;  %v3825_v51 = vadd.s32 %v1085_v33, %v1081_v31 }
  0xd8   :  { %v802_v15 = vclz %v801_v48  ;;  %vm946_vm7 = vc.u32 %v3809_v17, %v3814_v43  ;;  %v1062_v21 = vmul.u32 %v1058_v59, %v1056_v11  ;;  %v1090_v37 = vsel %vm1089_vm12, 1, %v5833_v55 }
  0xd9   :  { %v653_v1 = vshrl.u32 %v635_v9, %v651_v44  ;;  %v657_v49 = vshll.u32 %v656_v18, 23  ;;  %v1068_v45 = vsel %vm1067_vm13, 1, %v5833_v55  ;;  %vm1093_vm8 = vc.u32 %v3825_v51, %v1087_v60 }
  0xda   :  { %v510_v12 = vsub.s32 4, %v3276_v20  ;;  %v516_v36 = vadd.f32 0.041655596, %v515_v46  ;;  %v944_v33 = vmul.u32 %v3590_v19, %v890_v2  ;;  %vm1071_vm15 = vc.u32 %v1069_v52, %v1065_v14 }
  0xdb   :  { %v364_v56 = vmul.f32 %v3734_v7, %v3612_v41  ;;  %v372_v11 = vadd.f32 1.0, %v371_v28  ;;  %v948_v59 = vsel %vm946_vm7, %v947_v53, %v943_v25  ;;  %v1092_v31 = vadd.s32 %v1090_v37, %v1084_v63 }
  0xdc   :  { %v523_v8 = vadd.f32 0.008332121, %v522_v29  ;;  %v2685_v9 = vadd.s32 4294967294, %v802_v15  ;;  %v1070_v44 = vadd.s32 %v1068_v45, %v1062_v21  ;;  %v1094_v35 = vsel %vm1093_vm8, 1, %v5833_v55 }
  0xdd   :  { %v654_v42 = vor.u32 %v653_v1, %v652_v38  ;;  %v658_v27 = vor.u32 4788187, %v657_v49  ;;  %v1072_v23 = vsel %vm1071_vm15, 1, %v5833_v55  ;;  %v1164_v46 = vand.u32 2139095040, %v3290_v10 }
  0xde   :  { %v5860_v19 = vxor.u32 2147483648, %v3652_v40  ;;  %v511_v7 = vsel %vm388_vm0, %v510_v12, %v3276_v20  ;;  %v517_v28 = vmul.f32 %v516_v36, %v3747_v3  ;;  %v3850_v29 = vadd.s32 %v948_v59, %v944_v33 }
  0xdf   :  { %v365_v25 = vadd.f32 1.0, %v364_v56  ;;  %v1086_v18 = vshrl.u32 %v3781_v22, 16  ;;  %v1096_v48 = vadd.s32 %v1094_v35, %v1092_v31  ;;  %v1165_v38 = vshrl.u32 %v1164_v46, 23  ;;  %v5861_v35 = vld [vmem:[#allocation27_spill] sm:$0xff] }
  0xe0   :  { %v225_v41 = vsel %vm223_vm4, %v3630_v50, %v5860_v19  ;;  %vm378_vm9 = vcmp.eq.s32.totalorder %v3673_v30, 0  ;;  %vm381_vm10 = vcmp.eq.s32.totalorder %v3673_v30, 2  ;;  %v524_v40 = vmul.f32 %v523_v8, %v3747_v3  ;;  %v5862_v19 = vld [vmem:[#allocation13_spill] sm:$0xff] }
  0xe1   :  { %vm2686_vm2 = vcmp.lt.s32.totalorder %v2685_v9, 0  ;;  %v1064_v50 = vshrl.u32 %v3795_v32, 16  ;;  %v1074_v14 = vadd.s32 %v1072_v23, %v1070_v44  ;;  %v373_v20 = vmul.f32 %v372_v11, %v3510_v13 }
  0xe2   :  { %v659_v52 = vand.u32 2147483647, %v658_v27  ;;  %v661_v2 = vcvt.s32.f32 %v654_v42  ;;  %v2693_v53 = vadd.s32 4294967169, %v1165_v38  ;;  %v3861_v22 = vsel %vm222_vm14, %v225_v41, %v3671_v4 }
  0xe3   :  { %v513_v63 = vsel %vm3635_vm1, 0, %v511_v7  ;;  %v518_v15 = vadd.f32 -0.4999988, %v517_v28  ;;  %v950_v21 = vadd.s32 536870912, %v3850_v29  ;;  %v3866_v37 = vsel %vm2686_vm2, 0, %v2685_v9 }
  0xe4   :  { %v1088_v32 = vshrl.u32 %v3791_v34, 16  ;;  %v1097_v1 = vadd.s32 %v1096_v48, %v1086_v18  ;;  %v1171_v13 = vadd.s32 1, %v2693_v53  ;;  %v382_v49 = vxor.u32 2147483648, %v365_v25  ;;  %v5867_v53 = vld [vmem:[#allocation30_spill] sm:$0xff] }
  0xe5   :  { %v525_v45 = vadd.f32 -0.16666654, %v524_v40  ;;  %v1066_v12 = vshrl.u32 %v3797_v16, 16  ;;  %v1075_v36 = vadd.s32 %v1074_v14, %v1064_v50  ;;  %v379_v39 = vxor.u32 2147483648, %v373_v20 }
  0xe6   :  { %v662_v4 = vmul.f32 %v661_v2, %v659_v52  ;;  %v1022_v54 = vshrl.u32 %v5838_v0, %v3675_v47  ;;  %vm1172_vm0 = vcmp.gt.s32.totalorder %v1171_v13, 0  ;;  %v810_v33 = vsub.s32 4294967266, %v3866_v37 }
  0xe7   :  { %v3873_v56 = vshrl.u32 %v950_v21, 30  ;;  %v1043_v11 = vsel %vm1041_vm3, %v3729_v61, 2102212464  ;;  %v1173_v59 = vsel %vm1172_vm0, %v1171_v13, 0  ;;  %v519_v31 = vmul.f32 %v518_v15, %v3747_v3 }
  0xe8   :  { %v530_v8 = vadd.s32 3, %v513_v63  ;;  %v1098_v16 = vadd.s32 %v1097_v1, %v1088_v32  ;;  %v1175_v9 = vand.u32 31, %v1173_v59  ;;  %v526_v44 = vmul.f32 %v525_v45, %v3747_v3 }
  0xe9   :  { %v790_v47 = vadd.s32 %v5861_v35, %v3569_v24  ;;  %v3882_v42 = vadd.s32 %v1075_v36, %v1066_v12  ;;  %v3887_v27 = vadd.s32 %v3825_v51, %v1087_v60  ;;  %v663_v23 = vxor.u32 2147483648, %v662_v4 }
  0xea   :  { %v806_v61 = vsub.s32 32, %v3866_v37  ;;  %v1042_v46 = vsel %vm1038_vm11, %v1022_v54, %v3716_v62  ;;  %v1044_v3 = vsel %vm1040_vm5, %v3718_v26, %v1043_v11  ;;  %vm543_vm1 = vcmp.lt.s32.totalorder %v5862_v19, 0  ;;  %v5871_v54 = vld [vmem:[#allocation11_spill] sm:$0xff] }
  0xeb   :  { %v811_v24 = vadd.s32 127, %v810_v33  ;;  %v952_v41 = vshll.u32 %v3873_v56, 30  ;;  %v3898_v34 = vsub.s32 32, %v1175_v9  ;;  %v3902_v60 = vsel %vm378_vm9, %v365_v25, %v379_v39  ;;  %v5872_v33 = vld [vmem:[#allocation28_spill] sm:$0xff] }
  0xec   :  { %v3906_v51 = vsel %vm381_vm10, %v382_v49, %v373_v20  ;;  %v5863_v62 = vand.u32 2147483647, %v5862_v19  ;;  %v1102_v26 = vadd.s32 1, %v1098_v16  ;;  %v3914_v28 = vadd.f32 1.0, %v519_v31 }
  0xed   :  { %v3916_v18 = vand.u32 3, %v530_v8  ;;  %v1045_v48 = vsel %vm1039_vm6, %v1042_v46, %v1044_v3  ;;  %vm1101_vm3 = vc.u32 %v3882_v42, %v3887_v27  ;;  %v527_v25 = vadd.f32 1.0, %v526_v44 }
  0xee   :  { %vm3910_vm11 = vcmp.le.f32.partialorder %v5863_v62, 0.7853982  ;;  %v664_v38 = vsel %vm543_vm1, %v663_v23, %v662_v4  ;;  %v807_v40 = vshll.u32 %v3756_v57, %v3866_v37  ;;  %v808_v50 = vshrl.u32 %v790_v47, %v806_v61  ;;  %v5874_v61 = vld [vmem:[#allocation18_spill] sm:$0xff] }
  0xef   :  { %v812_v14 = vshll.u32 %v811_v24, 23  ;;  %v3927_v20 = vsub.s32 %v3850_v29, %v952_v41  ;;  %v5866_v52 = vmov 2102212464   ;;  %v1188_v6 = vshrl.u32 %v5839_v5, %v3898_v34 }
  0xf0   :  { %v1187_v2 = vshll.u32 %v5866_v52, %v1175_v9  ;;  %v1099_v63 = vmul.u32 %v5867_v53, %v1045_v48  ;;  %v1103_v15 = vsel %vm1101_vm3, %v1102_v26, %v1098_v16  ;;  %v5787_v21 = vand.u32 2147483647, %v3290_v10 }
  0xf1   :  { %v3934_v32 = vshrl.u32 %v1173_v59, 5  ;;  %v1178_v1 = vshll.u32 %v5838_v0, %v1175_v9  ;;  %v5868_v57 = vmov 2475754826   ;;  %v5869_v13 = vmov 2131351028   ;;  %v5873_v59 = vld [vmem:[#allocation26_spill] sm:$0xff] }
  0xf2   :  { %v1179_v37 = vshrl.u32 %v5868_v57, %v3898_v34  ;;  %v1181_v29 = vshll.u32 %v5868_v57, %v1175_v9  ;;  %v1184_v49 = vshll.u32 %v5869_v13, %v1175_v9  ;;  %v1182_v45 = vshrl.u32 %v5869_v13, %v3898_v34 }
  0xf3   :  { %v1185_v12 = vshrl.u32 %v5866_v52, %v3898_v34  ;;  %v1190_v36 = vshll.u32 %v5839_v5, %v1175_v9  ;;  %v5870_v39 = vmov 1326507024   ;;  %vm219_vm5 = vweird.f32 %v5871_v54 }
  0xf4   :  { %v1191_v4 = vshrl.u32 %v5870_v39, %v3898_v34  ;;  %v528_v11 = vmul.f32 %v527_v25, %v5872_v33  ;;  %v665_v31 = vsub.s32 4, %v5873_v59  ;;  %v3954_v8 = vsel %vm3910_vm11, %v5862_v19, %v664_v38  ;;  %v5875_v25 = vld [vmem:[#allocation12_spill] sm:$0xff] }
  0xf5   :  { %v1189_v16 = vor.u32 %v1188_v6, %v1187_v2  ;;  %vm533_vm6 = vcmp.eq.s32.totalorder %v3916_v18, 0  ;;  %v809_v44 = vor.u32 %v808_v50, %v807_v40  ;;  %v813_v35 = vor.u32 4788187, %v812_v14 }
  0xf6   :  { %v1168_v9 = vand.u32 8388607, %v5787_v21  ;;  %vm1196_vm4 = vcmp.lt.s32.totalorder %v3934_v32, 4  ;;  %vm377_vm12 = vcmp.lt.s32.totalorder %v3673_v30, 2  ;;  %vm954_vm13 = vcmp.lt.s32.totalorder %v3927_v20, 0 }
  0xf7   :  { %v955_v47 = vsub.s32 0, %v3927_v20  ;;  %v3963_v23 = vadd.s32 %v1103_v15, %v1099_v63  ;;  %v1319_v46 = vand.u32 2139095040, %v5874_v61  ;;  %v3966_v3 = vor.u32 %v1179_v37, %v1178_v1 }
  0xf8   :  { %v3968_v24 = vor.u32 %v1182_v45, %v1181_v29  ;;  %v3970_v41 = vor.u32 %v1185_v12, %v1184_v49  ;;  %v1192_v62 = vor.u32 %v1191_v4, %v1190_v36  ;;  %v3974_v26 = vmul.f32 %v3954_v8, %v3954_v8 }
  0xf9   :  { %vm1193_vm14 = vcmp.lt.s32.totalorder %v3934_v32, 1  ;;  %vm1195_vm7 = vcmp.lt.s32.totalorder %v3934_v32, 3  ;;  %v1202_v48 = vsel %vm1196_vm4, %v1189_v16, 920167782  ;;  %vm374_vm8 = vweird.f32 %v5875_v25 }
  0xfa   :  { %vm536_vm15 = vcmp.eq.s32.totalorder %v3916_v18, 2  ;;  %v814_v38 = vand.u32 2147483647, %v813_v35  ;;  %v816_v40 = vcvt.s32.f32 %v809_v44  ;;  %v1169_v50 = vor.u32 8388608, %v1168_v9 }
  0xfb   :  { %v537_v14 = vxor.u32 2147483648, %v3914_v28  ;;  %v956_v2 = vsel %vm954_vm13, %v955_v47, %v3927_v20  ;;  %v1105_v6 = vadd.s32 536870912, %v3963_v23  ;;  %v1320_v53 = vshrl.u32 %v1319_v46, 23 }
  0xfc   :  { %vm1194_vm9 = vcmp.lt.s32.totalorder %v3934_v32, 2  ;;  %v1201_v63 = vsel %vm1193_vm14, %v3966_v3, %v3968_v24  ;;  %v1203_v15 = vsel %vm1195_vm7, %v3970_v41, %v1202_v48  ;;  %v1206_v1 = vsel %vm1196_vm4, %v1192_v62, 1326507024 }
  0xfd   :  { %v534_v37 = vxor.u32 2147483648, %v528_v11  ;;  %v666_v29 = vsel %vm543_vm1, %v665_v31, %v5873_v59  ;;  %v670_v49 = vmul.f32 -0.001358992, %v3974_v26  ;;  %v677_v45 = vmul.f32 -0.00019511016, %v3974_v26 }
  0xfe   :  { %v817_v12 = vmul.f32 %v816_v40, %v814_v38  ;;  %v957_v36 = vclz %v956_v2  ;;  %v1205_v4 = vsel %vm1193_vm14, %v3968_v24, %v3970_v41  ;;  %v4006_v33 = vshll.u32 %v1169_v50, 8  ;;  %v5878_v40 = vld [vmem:[#allocation14_spill] sm:$0xff] }
  0xff   :  { %v4008_v44 = vshrl.u32 %v1105_v6, 30  ;;  %v4012_v35 = vsel %vm1194_vm9, %v1201_v63, %v1203_v15  ;;  %v1207_v59 = vsel %vm1195_vm7, %v1189_v16, %v1206_v1  ;;  %v2696_v31 = vadd.s32 4294967169, %v1320_v53  ;;  %v5880_v63 = vld [vmem:[#allocation29_spill] sm:$0xff] }
 0x100   :  { %v4019_v9 = vsel %vm219_vm5, nan, %v3861_v22  ;;  %vm532_vm10 = vcmp.lt.s32.totalorder %v3916_v18, 2  ;;  %v538_v47 = vsel %vm536_vm15, %v537_v14, %v528_v11  ;;  %v668_v46 = vsel %vm3910_vm11, 0, %v666_v29 }
 0x101   :  { %5876 = vst [vmem:[#allocation27_spill] sm:$0xff] %v4008_v44  ;;  %v535_v62 = vsel %vm533_vm6, %v3914_v28, %v534_v37  ;;  %v671_v48 = vadd.f32 0.041655596, %v670_v49  ;;  %v678_v16 = vadd.f32 0.008332121, %v677_v45  ;;  %v1208_v38 = vsel %vm1194_vm9, %v1205_v4, %v1207_v59 }
 0x102   :  { %5877 = vst [vmem:[#allocation30_spill] sm:$0xff] %v4019_v9  ;;  %v384_v22 = vsel %vm377_vm12, %v3902_v60, %v3906_v51  ;;  %v818_v54 = vxor.u32 2147483648, %v817_v12  ;;  %v1210_v11 = vand.u32 65535, %v4006_v33  ;;  %v1235_v7 = vshrl.u32 %v4012_v35, 16 }
 0x103   :  { %vm698_vm2 = vcmp.lt.s32.totalorder %v5878_v40, 0  ;;  %v2688_v50 = vadd.s32 4294967294, %v957_v36  ;;  %v1107_v28 = vshll.u32 %v4008_v44, 30  ;;  %v1326_v14 = vadd.s32 1, %v2696_v31 }
 0x104   :  { %vm529_vm0 = vweird.f32 %v2946_v58  ;;  %v539_v2 = vsel %vm532_vm10, %v535_v62, %v538_v47  ;;  %v685_v6 = vadd.s32 3, %v668_v46  ;;  %v1213_v53 = vshrl.u32 %v1208_v38, 16 }
 0x105   :  { %v4044_v30 = vsel %vm374_vm8, nan, %v384_v22  ;;  %v672_v60 = vmul.f32 %v671_v48, %v3974_v26  ;;  %v679_v51 = vmul.f32 %v678_v16, %v3974_v26  ;;  %v820_v15 = vsub.s32 4, %v5880_v63 }
 0x106   :  { %5879 = vst [vmem:[#allocation11_spill] sm:$0xff] %v4044_v30  ;;  %v5881_v1 = vand.u32 2147483647, %v5878_v40  ;;  %v819_v58 = vsel %vm698_vm2, %v818_v54, %v817_v12  ;;  %v1234_v18 = vand.u32 65535, %v4012_v35  ;;  %v4058_v25 = vmul.u32 %v1235_v7, %v1210_v11 }
 0x107   :  { %v4060_v29 = vsel %vm529_vm0, nan, %v539_v2  ;;  %vm2689_vm11 = vcmp.lt.s32.totalorder %v2688_v50, 0  ;;  %v4063_v49 = vsub.s32 %v3963_v23, %v1107_v28  ;;  %vm1327_vm3 = vcmp.gt.s32.totalorder %v1326_v14, 0 }
 0x108   :  { %vm4051_vm1 = vcmp.le.f32.partialorder %v5881_v1, 0.7853982  ;;  %5884 = vst [vmem:[#allocation28_spill] sm:$0xff] %v4060_v29  ;;  %v4065_v45 = vand.u32 3, %v685_v6  ;;  %v1211_v36 = vshrl.u32 %v4006_v33, 16  ;;  %v1212_v4 = vand.u32 65535, %v1208_v38 }
 0x109   :  { %v4068_v59 = vmul.u32 %v1213_v53, %v1210_v11  ;;  %v673_v31 = vadd.f32 -0.4999988, %v672_v60  ;;  %v680_v12 = vadd.f32 -0.16666654, %v679_v51  ;;  %v4073_v35 = vsel %vm698_vm2, %v820_v15, %v5880_v63 }
 0x10a   :  { %v4078_v23 = vsel %vm4051_vm1, %v5878_v40, %v819_v58  ;;  %v4080_v47 = vsel %vm2689_vm11, 0, %v2688_v50  ;;  %v1236_v46 = vmul.u32 %v1234_v18, %v1210_v11  ;;  %v1240_v62 = vshll.u32 %v4058_v25, 16 }
 0x10b   :  { %v1328_v48 = vsel %vm1327_vm3, %v1326_v14, 0  ;;  %vm1109_vm5 = vcmp.lt.s32.totalorder %v4063_v49, 0  ;;  %v1110_v16 = vsub.s32 0, %v4063_v49  ;;  %v5788_v38 = vand.u32 2147483647, %v5874_v61 }
 0x10c   :  { %v1330_v22 = vand.u32 31, %v1328_v48  ;;  %v1214_v54 = vmul.u32 %v1212_v4, %v1210_v11  ;;  %v4086_v28 = vmul.u32 %v1212_v4, %v1211_v36  ;;  %v1218_v2 = vshll.u32 %v4068_v59, 16 }
 0x10d   :  { %v4089_v6 = vmul.u32 %v1234_v18, %v1211_v36  ;;  %v4092_v50 = vmul.f32 %v673_v31, %v3974_v26  ;;  %v4095_v60 = vmul.f32 %v680_v12, %v3974_v26  ;;  %v4102_v51 = vmul.f32 %v4078_v23, %v4078_v23 }
 0x10e   :  { %v945_v11 = vadd.s32 %v3814_v43, %v3809_v17  ;;  %v965_v63 = vsub.s32 4294967266, %v4080_v47  ;;  %vm1244_vm6 = vc.u32 %v1236_v46, %v1240_v62  ;;  %v4107_v15 = vsub.s32 32, %v1330_v22 }
 0x10f   :  { %v1111_v26 = vsel %vm1109_vm5, %v1110_v16, %v4063_v49  ;;  %v1217_v1 = vmul.u32 %v1213_v53, %v1211_v36  ;;  %v1239_v58 = vmul.u32 %v1235_v7, %v1211_v36  ;;  %v1323_v18 = vand.u32 8388607, %v5788_v38 }
 0x110   :  { %v1220_v4 = vshll.u32 %v4086_v28, 16  ;;  %vm1222_vm12 = vc.u32 %v1214_v54, %v1218_v2  ;;  %v1242_v31 = vshll.u32 %v4089_v6, 16  ;;  %v4116_v17 = vadd.s32 %v1240_v62, %v1236_v46 }
 0x111   :  { %v1224_v43 = vadd.s32 %v1218_v2, %v1214_v54  ;;  %v1245_v12 = vsel %vm1244_vm6, 1, %v5833_v55  ;;  %v1333_v21 = vshll.u32 %v5838_v0, %v1330_v22  ;;  %v1336_v14 = vshll.u32 %v5868_v57, %v1330_v22 }
 0x112   :  { %v1334_v7 = vshrl.u32 %v5868_v57, %v4107_v15  ;;  %v1337_v53 = vshrl.u32 %v5869_v13, %v4107_v15  ;;  %v1339_v36 = vshll.u32 %v5869_v13, %v1330_v22  ;;  %v1340_v16 = vshrl.u32 %v5866_v52, %v4107_v15 }
 0x113   :  { %v1223_v46 = vsel %vm1222_vm12, 1, %v5833_v55  ;;  %v4129_v62 = vshrl.u32 %v1328_v48, 5  ;;  %v1342_v54 = vshll.u32 %v5866_v52, %v1330_v22  ;;  %v1343_v2 = vshrl.u32 %v5839_v5, %v4107_v15 }
 0x114   :  { %v1112_v38 = vclz %v1111_v26  ;;  %vm1248_vm13 = vc.u32 %v4116_v17, %v1242_v31  ;;  %v1324_v29 = vor.u32 8388608, %v1323_v18  ;;  %v1345_v30 = vshll.u32 %v5839_v5, %v1330_v22 }
 0x115   :  { %vm1226_vm8 = vc.u32 %v1224_v43, %v1220_v4  ;;  %v1247_v9 = vadd.s32 %v1245_v12, %v1239_v58  ;;  %v1344_v61 = vor.u32 %v1343_v2, %v1342_v54  ;;  %v1346_v48 = vshrl.u32 %v5870_v39, %v4107_v15 }
 0x116   :  { %v1225_v40 = vadd.s32 %v1223_v46, %v1217_v1  ;;  %v4140_v10 = vor.u32 %v1334_v7, %v1333_v21  ;;  %v4142_v44 = vor.u32 %v1337_v53, %v1336_v14  ;;  %v4144_v19 = vor.u32 %v1340_v16, %v1339_v36 }
 0x117   :  { %v1249_v26 = vsel %vm1248_vm13, 1, %v5833_v55  ;;  %vm1348_vm15 = vcmp.lt.s32.totalorder %v4129_v62, 1  ;;  %vm1350_vm10 = vcmp.lt.s32.totalorder %v4129_v62, 3  ;;  %vm1351_vm2 = vcmp.lt.s32.totalorder %v4129_v62, 4 }
 0x118   :  { %v961_v22 = vsub.s32 32, %v4080_v47  ;;  %v966_v58 = vadd.s32 127, %v965_v63  ;;  %v1227_v18 = vsel %vm1226_vm8, 1, %v5833_v55  ;;  %v1347_v1 = vor.u32 %v1346_v48, %v1345_v30 }
 0x119   :  { %v832_v21 = vmul.f32 -0.00019511016, %v4102_v51  ;;  %v2691_v14 = vadd.s32 4294967294, %v1112_v38  ;;  %v1241_v4 = vshrl.u32 %v4058_v25, 16  ;;  %v1357_v43 = vsel %vm1351_vm2, %v1344_v61, 920167782 }
 0x11a   :  { %v1251_v12 = vadd.s32 %v1249_v26, %v1247_v9  ;;  %vm1349_vm0 = vcmp.lt.s32.totalorder %v4129_v62, 2  ;;  %v1356_v7 = vsel %vm1348_vm15, %v4140_v10, %v4142_v44  ;;  %v1358_v30 = vsel %vm1350_vm10, %v4144_v19, %v1357_v43 }
 0x11b   :  { %v1219_v63 = vshrl.u32 %v4068_v59, 16  ;;  %v1229_v38 = vadd.s32 %v1227_v18, %v1225_v40  ;;  %v1360_v25 = vsel %vm1348_vm15, %v4142_v44, %v4144_v19  ;;  %v4169_v9 = vshll.u32 %v1324_v29, 8 }
 0x11c   :  { %v962_v53 = vshll.u32 %v3927_v20, %v4080_v47  ;;  %v963_v36 = vshrl.u32 %v945_v11, %v961_v22  ;;  %v967_v16 = vshll.u32 %v966_v58, 23  ;;  %v1361_v46 = vsel %vm1351_vm2, %v1347_v1, 1326507024 }
 0x11d   :  { %v1177_v54 = vshrl.u32 %v5838_v0, %v3898_v34  ;;  %v1198_v40 = vsel %vm1196_vm4, %v3970_v41, 2102212464  ;;  %v4182_v59 = vsel %vm1349_vm0, %v1356_v7, %v1358_v30  ;;  %v1362_v29 = vsel %vm1350_vm10, %v1344_v61, %v1361_v46 }
 0x11e   :  { %vm691_vm11 = vcmp.eq.s32.totalorder %v4065_v45, 2  ;;  %vm2692_vm3 = vcmp.lt.s32.totalorder %v2691_v14, 0  ;;  %v1243_v20 = vshrl.u32 %v4089_v6, 16  ;;  %v1252_v47 = vadd.s32 %v1251_v12, %v1241_v4 }
 0x11f   :  { %v4190_v34 = vsel %vm1349_vm0, %v1360_v25, %v1362_v29  ;;  %v1221_v11 = vshrl.u32 %v4086_v28, 16  ;;  %v1230_v41 = vadd.s32 %v1229_v38, %v1219_v63  ;;  %v1365_v2 = vand.u32 65535, %v4169_v9 }
 0x120   :  { %v1368_v48 = vshrl.u32 %v4190_v34, 16  ;;  %v4196_v26 = vadd.f32 1.0, %v4092_v50  ;;  %v682_v61 = vadd.f32 1.0, %v4095_v60  ;;  %v825_v22 = vmul.f32 -0.001358992, %v4102_v51 }
 0x121   :  { %v1390_v58 = vshrl.u32 %v4182_v59, 16  ;;  %v833_v18 = vadd.f32 0.008332121, %v832_v21  ;;  %v964_v1 = vor.u32 %v963_v36, %v962_v53  ;;  %v968_v4 = vor.u32 4788187, %v967_v16 }
 0x122   :  { %v1197_v28 = vsel %vm1193_vm14, %v1177_v54, %v3966_v3  ;;  %v4205_v43 = vsel %vm2692_vm3, 0, %v2691_v14  ;;  %v1199_v50 = vsel %vm1195_vm7, %v3968_v24, %v1198_v40  ;;  %v4213_v60 = vadd.s32 %v4116_v17, %v1242_v31  ;;  %v5886_v54 = vld [vmem:[#allocation15_spill] sm:$0xff] }
 0x123   :  { %v1253_v12 = vadd.s32 %v1252_v47, %v1243_v20  ;;  %v4215_v21 = vadd.s32 %v1230_v41, %v1221_v11  ;;  %v1366_v7 = vshrl.u32 %v4169_v9, 16  ;;  %v1367_v30 = vand.u32 65535, %v4190_v34 }
 0x124   :  { %v4221_v3 = vmul.u32 %v1368_v48, %v1365_v2  ;;  %v683_v14 = vmul.f32 %v682_v61, %v3954_v8  ;;  %v692_v24 = vxor.u32 2147483648, %v4196_v26  ;;  %v1389_v6 = vand.u32 65535, %v4182_v59 }
 0x125   :  { %v4226_v63 = vmul.u32 %v1390_v58, %v1365_v2  ;;  %v826_v31 = vadd.f32 0.041655596, %v825_v22  ;;  %v834_v17 = vmul.f32 %v833_v18, %v4102_v51  ;;  %v5885_v38 = vsel %vm4051_vm1, 0, %v4073_v35 }
 0x126   :  { %v840_v25 = vadd.s32 3, %v5885_v38  ;;  %v971_v53 = vcvt.s32.f32 %v964_v1  ;;  %vm688_vm4 = vcmp.eq.s32.totalorder %v4065_v45, 0  ;;  %v969_v36 = vand.u32 2147483647, %v968_v4 }
 0x127   :  { %v1120_v8 = vsub.s32 4294967266, %v4205_v43  ;;  %v1200_v16 = vsel %vm1194_vm9, %v1197_v28, %v1199_v50  ;;  %v1257_v46 = vadd.s32 1, %v1253_v12  ;;  %vm853_vm14 = vcmp.lt.s32.totalorder %v5886_v54, 0 }
 0x128   :  { %vm1256_vm7 = vc.u32 %v4215_v21, %v4213_v60  ;;  %v1369_v40 = vmul.u32 %v1367_v30, %v1365_v2  ;;  %v4240_v37 = vmul.u32 %v1367_v30, %v1366_v7  ;;  %v1373_v35 = vshll.u32 %v4221_v3, 16 }
 0x129   :  { %v689_v59 = vxor.u32 2147483648, %v683_v14  ;;  %v1391_v29 = vmul.u32 %v1389_v6, %v1365_v2  ;;  %v4243_v20 = vmul.u32 %v1389_v6, %v1366_v7  ;;  %v1395_v47 = vshll.u32 %v4226_v63, 16 }
 0x12a   :  { %vm687_vm1 = vcmp.lt.s32.totalorder %v4065_v45, 2  ;;  %v693_v32 = vsel %vm691_vm11, %v692_v24, %v683_v14  ;;  %v827_v11 = vmul.f32 %v826_v31, %v4102_v51  ;;  %v835_v41 = vadd.f32 -0.16666654, %v834_v17 }
 0x12b   :  { %v1254_v61 = vmul.u32 %v4006_v33, %v1200_v16  ;;  %v5887_v22 = vand.u32 2147483647, %v5886_v54  ;;  %v972_v2 = vmul.f32 %v971_v53, %v969_v36  ;;  %v1100_v1 = vadd.s32 %v3887_v27, %v3882_v42  ;;  %v5890_v33 = vld [vmem:[#allocation19_spill] sm:$0xff] }
 0x12c   :  { %v1116_v4 = vsub.s32 32, %v4205_v43  ;;  %v1258_v28 = vsel %vm1256_vm7, %v1257_v46, %v1253_v12  ;;  %v1121_v50 = vadd.s32 127, %v1120_v8  ;;  %v1375_v30 = vshll.u32 %v4240_v37, 16 }
 0x12d   :  { %vm4253_vm9 = vcmp.le.f32.partialorder %v5887_v22, 0.7853982  ;;  %vm1377_vm5 = vc.u32 %v1369_v40, %v1373_v35  ;;  %v1474_v14 = vand.u32 2139095040, %v5890_v33  ;;  %v1379_v24 = vadd.s32 %v1373_v35, %v1369_v40 }
 0x12e   :  { %v1397_v6 = vshll.u32 %v4243_v20, 16  ;;  %vm1399_vm6 = vc.u32 %v1391_v29, %v1395_v47  ;;  %v4266_v31 = vadd.s32 %v1395_v47, %v1391_v29  ;;  %v828_v17 = vadd.f32 -0.4999988, %v827_v11 }
 0x12f   :  { %v4268_v42 = vand.u32 3, %v840_v25  ;;  %v4270_v27 = vadd.s32 %v1258_v28, %v1254_v61  ;;  %v1475_v38 = vshrl.u32 %v1474_v14, 23  ;;  %v836_v12 = vmul.f32 %v835_v41, %v4102_v51 }
 0x130   :  { %v973_v53 = vxor.u32 2147483648, %v972_v2  ;;  %v1372_v36 = vmul.u32 %v1368_v48, %v1366_v7  ;;  %v1394_v8 = vmul.u32 %v1390_v58, %v1366_v7  ;;  %v1117_v16 = vshll.u32 %v4063_v49, %v4205_v43 }
 0x131   :  { %v1378_v46 = vsel %vm1377_vm5, 1, %v5833_v55  ;;  %v1400_v40 = vsel %vm1399_vm6, 1, %v5833_v55  ;;  %v2699_v35 = vadd.s32 4294967169, %v1475_v38  ;;  %v1118_v25 = vshrl.u32 %v1100_v1, %v1116_v4 }
 0x132   :  { %v1122_v29 = vshll.u32 %v1121_v50, 23  ;;  %vm1381_vm12 = vc.u32 %v1379_v24, %v1375_v30  ;;  %vm1403_vm13 = vc.u32 %v4266_v31, %v1397_v6  ;;  %v690_v34 = vsel %vm688_vm4, %v4196_v26, %v689_v59 }
 0x133   :  { %v829_v48 = vmul.f32 %v828_v17, %v4102_v51  ;;  %v1260_v49 = vadd.s32 536870912, %v4270_v27  ;;  %v1481_v58 = vadd.s32 1, %v2699_v35  ;;  %v837_v43 = vadd.f32 1.0, %v836_v12 }
 0x134   :  { %v974_v7 = vsel %vm853_vm14, %v973_v53, %v972_v2  ;;  %v1380_v47 = vadd.s32 %v1378_v46, %v1372_v36  ;;  %v1402_v11 = vadd.s32 %v1400_v40, %v1394_v8  ;;  %v975_v41 = vsub.s32 4, %v3873_v56 }
 0x135   :  { %v1382_v61 = vsel %vm1381_vm12, 1, %v5833_v55  ;;  %v1404_v22 = vsel %vm1403_vm13, 1, %v5833_v55  ;;  %vm1482_vm8 = vcmp.gt.s32.totalorder %v1481_v58, 0  ;;  %v4294_v26 = vsel %vm687_vm1, %v690_v34, %v693_v32 }
 0x136   :  { %v1119_v51 = vor.u32 %v1118_v25, %v1117_v16  ;;  %v1123_v59 = vor.u32 4788187, %v1122_v29  ;;  %v1483_v1 = vsel %vm1482_vm8, %v1481_v58, 0  ;;  %v4299_v2 = vsel %vm4253_vm9, %v5886_v54, %v974_v7  ;;  %v5891_v29 = vld [vmem:[#allocation16_spill] sm:$0xff] }
 0x137   :  { %v4301_v4 = vshrl.u32 %v1260_v49, 30  ;;  %v5796_v28 = vand.u32 2147483647, %v5890_v33  ;;  %v1485_v50 = vand.u32 31, %v1483_v1  ;;  %v1374_v30 = vshrl.u32 %v4221_v3, 16 }
 0x138   :  { %v1384_v14 = vadd.s32 %v1382_v61, %v1380_v47  ;;  %v1396_v45 = vshrl.u32 %v4226_v63, 16  ;;  %v1406_v32 = vadd.s32 %v1404_v22, %v1402_v11  ;;  %v4306_v24 = vadd.f32 1.0, %v829_v48 }
 0x139   :  { %v4309_v17 = vmul.f32 %v837_v43, %v4078_v23  ;;  %v4314_v38 = vsel %vm853_vm14, %v975_v41, %v3873_v56  ;;  %v4316_v12 = vsub.s32 32, %v1485_v50  ;;  %v4320_v53 = vmul.f32 %v4299_v2, %v4299_v2 }
 0x13a   :  { %v1124_v3 = vand.u32 2147483647, %v1123_v59  ;;  %v1126_v36 = vcvt.s32.f32 %v1119_v51  ;;  %v1332_v63 = vshrl.u32 %v5838_v0, %v4107_v15  ;;  %v1262_v8 = vshll.u32 %v4301_v4, 30 }
 0x13b   :  { %v1353_v23 = vsel %vm1351_vm2, %v4144_v19, 2102212464  ;;  %v1376_v56 = vshrl.u32 %v4240_v37, 16  ;;  %v1398_v16 = vshrl.u32 %v4243_v20, 16  ;;  %v1385_v46 = vadd.s32 %v1384_v14, %v1374_v30 }
 0x13c   :  { %v1407_v40 = vadd.s32 %v1406_v32, %v1396_v45  ;;  %v1478_v35 = vand.u32 8388607, %v5796_v28  ;;  %v1491_v25 = vshll.u32 %v5868_v57, %v1485_v50  ;;  %vm1008_vm11 = vcmp.lt.s32.totalorder %v5891_v29, 0 }
 0x13d   :  { %v1492_v15 = vshrl.u32 %v5869_v13, %v4316_v12  ;;  %v1494_v34 = vshll.u32 %v5869_v13, %v1485_v50  ;;  %v1495_v19 = vshrl.u32 %v5866_v52, %v4316_v12  ;;  %v1497_v37 = vshll.u32 %v5866_v52, %v1485_v50 }
 0x13e   :  { %v4340_v48 = vshrl.u32 %v1483_v1, 5  ;;  %v1488_v49 = vshll.u32 %v5838_v0, %v1485_v50  ;;  %v1489_v58 = vshrl.u32 %v5868_v57, %v4316_v12  ;;  %v1498_v43 = vshrl.u32 %v5839_v5, %v4316_v12 }
 0x13f   :  { %v1127_v7 = vmul.f32 %v1126_v36, %v1124_v3  ;;  %v1352_v47 = vsel %vm1348_vm15, %v1332_v63, %v4140_v10  ;;  %v1500_v11 = vshll.u32 %v5839_v5, %v1485_v50  ;;  %v1501_v41 = vshrl.u32 %v5870_v39, %v4316_v12 }
 0x140   :  { %v5892_v61 = vand.u32 2147483647, %v5891_v29  ;;  %v4360_v51 = vsub.s32 %v4270_v27, %v1262_v8  ;;  %v1354_v59 = vsel %vm1350_vm10, %v4142_v44, %v1353_v23  ;;  %v4368_v10 = vadd.s32 %v4266_v31, %v1397_v6  ;;  %v5895_v44 = vld [vmem:[#allocation13_spill] sm:$0xff]  ;;  %v5896_v8 = vld [vmem:[#allocation20_spill] sm:$0xff] }
 0x141   :  { %v1408_v1 = vadd.s32 %v1407_v40, %v1398_v16  ;;  %v4370_v50 = vor.u32 %v1492_v15, %v1491_v25  ;;  %v4372_v30 = vor.u32 %v1495_v19, %v1494_v34  ;;  %v1499_v14 = vor.u32 %v1498_v43, %v1497_v37 }
 0x142   :  { %vm4355_vm2 = vcmp.le.f32.partialorder %v5892_v61, 0.7853982  ;;  %v1502_v45 = vor.u32 %v1501_v41, %v1500_v11  ;;  %v4374_v32 = vadd.s32 %v1385_v46, %v1376_v56  ;;  %v1479_v27 = vor.u32 8388608, %v1478_v35 }
 0x143   :  { %v4376_v3 = vor.u32 %v1489_v58, %v1488_v49  ;;  %vm1503_vm15 = vcmp.lt.s32.totalorder %v4340_v48, 1  ;;  %vm684_vm10 = vweird.f32 %v5895_v44  ;;  %vm846_vm3 = vcmp.eq.s32.totalorder %v4268_v42, 2 }
 0x144   :  { %v987_v20 = vmul.f32 -0.00019511016, %v4320_v53  ;;  %v1128_v6 = vxor.u32 2147483648, %v1127_v7  ;;  %v1355_v31 = vsel %vm1349_vm0, %v1352_v47, %v1354_v59  ;;  %vm1506_vm4 = vcmp.lt.s32.totalorder %v4340_v48, 4 }
 0x145   :  { %vm843_vm14 = vcmp.eq.s32.totalorder %v4268_v42, 0  ;;  %v1265_v36 = vsub.s32 0, %v4360_v51  ;;  %v1412_v63 = vadd.s32 1, %v1408_v1  ;;  %vm1505_vm7 = vcmp.lt.s32.totalorder %v4340_v48, 3 }
 0x146   :  { %v1629_v23 = vand.u32 2139095040, %v5896_v8  ;;  %vm1504_vm1 = vcmp.lt.s32.totalorder %v4340_v48, 2  ;;  %v1512_v56 = vsel %vm1506_vm4, %v1499_v14, 920167782  ;;  %v1515_v62 = vsel %vm1503_vm15, %v4370_v50, %v4372_v30 }
 0x147   :  { %v1516_v16 = vsel %vm1506_vm4, %v1502_v45, 1326507024  ;;  %vm1264_vm0 = vcmp.lt.s32.totalorder %v4360_v51, 0  ;;  %vm1411_vm5 = vc.u32 %v4374_v32, %v4368_v10  ;;  %v1511_v46 = vsel %vm1503_vm15, %v4376_v3, %v4370_v50 }
 0x148   :  { %v4405_v40 = vshll.u32 %v1479_v27, 8  ;;  %v980_v35 = vmul.f32 -0.001358992, %v4320_v53  ;;  %v988_v25 = vadd.f32 0.008332121, %v987_v20  ;;  %v1513_v15 = vsel %vm1505_vm7, %v4372_v30, %v1512_v56 }
 0x149   :  { %v1517_v34 = vsel %vm1505_vm7, %v1499_v14, %v1516_v16  ;;  %v978_v19 = vsel %vm4253_vm9, 0, %v4314_v38  ;;  %v1129_v37 = vsel %vm1008_vm11, %v1128_v6, %v1127_v7  ;;  %v1409_v49 = vmul.u32 %v4169_v9, %v1355_v31  ;;  %v5897_v14 = vld [vmem:[#allocation27_spill] sm:$0xff] }
 0x14a   :  { %v4421_v58 = vsel %vm1504_vm1, %v1515_v62, %v1517_v34  ;;  %v1266_v43 = vsel %vm1264_vm0, %v1265_v36, %v4360_v51  ;;  %v1413_v47 = vsel %vm1411_vm5, %v1412_v63, %v1408_v1  ;;  %v1514_v11 = vsel %vm1504_vm1, %v1511_v46, %v1513_v15 }
 0x14b   :  { %v1630_v41 = vshrl.u32 %v1629_v23, 23  ;;  %v844_v61 = vxor.u32 2147483648, %v4309_v17  ;;  %v847_v18 = vxor.u32 2147483648, %v4306_v24  ;;  %v1520_v38 = vand.u32 65535, %v4405_v40 }
 0x14c   :  { %v1523_v7 = vshrl.u32 %v4421_v58, 16  ;;  %v981_v9 = vadd.f32 0.041655596, %v980_v35  ;;  %v989_v59 = vmul.f32 %v988_v25, %v4320_v53  ;;  %v1130_v45 = vsub.s32 4, %v5897_v14 }
 0x14d   :  { %v4435_v1 = vsel %vm4355_vm2, %v5891_v29, %v1129_v37  ;;  %v995_v27 = vadd.s32 3, %v978_v19  ;;  %v1267_v20 = vclz %v1266_v43  ;;  %v1414_v6 = vadd.s32 %v1413_v47, %v1409_v49 }
 0x14e   :  { %v1545_v31 = vshrl.u32 %v1514_v11, 16  ;;  %v1521_v36 = vshrl.u32 %v4405_v40, 16  ;;  %v1522_v63 = vand.u32 65535, %v4421_v58  ;;  %v1544_v23 = vand.u32 65535, %v1514_v11 }
 0x14f   :  { %v2702_v56 = vadd.s32 4294967169, %v1630_v41  ;;  %v4442_v62 = vsel %vm684_vm10, nan, %v4294_v26  ;;  %v4447_v16 = vsel %vm846_vm3, %v847_v18, %v4309_v17  ;;  %v4451_v46 = vmul.f32 %v4435_v1, %v4435_v1 }
 0x150   :  { %5898 = vst [vmem:[#allocation26_spill] sm:$0xff] %v4442_v62  ;;  %v4453_v35 = vmul.u32 %v1523_v7, %v1520_v38  ;;  %v4458_v25 = vsel %vm843_vm14, %v4306_v24, %v844_v61  ;;  %v982_v44 = vmul.f32 %v981_v9, %v4320_v53  ;;  %v990_v26 = vadd.f32 -0.16666654, %v989_v59 }
 0x151   :  { %v4464_v15 = vsel %vm1008_vm11, %v1130_v45, %v5897_v14  ;;  %v1135_v17 = vmul.f32 -0.001358992, %v4451_v46  ;;  %v2694_v34 = vadd.s32 4294967294, %v1267_v20  ;;  %v1415_v19 = vadd.s32 536870912, %v1414_v6 }
 0x152   :  { %v4467_v37 = vmul.u32 %v1545_v31, %v1520_v38  ;;  %v4469_v49 = vand.u32 3, %v995_v27  ;;  %v4471_v58 = vmul.u32 %v1522_v63, %v1521_v36  ;;  %v1546_v24 = vmul.u32 %v1544_v23, %v1520_v38 }
 0x153   :  { %v1636_v43 = vadd.s32 1, %v2702_v56  ;;  %v1524_v47 = vmul.u32 %v1522_v63, %v1520_v38  ;;  %v1528_v11 = vshll.u32 %v4453_v35, 16  ;;  %v4474_v41 = vmul.u32 %v1544_v23, %v1521_v36 }
 0x154   :  { %v1550_v61 = vshll.u32 %v4467_v37, 16  ;;  %v983_v18 = vadd.f32 -0.4999988, %v982_v44  ;;  %v991_v9 = vmul.f32 %v990_v26, %v4320_v53  ;;  %v1142_v14 = vmul.f32 -0.00019511016, %v4451_v46 }
 0x155   :  { %v1136_v45 = vadd.f32 0.041655596, %v1135_v17  ;;  %vm2695_vm9 = vcmp.lt.s32.totalorder %v2694_v34, 0  ;;  %v4482_v27 = vshrl.u32 %v1415_v19, 30  ;;  %v5798_v38 = vshll.u32 %v4474_v41, 16 }
 0x156   :  { %v1530_v20 = vshll.u32 %v4471_v58, 16  ;;  %v1549_v63 = vmul.u32 %v1545_v31, %v1521_v36  ;;  %vm1554_vm6 = vc.u32 %v1546_v24, %v1550_v61  ;;  %v4486_v23 = vadd.s32 %v1550_v61, %v1546_v24 }
 0x157   :  { %5899 = vst [vmem:[#allocation12_spill] sm:$0xff] %v4482_v27  ;;  %vm1532_vm12 = vc.u32 %v1524_v47, %v1528_v11  ;;  %v1534_v56 = vadd.s32 %v1528_v11, %v1524_v47  ;;  %v1555_v44 = vsel %vm1554_vm6, 1, %v5833_v55  ;;  %vm1637_vm13 = vcmp.gt.s32.totalorder %v1636_v43, 0 }
 0x158   :  { %v4490_v26 = vmul.f32 %v983_v18, %v4320_v53  ;;  %v1143_v17 = vadd.f32 0.008332121, %v1142_v14  ;;  %v4492_v28 = vsel %vm2695_vm9, 0, %v2694_v34  ;;  %vm1558_vm8 = vc.u32 %v4486_v23, %v5798_v38 }
 0x159   :  { %v1417_v31 = vshll.u32 %v4482_v27, 30  ;;  %v1527_v19 = vmul.u32 %v1523_v7, %v1521_v36  ;;  %v5797_v24 = vand.u32 2147483647, %v5896_v8  ;;  %v1638_v61 = vsel %vm1637_vm13, %v1636_v43, 0 }
 0x15a   :  { %v4499_v47 = vadd.f32 1.0, %v991_v9  ;;  %v1255_v11 = vadd.s32 %v4213_v60, %v4215_v21  ;;  %v1533_v53 = vsel %vm1532_vm12, 1, %v5833_v55  ;;  %v1557_v18 = vadd.s32 %v1555_v44, %v1549_v63 }
 0x15b   :  { %v4505_v34 = vmul.f32 %v1136_v45, %v4451_v46  ;;  %vm1536_vm11 = vc.u32 %v1534_v56, %v1530_v20  ;;  %v1559_v14 = vsel %vm1558_vm8, 1, %v5833_v55  ;;  %v1640_v59 = vand.u32 31, %v1638_v61 }
 0x15c   :  { %v4509_v7 = vmul.f32 %v1143_v17, %v4451_v46  ;;  %v1271_v36 = vsub.s32 32, %v4492_v28  ;;  %v1272_v43 = vshll.u32 %v4360_v51, %v4492_v28  ;;  %v1275_v60 = vsub.s32 4294967266, %v4492_v28 }
 0x15d   :  { %v4515_v21 = vsub.s32 %v1414_v6, %v1417_v31  ;;  %v1535_v9 = vadd.s32 %v1533_v53, %v1527_v19  ;;  %v1633_v45 = vand.u32 8388607, %v5797_v24  ;;  %v4519_v20 = vsub.s32 32, %v1640_v59 }
 0x15e   :  { %v1537_v63 = vsel %vm1536_vm11, 1, %v5833_v55  ;;  %v1551_v56 = vshrl.u32 %v4467_v37, 16  ;;  %v1561_v44 = vadd.s32 %v1559_v14, %v1557_v18  ;;  %v1643_v17 = vshll.u32 %v5838_v0, %v1640_v59 }
 0x15f   :  { %v1644_v51 = vshrl.u32 %v5868_v57, %v4519_v20  ;;  %v1646_v28 = vshll.u32 %v5868_v57, %v1640_v59  ;;  %v1647_v6 = vshrl.u32 %v5869_v13, %v4519_v20  ;;  %v1652_v31 = vshll.u32 %v5866_v52, %v1640_v59 }
 0x160   :  { %v4530_v19 = vshrl.u32 %v1638_v61, 5  ;;  %v1649_v53 = vshll.u32 %v5869_v13, %v1640_v59  ;;  %v1650_v37 = vshrl.u32 %v5866_v52, %v4519_v20  ;;  %v1653_v18 = vshrl.u32 %v5839_v5, %v4519_v20 }
 0x161   :  { %v1276_v14 = vadd.s32 127, %v1275_v60  ;;  %v1529_v24 = vshrl.u32 %v4453_v35, 16  ;;  %v1539_v38 = vadd.s32 %v1537_v63, %v1535_v9  ;;  %v1634_v62 = vor.u32 8388608, %v1633_v45 }
 0x162   :  { %vm1419_vm10 = vcmp.lt.s32.totalorder %v4515_v21, 0  ;;  %v1420_v8 = vsub.s32 0, %v4515_v21  ;;  %v1487_v61 = vshrl.u32 %v5838_v0, %v4316_v12  ;;  %v1655_v33 = vshll.u32 %v5839_v5, %v1640_v59 }
 0x163   :  { %v4543_v27 = vor.u32 %v1644_v51, %v1643_v17  ;;  %v4545_v29 = vor.u32 %v1647_v6, %v1646_v28  ;;  %v1654_v54 = vor.u32 %v1653_v18, %v1652_v31  ;;  %v1656_v60 = vshrl.u32 %v5870_v39, %v4519_v20 }
 0x164   :  { %v1553_v35 = vshrl.u32 %v4474_v41, 16  ;;  %v1562_v9 = vadd.s32 %v1561_v44, %v1551_v56  ;;  %v4550_v45 = vor.u32 %v1650_v37, %v1649_v53  ;;  %vm1658_vm3 = vcmp.lt.s32.totalorder %v4530_v19, 1 }
 0x165   :  { %vm842_vm14 = vcmp.lt.s32.totalorder %v4268_v42, 2  ;;  %v1531_v12 = vshrl.u32 %v4471_v58, 16  ;;  %v1540_v59 = vadd.s32 %v1539_v38, %v1529_v24  ;;  %vm1660_vm0 = vcmp.lt.s32.totalorder %v4530_v19, 3 }
 0x166   :  { %vm1661_vm5 = vcmp.lt.s32.totalorder %v4530_v19, 4  ;;  %v1273_v63 = vshrl.u32 %v1255_v11, %v1271_v36  ;;  %v1277_v17 = vshll.u32 %v1276_v14, 23  ;;  %v1508_v51 = vsel %vm1506_vm4, %v4372_v30, 2102212464 }
 0x167   :  { %v1657_v56 = vor.u32 %v1656_v60, %v1655_v33  ;;  %v1507_v44 = vsel %vm1503_vm15, %v1487_v61, %v4376_v3  ;;  %vm1659_vm9 = vcmp.lt.s32.totalorder %v4530_v19, 2  ;;  %v1666_v58 = vsel %vm1658_vm3, %v4543_v27, %v4545_v29 }
 0x168   :  { %v1667_v38 = vsel %vm1661_vm5, %v1654_v54, 920167782  ;;  %v1421_v24 = vsel %vm1419_vm10, %v1420_v8, %v4515_v21  ;;  %v1563_v30 = vadd.s32 %v1562_v9, %v1553_v35  ;;  %v4576_v3 = vshll.u32 %v1634_v62, 8 }
 0x169   :  { %v1668_v33 = vsel %vm1660_vm0, %v4550_v45, %v1667_v38  ;;  %v1509_v11 = vsel %vm1505_vm7, %v4370_v50, %v1508_v51  ;;  %v4581_v36 = vadd.s32 %v1540_v59, %v1531_v12  ;;  %v5900_v28 = vshll.u32 %v4474_v41, 16 }
 0x16a   :  { %v1670_v8 = vsel %vm1658_vm3, %v4545_v29, %v4550_v45  ;;  %v1274_v31 = vor.u32 %v1273_v63, %v1272_v43  ;;  %v1278_v53 = vor.u32 4788187, %v1277_v17  ;;  %v1669_v62 = vsel %vm1659_vm9, %v1666_v58, %v1668_v33 }
 0x16b   :  { %v4586_v6 = vadd.s32 %v4486_v23, %v5900_v28  ;;  %v1671_v50 = vsel %vm1661_vm5, %v1657_v56, 1326507024  ;;  %v985_v37 = vadd.f32 1.0, %v4490_v26  ;;  %v5901_v41 = vsel %vm4355_vm2, 0, %v4464_v15 }
 0x16c   :  { %v1150_v23 = vadd.s32 3, %v5901_v41  ;;  %v1422_v18 = vclz %v1421_v24  ;;  %v1672_v14 = vsel %vm1660_vm0, %v1654_v54, %v1671_v50  ;;  %v1510_v43 = vsel %vm1504_vm1, %v1507_v44, %v1509_v11 }
 0x16d   :  { %v1567_v61 = vadd.s32 1, %v1563_v30  ;;  %v1673_v60 = vsel %vm1659_vm9, %v1670_v8, %v1672_v14  ;;  %v1675_v35 = vand.u32 65535, %v4576_v3  ;;  %v993_v26 = vmul.f32 %v4499_v47, %v4299_v2 }
 0x16e   :  { %vm1566_vm2 = vc.u32 %v4581_v36, %v4586_v6  ;;  %v1678_v22 = vshrl.u32 %v1673_v60, 16  ;;  %v1700_v15 = vshrl.u32 %v1669_v62, 16  ;;  %v1138_v9 = vadd.f32 -0.4999988, %v4505_v34 }
 0x16f   :  { %v1145_v54 = vadd.f32 -0.16666654, %v4509_v7  ;;  %v1279_v48 = vand.u32 2147483647, %v1278_v53  ;;  %v1281_v12 = vcvt.s32.f32 %v1274_v31  ;;  %v2697_v59 = vadd.s32 4294967294, %v1422_v18  ;;  %v5906_v18 = vld [vmem:[#allocation21_spill] sm:$0xff] }
 0x170   :  { %v1564_v63 = vmul.u32 %v4405_v40, %v1510_v43  ;;  %v1676_v17 = vshrl.u32 %v4576_v3, 16  ;;  %v1677_v51 = vand.u32 65535, %v1673_v60  ;;  %v4620_v2 = vsel %vm842_vm14, %v4458_v25, %v4447_v16 }
 0x171   :  { %v1568_v47 = vsel %vm1566_vm2, %v1567_v61, %v1563_v30  ;;  %v4622_v56 = vmul.u32 %v1678_v22, %v1675_v35  ;;  %v1699_v34 = vand.u32 65535, %v1669_v62  ;;  %vm998_vm15 = vcmp.eq.s32.totalorder %v4469_v49, 0  ;;  %v5902_v30 = vld [vmem:[#allocation17_spill] sm:$0xff] }
 0x172   :  { %vm1001_vm4 = vcmp.eq.s32.totalorder %v4469_v49, 2  ;;  %v1002_v7 = vxor.u32 2147483648, %v985_v37  ;;  %v4626_v44 = vmul.u32 %v1700_v15, %v1675_v35  ;;  %v999_v40 = vxor.u32 2147483648, %v993_v26 }
 0x173   :  { %v1139_v58 = vmul.f32 %v1138_v9, %v4451_v46  ;;  %v4629_v38 = vand.u32 3, %v1150_v23  ;;  %v1282_v24 = vmul.f32 %v1281_v12, %v1279_v48  ;;  %vm997_vm7 = vcmp.lt.s32.totalorder %v4469_v49, 2 }
 0x174   :  { %v1146_v42 = vmul.f32 %v1145_v54, %v4451_v46  ;;  %vm2698_vm1 = vcmp.lt.s32.totalorder %v2697_v59, 0  ;;  %v4633_v16 = vadd.s32 %v1568_v47, %v1564_v63  ;;  %v4635_v25 = vmul.u32 %v1677_v51, %v1676_v17 }
 0x175   :  { %v5903_v33 = vand.u32 2147483647, %v5902_v30  ;;  %v1679_v28 = vmul.u32 %v1677_v51, %v1675_v35  ;;  %v1683_v8 = vshll.u32 %v4622_v56, 16  ;;  %v4644_v31 = vmul.u32 %v1699_v34, %v1676_v17 }
 0x176   :  { %v1003_v53 = vsel %vm1001_vm4, %v1002_v7, %v993_v26  ;;  %vm1163_vm12 = vcmp.lt.s32.totalorder %v5902_v30, 0  ;;  %v1701_v46 = vmul.u32 %v1699_v34, %v1675_v35  ;;  %v1705_v62 = vshll.u32 %v4626_v44, 16 }
 0x177   :  { %vm4639_vm6 = vcmp.le.f32.partialorder %v5903_v33, 0.7853982  ;;  %v1000_v50 = vsel %vm998_vm15, %v985_v37, %v999_v40  ;;  %v1283_v41 = vxor.u32 2147483648, %v1282_v24  ;;  %v4652_v23 = vsel %vm2698_vm1, 0, %v2697_v59 }
 0x178   :  { %v1784_v14 = vand.u32 2139095040, %v5906_v18  ;;  %v1140_v43 = vadd.f32 1.0, %v1139_v58  ;;  %v1147_v61 = vadd.f32 1.0, %v1146_v42  ;;  %v1570_v60 = vadd.s32 536870912, %v4633_v16 }
 0x179   :  { %v1685_v9 = vshll.u32 %v4635_v25, 16  ;;  %vm1156_vm13 = vcmp.eq.s32.totalorder %v4629_v38, 2  ;;  %vm1687_vm8 = vc.u32 %v1679_v28, %v1683_v8  ;;  %v1689_v35 = vadd.s32 %v1683_v8, %v1679_v28 }
 0x17a   :  { %v1704_v26 = vmul.u32 %v1700_v15, %v1676_v17  ;;  %v1707_v54 = vshll.u32 %v4644_v31, 16  ;;  %vm1153_vm11 = vcmp.eq.s32.totalorder %v4629_v38, 0  ;;  %v1285_v37 = vsub.s32 4, %v4301_v4 }
 0x17b   :  { %v1430_v48 = vsub.s32 4294967266, %v4652_v23  ;;  %vm1709_vm10 = vc.u32 %v1701_v46, %v1705_v62  ;;  %v4662_v12 = vadd.s32 %v1705_v62, %v1701_v46  ;;  %v1284_v59 = vsel %vm1163_vm12, %v1283_v41, %v1282_v24 }
 0x17c   :  { %v1682_v63 = vmul.u32 %v1678_v22, %v1676_v17  ;;  %v1710_v51 = vsel %vm1709_vm10, 1, %v5833_v55  ;;  %v1785_v47 = vshrl.u32 %v1784_v14, 23  ;;  %v1148_v15 = vmul.f32 %v1147_v61, %v4435_v1 }
 0x17d   :  { %v4668_v34 = vshrl.u32 %v1570_v60, 30  ;;  %v1688_v7 = vsel %vm1687_vm8, 1, %v5833_v55  ;;  %vm1713_vm14 = vc.u32 %v4662_v12, %v1707_v54  ;;  %v1410_v40 = vadd.s32 %v4368_v10, %v4374_v32 }
 0x17e   :  { %vm1691_vm2 = vc.u32 %v1689_v35, %v1685_v9  ;;  %v1712_v58 = vadd.s32 %v1710_v51, %v1704_v26  ;;  %v2705_v24 = vadd.s32 4294967169, %v1785_v47  ;;  %v4679_v22 = vsel %vm4639_vm6, %v5902_v30, %v1284_v59 }
 0x17f   :  { %v1426_v1 = vsub.s32 32, %v4652_v23  ;;  %v1431_v17 = vadd.s32 127, %v1430_v48  ;;  %v1714_v42 = vsel %vm1713_vm14, 1, %v5833_v55  ;;  %v4685_v33 = vsel %vm997_vm7, %v1000_v50, %v1003_v53 }
 0x180   :  { %v1157_v28 = vxor.u32 2147483648, %v1140_v43  ;;  %v1690_v8 = vadd.s32 %v1688_v7, %v1682_v63  ;;  %v1791_v10 = vadd.s32 1, %v2705_v24  ;;  %v1154_v32 = vxor.u32 2147483648, %v1148_v15 }
 0x181   :  { %v4690_v46 = vsel %vm1163_vm12, %v1285_v37, %v4301_v4  ;;  %v1572_v62 = vshll.u32 %v4668_v34, 30  ;;  %v1692_v41 = vsel %vm1691_vm2, 1, %v5833_v55  ;;  %v4696_v14 = vmul.f32 %v4679_v22, %v4679_v22 }
 0x182   :  { %v1706_v49 = vshrl.u32 %v4626_v44, 16  ;;  %v1716_v53 = vadd.s32 %v1714_v42, %v1712_v58  ;;  %vm1792_vm15 = vcmp.gt.s32.totalorder %v1791_v10, 0  ;;  %v1427_v50 = vshll.u32 %v4515_v21, %v4652_v23 }
 0x183   :  { %v1428_v61 = vshrl.u32 %v1410_v40, %v1426_v1  ;;  %v1432_v60 = vshll.u32 %v1431_v17, 23  ;;  %v1793_v9 = vsel %vm1792_vm15, %v1791_v10, 0  ;;  %v1642_v4 = vshrl.u32 %v5838_v0, %v4519_v20 }
 0x184   :  { %v1684_v35 = vshrl.u32 %v4622_v56, 16  ;;  %v1694_v26 = vadd.s32 %v1692_v41, %v1690_v8  ;;  %v1795_v37 = vand.u32 31, %v1793_v9  ;;  %v4706_v48 = vsel %vm1156_vm13, %v1157_v28, %v1148_v15 }
 0x185   :  { %v4709_v44 = vsub.s32 %v4633_v16, %v1572_v62  ;;  %v1663_v21 = vsel %vm1661_vm5, %v4550_v45, 2102212464  ;;  %v5806_v23 = vand.u32 2147483647, %v5906_v18  ;;  %v1155_v20 = vsel %vm1153_vm11, %v1140_v43, %v1154_v32 }
 0x186   :  { %v1708_v56 = vshrl.u32 %v4644_v31, 16  ;;  %v1717_v59 = vadd.s32 %v1716_v53, %v1706_v49  ;;  %v4718_v63 = vsub.s32 32, %v1795_v37  ;;  %v1290_v51 = vmul.f32 -0.001358992, %v4696_v14  ;;  %v5907_v53 = vld [vmem:[#allocation14_spill] sm:$0xff] }
 0x187   :  { %v1297_v47 = vmul.f32 -0.00019511016, %v4696_v14  ;;  %v1429_v16 = vor.u32 %v1428_v61, %v1427_v50  ;;  %v1433_v15 = vor.u32 4788187, %v1432_v60  ;;  %v1662_v45 = vsel %vm1658_vm3, %v1642_v4, %v4543_v27  ;;  %v5908_v4 = vld [vmem:[#allocation15_spill] sm:$0xff] }
 0x188   :  { %v1664_v7 = vsel %vm1660_vm0, %v4545_v29, %v1663_v21  ;;  %v1686_v43 = vshrl.u32 %v4635_v25, 16  ;;  %v1695_v40 = vadd.s32 %v1694_v26, %v1684_v35  ;;  %vm1152_vm5 = vcmp.lt.s32.totalorder %v4629_v38, 2  ;;  %v5909_v26 = vld [vmem:[#allocation16_spill] sm:$0xff] }
 0x189   :  { %vm1574_vm4 = vcmp.lt.s32.totalorder %v4709_v44, 0  ;;  %v1575_v58 = vsub.s32 0, %v4709_v44  ;;  %v1788_v24 = vand.u32 8388607, %v5806_v23  ;;  %v1807_v1 = vshll.u32 %v5866_v52, %v1795_v37 }
 0x18a   :  { %v1718_v17 = vadd.s32 %v1717_v59, %v1708_v56  ;;  %v4735_v27 = vshrl.u32 %v1793_v9, 5  ;;  %v1801_v42 = vshll.u32 %v5868_v57, %v1795_v37  ;;  %v1808_v29 = vshrl.u32 %v5839_v5, %v4718_v63 }
 0x18b   :  { %v1802_v25 = vshrl.u32 %v5869_v13, %v4718_v63  ;;  %v1804_v28 = vshll.u32 %v5869_v13, %v1795_v37  ;;  %v1805_v8 = vshrl.u32 %v5866_v52, %v4718_v63  ;;  %v1810_v10 = vshll.u32 %v5839_v5, %v1795_v37 }
 0x18c   :  { %v4746_v32 = vadd.s32 %v1695_v40, %v1686_v43  ;;  %v4751_v62 = vadd.s32 %v4662_v12, %v1707_v54  ;;  %v1798_v41 = vshll.u32 %v5838_v0, %v1795_v37  ;;  %v1799_v49 = vshrl.u32 %v5868_v57, %v4718_v63  ;;  %v5910_v40 = vld [vmem:[#allocation22_spill] sm:$0xff] }
 0x18d   :  { %vm839_vm3 = vweird.f32 %v5907_v53  ;;  %v1436_v50 = vcvt.s32.f32 %v1429_v16  ;;  %v1789_v61 = vor.u32 8388608, %v1788_v24  ;;  %v1809_v60 = vor.u32 %v1808_v29, %v1807_v1 }
 0x18e   :  { %v1811_v9 = vshrl.u32 %v5870_v39, %v4718_v63  ;;  %vm994_vm0 = vweird.f32 %v5908_v4  ;;  %v1434_v35 = vand.u32 2147483647, %v1433_v15  ;;  %v1576_v31 = vsel %vm1574_vm4, %v1575_v58, %v4709_v44 }
 0x18f   :  { %v1665_v54 = vsel %vm1659_vm9, %v1662_v45, %v1664_v7  ;;  %v1722_v12 = vadd.s32 1, %v1718_v17  ;;  %vm1149_vm7 = vweird.f32 %v5909_v26  ;;  %v4766_v37 = vor.u32 %v1802_v25, %v1801_v42 }
 0x190   :  { %v4768_v21 = vor.u32 %v1805_v8, %v1804_v28  ;;  %v1812_v56 = vor.u32 %v1811_v9, %v1810_v10  ;;  %vm1816_vm1 = vcmp.lt.s32.totalorder %v4735_v27, 4  ;;  %v1291_v59 = vadd.f32 0.041655596, %v1290_v51 }
 0x191   :  { %vm1721_vm12 = vc.u32 %v4746_v32, %v4751_v62  ;;  %v4773_v16 = vor.u32 %v1799_v49, %v1798_v41  ;;  %vm1813_vm13 = vcmp.lt.s32.totalorder %v4735_v27, 1  ;;  %v1577_v19 = vclz %v1576_v31 }
 0x192   :  { %vm1815_vm9 = vcmp.lt.s32.totalorder %v4735_v27, 3  ;;  %v1822_v15 = vsel %vm1816_vm1, %v1809_v60, 920167782  ;;  %v4779_v45 = vshll.u32 %v1789_v61, 8  ;;  %v1288_v7 = vsel %vm4639_vm6, 0, %v4690_v46 }
 0x193   :  { %v1437_v51 = vmul.f32 %v1436_v50, %v1434_v35  ;;  %v1719_v43 = vmul.u32 %v4576_v3, %v1665_v54  ;;  %v1939_v58 = vand.u32 2139095040, %v5910_v40  ;;  %v1723_v24 = vsel %vm1721_vm12, %v1722_v12, %v1718_v17  ;;  %v5912_v35 = vld [vmem:[#allocation18_spill] sm:$0xff] }
 0x194   :  { %vm1814_vm8 = vcmp.lt.s32.totalorder %v4735_v27, 2  ;;  %v1825_v1 = vsel %vm1813_vm13, %v4766_v37, %v4768_v21  ;;  %v1826_v42 = vsel %vm1816_vm1, %v1812_v56, 1326507024  ;;  %v1159_v11 = vsel %vm1152_vm5, %v1155_v20, %v4706_v48 }
 0x195   :  { %v1298_v46 = vadd.f32 0.008332121, %v1297_v47  ;;  %v1821_v3 = vsel %vm1813_vm13, %v4773_v16, %v4766_v37  ;;  %v1823_v17 = vsel %vm1815_vm9, %v4768_v21, %v1822_v15  ;;  %v1292_v29 = vmul.f32 %v1291_v59, %v4696_v14 }
 0x196   :  { %v2700_v25 = vadd.s32 4294967294, %v1577_v19  ;;  %v1827_v28 = vsel %vm1815_vm9, %v1809_v60, %v1826_v42  ;;  %v1830_v8 = vand.u32 65535, %v4779_v45  ;;  %v1438_v38 = vxor.u32 2147483648, %v1437_v51  ;;  %v5918_v42 = vld [vmem:[#allocation12_spill] sm:$0xff] }
 0x197   :  { %v4807_v48 = vadd.s32 %v1723_v24, %v1719_v43  ;;  %v1828_v20 = vsel %vm1814_vm8, %v1825_v1, %v1827_v28  ;;  %v1940_v47 = vshrl.u32 %v1939_v58, 23  ;;  %v1824_v10 = vsel %vm1814_vm8, %v1821_v3, %v1823_v17 }
 0x198   :  { %v1831_v41 = vshrl.u32 %v4779_v45, 16  ;;  %v1832_v49 = vand.u32 65535, %v1828_v20  ;;  %v1833_v50 = vshrl.u32 %v1828_v20, 16  ;;  %v4817_v61 = vsel %vm839_vm3, nan, %v4620_v2 }
 0x199   :  { %5911 = vst [vmem:[#allocation29_spill] sm:$0xff] %v4817_v61  ;;  %v1299_v60 = vmul.f32 %v1298_v46, %v4696_v14  ;;  %v1305_v9 = vadd.s32 3, %v1288_v7  ;;  %vm1318_vm6 = vcmp.lt.s32.totalorder %v5912_v35, 0  ;;  %v4824_v31 = vsel %vm994_vm0, nan, %v4685_v33 }
 0x19a   :  { %5913 = vst [vmem:[#allocation13_spill] sm:$0xff] %v4824_v31  ;;  %v1293_v54 = vadd.f32 -0.4999988, %v1292_v29  ;;  %vm2701_vm11 = vcmp.lt.s32.totalorder %v2700_v25, 0  ;;  %v4826_v12 = vmul.u32 %v1833_v50, %v1830_v8  ;;  %v4830_v56 = vsel %vm1149_vm7, nan, %v1159_v11 }
 0x19b   :  { %5914 = vst [vmem:[#allocation27_spill] sm:$0xff] %v4830_v56  ;;  %v5915_v2 = vand.u32 2147483647, %v5912_v35  ;;  %v1725_v59 = vadd.s32 536870912, %v4807_v48  ;;  %v1855_v19 = vshrl.u32 %v1824_v10, 16  ;;  %v1439_v33 = vsel %vm1318_vm6, %v1438_v38, %v1437_v51 }
 0x19c   :  { %v4841_v4 = vmul.u32 %v1832_v49, %v1831_v41  ;;  %v1854_v15 = vand.u32 65535, %v1824_v10  ;;  %v2708_v7 = vadd.s32 4294967169, %v1940_v47  ;;  %v1300_v43 = vadd.f32 -0.16666654, %v1299_v60 }
 0x19d   :  { %vm4834_vm10 = vcmp.le.f32.partialorder %v5915_v2, 0.7853982  ;;  %v4843_v26 = vand.u32 3, %v1305_v9  ;;  %v1580_v58 = vsel %vm2701_vm11, 0, %v2700_v25  ;;  %v1834_v24 = vmul.u32 %v1832_v49, %v1830_v8 }
 0x19e   :  { %v1294_v1 = vmul.f32 %v1293_v54, %v4696_v14  ;;  %v1440_v11 = vsub.s32 4, %v5918_v42  ;;  %v1565_v46 = vadd.s32 %v4586_v6, %v4581_v36  ;;  %v1838_v3 = vshll.u32 %v4826_v12, 16 }
 0x19f   :  { %v4853_v51 = vsel %vm4834_vm10, %v5912_v35, %v1439_v33  ;;  %v1581_v17 = vsub.s32 32, %v1580_v58  ;;  %v4855_v29 = vshrl.u32 %v1725_v59, 30  ;;  %v1857_v28 = vmul.u32 %v1855_v19, %v1830_v8 }
 0x1a0   :  { %v1585_v25 = vsub.s32 4294967266, %v1580_v58  ;;  %v1840_v38 = vshll.u32 %v4841_v4, 16  ;;  %v1856_v20 = vmul.u32 %v1854_v15, %v1830_v8  ;;  %v1946_v47 = vadd.s32 1, %v2708_v7 }
 0x1a1   :  { %vm1842_vm14 = vc.u32 %v1834_v24, %v1838_v3  ;;  %v1844_v10 = vadd.s32 %v1838_v3, %v1834_v24  ;;  %v4858_v49 = vmul.u32 %v1854_v15, %v1831_v41  ;;  %v1860_v36 = vshll.u32 %v1857_v28, 16 }
 0x1a2   :  { %v1301_v6 = vmul.f32 %v1300_v43, %v4696_v14  ;;  %v4863_v60 = vmul.f32 %v4853_v51, %v4853_v51  ;;  %v1582_v9 = vshll.u32 %v4709_v44, %v1580_v58  ;;  %v1859_v54 = vmul.u32 %v1855_v19, %v1831_v41 }
 0x1a3   :  { %v1583_v2 = vshrl.u32 %v1565_v46, %v1581_v17  ;;  %v1727_v59 = vshll.u32 %v4855_v29, 30  ;;  %v1837_v33 = vmul.u32 %v1833_v50, %v1831_v41  ;;  %v5807_v8 = vshll.u32 %v4858_v49, 16 }
 0x1a4   :  { %v1586_v7 = vadd.s32 127, %v1585_v25  ;;  %v1843_v15 = vsel %vm1842_vm14, 1, %v5833_v55  ;;  %vm1864_vm2 = vc.u32 %v1856_v20, %v1860_v36  ;;  %v1866_v24 = vadd.s32 %v1860_v36, %v1856_v20 }
 0x1a5   :  { %vm1846_vm15 = vc.u32 %v1844_v10, %v1840_v38  ;;  %v1865_v14 = vsel %vm1864_vm2, 1, %v5833_v55  ;;  %v5805_v43 = vand.u32 2147483647, %v5910_v40  ;;  %vm1947_vm5 = vcmp.gt.s32.totalorder %v1946_v47, 0 }
 0x1a6   :  { %v4871_v3 = vadd.f32 1.0, %v1294_v1  ;;  %v4876_v44 = vsel %vm1318_vm6, %v1440_v11, %v5918_v42  ;;  %v1867_v41 = vadd.s32 %v1865_v14, %v1859_v54  ;;  %vm1868_vm4 = vc.u32 %v1866_v24, %v5807_v8 }
 0x1a7   :  { %v4881_v50 = vsub.s32 %v4807_v48, %v1727_v59  ;;  %v1845_v19 = vadd.s32 %v1843_v15, %v1837_v33  ;;  %v1869_v58 = vsel %vm1868_vm4, 1, %v5833_v55  ;;  %v1948_v46 = vsel %vm1947_vm5, %v1946_v47, 0 }
 0x1a8   :  { %v4884_v17 = vadd.f32 1.0, %v1301_v6  ;;  %v1445_v1 = vmul.f32 -0.001358992, %v4863_v60  ;;  %v1452_v25 = vmul.f32 -0.00019511016, %v4863_v60  ;;  %v1847_v42 = vsel %vm1846_vm15, 1, %v5833_v55 }
 0x1a9   :  { %v4889_v11 = vor.u32 %v1583_v2, %v1582_v9  ;;  %v1587_v38 = vshll.u32 %v1586_v7, 23  ;;  %v1943_v20 = vand.u32 8388607, %v5805_v43  ;;  %v1950_v48 = vand.u32 31, %v1948_v46 }
 0x1aa   :  { %v1797_v10 = vshrl.u32 %v5838_v0, %v4718_v63  ;;  %v1818_v47 = vsel %vm1816_vm1, %v4768_v21, 2102212464  ;;  %v1861_v36 = vshrl.u32 %v1857_v28, 16  ;;  %v1871_v6 = vadd.s32 %v1869_v58, %v1867_v41 }
 0x1ab   :  { %v1730_v54 = vsub.s32 0, %v4881_v50  ;;  %v1839_v59 = vshrl.u32 %v4826_v12, 16  ;;  %v1849_v9 = vadd.s32 %v1847_v42, %v1845_v19  ;;  %v4900_v2 = vsub.s32 32, %v1950_v48 }
 0x1ac   :  { %vm1729_vm3 = vcmp.lt.s32.totalorder %v4881_v50, 0  ;;  %v1863_v33 = vshrl.u32 %v4858_v49, 16  ;;  %v4904_v7 = vshrl.u32 %v1948_v46, 5  ;;  %v1953_v63 = vshll.u32 %v5838_v0, %v1950_v48 }
 0x1ad   :  { %v1954_v21 = vshrl.u32 %v5868_v57, %v4900_v2  ;;  %v1956_v28 = vshll.u32 %v5868_v57, %v1950_v48  ;;  %v1957_v15 = vshrl.u32 %v5869_v13, %v4900_v2  ;;  %v1962_v12 = vshll.u32 %v5866_v52, %v1950_v48 }
 0x1ae   :  { %v1872_v14 = vadd.s32 %v1871_v6, %v1861_v36  ;;  %v1959_v41 = vshll.u32 %v5869_v13, %v1950_v48  ;;  %v1960_v19 = vshrl.u32 %v5866_v52, %v4900_v2  ;;  %v1963_v58 = vshrl.u32 %v5839_v5, %v4900_v2 }
 0x1af   :  { %v1588_v46 = vor.u32 4788187, %v1587_v38  ;;  %v1731_v42 = vsel %vm1729_vm3, %v1730_v54, %v4881_v50  ;;  %v1841_v43 = vshrl.u32 %v4841_v4, 16  ;;  %v1850_v23 = vadd.s32 %v1849_v9, %v1839_v59 }
 0x1b0   :  { %v1817_v8 = vsel %vm1813_vm13, %v1797_v10, %v4773_v16  ;;  %v1819_v36 = vsel %vm1815_vm9, %v4766_v37, %v1818_v47  ;;  %v1944_v6 = vor.u32 8388608, %v1943_v20  ;;  %v1965_v56 = vshll.u32 %v5839_v5, %v1950_v48 }
 0x1b1   :  { %v4927_v31 = vor.u32 %v1954_v21, %v1953_v63  ;;  %v4929_v61 = vor.u32 %v1957_v15, %v1956_v28  ;;  %v1964_v38 = vor.u32 %v1963_v58, %v1962_v12  ;;  %v1966_v4 = vshrl.u32 %v5870_v39, %v4900_v2  ;;  %v5920_v63 = vld [vmem:[#allocation19_spill] sm:$0xff] }
 0x1b2   :  { %v1732_v54 = vclz %v1731_v42  ;;  %v1873_v59 = vadd.s32 %v1872_v14, %v1863_v33  ;;  %v4933_v9 = vor.u32 %v1960_v19, %v1959_v41  ;;  %vm1968_vm0 = vcmp.lt.s32.totalorder %v4904_v7, 1 }
 0x1b3   :  { %vm1311_vm7 = vcmp.eq.s32.totalorder %v4843_v26, 2  ;;  %v4937_v37 = vadd.s32 %v1850_v23, %v1841_v43  ;;  %v5919_v16 = vshll.u32 %v4858_v49, 16  ;;  %vm1970_vm1 = vcmp.lt.s32.totalorder %v4904_v7, 3 }
 0x1b4   :  { %vm1971_vm12 = vcmp.lt.s32.totalorder %v4904_v7, 4  ;;  %v1446_v48 = vadd.f32 0.041655596, %v1445_v1  ;;  %v1453_v10 = vadd.f32 0.008332121, %v1452_v25  ;;  %v1591_v47 = vcvt.s32.f32 %v4889_v11 }
 0x1b5   :  { %v4941_v20 = vadd.s32 %v1866_v24, %v5919_v16  ;;  %v1967_v33 = vor.u32 %v1966_v4, %v1965_v56  ;;  %vm1308_vm13 = vcmp.eq.s32.totalorder %v4843_v26, 0  ;;  %vm1969_vm9 = vcmp.lt.s32.totalorder %v4904_v7, 2 }
 0x1b6   :  { %v1976_v23 = vsel %vm1968_vm0, %v4927_v31, %v4929_v61  ;;  %v1977_v49 = vsel %vm1971_vm12, %v1964_v38, 920167782  ;;  %v4954_v24 = vshll.u32 %v1944_v6, 8  ;;  %v1589_v43 = vand.u32 2147483647, %v1588_v46 }
 0x1b7   :  { %v1820_v1 = vsel %vm1814_vm8, %v1817_v8, %v1819_v36  ;;  %v1877_v25 = vadd.s32 1, %v1873_v59  ;;  %v1978_v56 = vsel %vm1970_vm1, %v4933_v9, %v1977_v49  ;;  %v1303_v11 = vmul.f32 %v4884_v17, %v4679_v22 }
 0x1b8   :  { %vm1473_vm6 = vcmp.lt.s32.totalorder %v5920_v63, 0  ;;  %v2703_v21 = vadd.s32 4294967294, %v1732_v54  ;;  %vm1876_vm11 = vc.u32 %v4937_v37, %v4941_v20  ;;  %v1980_v27 = vsel %vm1968_vm0, %v4929_v61, %v4933_v9 }
 0x1b9   :  { %v1447_v8 = vmul.f32 %v1446_v48, %v4863_v60  ;;  %v1454_v28 = vmul.f32 %v1453_v10, %v4863_v60  ;;  %v1979_v15 = vsel %vm1969_vm9, %v1976_v23, %v1978_v56  ;;  %v1981_v22 = vsel %vm1971_vm12, %v1967_v33, 1326507024 }
 0x1ba   :  { %v1874_v17 = vmul.u32 %v4779_v45, %v1820_v1  ;;  %v1982_v12 = vsel %vm1970_vm1, %v1964_v38, %v1981_v22  ;;  %v1985_v14 = vand.u32 65535, %v4954_v24  ;;  %v1986_v41 = vshrl.u32 %v4954_v24, 16 }
 0x1bb   :  { %v1312_v19 = vxor.u32 2147483648, %v4871_v3  ;;  %v1592_v58 = vmul.f32 %v1591_v47, %v1589_v43  ;;  %v1878_v46 = vsel %vm1876_vm11, %v1877_v25, %v1873_v59  ;;  %v1983_v42 = vsel %vm1969_vm9, %v1980_v27, %v1982_v12 }
 0x1bc   :  { %v5921_v36 = vand.u32 2147483647, %v5920_v63  ;;  %vm2704_vm14 = vcmp.lt.s32.totalorder %v2703_v21, 0  ;;  %v1987_v45 = vand.u32 65535, %v1983_v42  ;;  %v1988_v38 = vshrl.u32 %v1983_v42, 16 }
 0x1bd   :  { %v2010_v4 = vshrl.u32 %v1979_v15, 16  ;;  %v1309_v54 = vxor.u32 2147483648, %v1303_v11  ;;  %v1443_v16 = vsel %vm4834_vm10, 0, %v4876_v44  ;;  %v1448_v48 = vadd.f32 -0.4999988, %v1447_v8 }
 0x1be   :  { %vm4986_vm8 = vcmp.le.f32.partialorder %v5921_v36, 0.7853982  ;;  %v1455_v59 = vadd.f32 -0.16666654, %v1454_v28  ;;  %v4993_v10 = vadd.s32 %v1878_v46, %v1874_v17  ;;  %v1989_v47 = vmul.u32 %v1987_v45, %v1985_v14 }
 0x1bf   :  { %v1990_v33 = vmul.u32 %v1988_v38, %v1985_v14  ;;  %v1991_v23 = vmul.u32 %v1987_v45, %v1986_v41  ;;  %v1313_v49 = vsel %vm1311_vm7, %v1312_v19, %v1303_v11  ;;  %v1593_v43 = vxor.u32 2147483648, %v1592_v58 }
 0x1c0   :  { %v4997_v1 = vsel %vm2704_vm14, 0, %v2703_v21  ;;  %v2009_v25 = vand.u32 65535, %v1979_v15  ;;  %v1992_v56 = vmul.u32 %v1988_v38, %v1986_v41  ;;  %v2012_v12 = vmul.u32 %v2010_v4, %v1985_v14 }
 0x1c1   :  { %v1993_v27 = vshll.u32 %v1990_v33, 16  ;;  %v1995_v22 = vshll.u32 %v1991_v23, 16  ;;  %v1310_v53 = vsel %vm1308_vm13, %v4871_v3, %v1309_v54  ;;  %v1449_v44 = vmul.f32 %v1448_v48, %v4863_v60 }
 0x1c2   :  { %v1456_v8 = vmul.f32 %v1455_v59, %v4863_v60  ;;  %v1460_v28 = vadd.s32 3, %v1443_v16  ;;  %v1595_v17 = vsub.s32 4, %v4668_v34  ;;  %v1880_v11 = vadd.s32 536870912, %v4993_v10  ;;  %v5924_v16 = vld [vmem:[#allocation23_spill] sm:$0xff] }
 0x1c3   :  { %vm1997_vm10 = vc.u32 %v1989_v47, %v1993_v27  ;;  %v1999_v21 = vadd.s32 %v1993_v27, %v1989_v47  ;;  %vm1307_vm2 = vcmp.lt.s32.totalorder %v4843_v26, 2  ;;  %v1594_v15 = vsel %vm1473_vm6, %v1593_v43, %v1592_v58 }
 0x1c4   :  { %v1740_v19 = vsub.s32 4294967266, %v4997_v1  ;;  %v1998_v3 = vsel %vm1997_vm10, 1, %v5833_v55  ;;  %v2013_v46 = vmul.u32 %v2009_v25, %v1986_v41  ;;  %v2011_v60 = vmul.u32 %v2009_v25, %v1985_v14 }
 0x1c5   :  { %v2000_v42 = vadd.s32 %v1998_v3, %v1992_v56  ;;  %vm2001_vm15 = vc.u32 %v1999_v21, %v1995_v22  ;;  %v2015_v36 = vshll.u32 %v2012_v12, 16  ;;  %v1457_v45 = vadd.f32 1.0, %v1456_v8 }
 0x1c6   :  { %v1994_v38 = vshrl.u32 %v1990_v33, 16  ;;  %v2002_v54 = vsel %vm2001_vm15, 1, %v5833_v55  ;;  %v2094_v48 = vand.u32 2139095040, %v5924_v16  ;;  %v1720_v59 = vadd.s32 %v4751_v62, %v4746_v32 }
 0x1c7   :  { %v5015_v47 = vshrl.u32 %v1880_v11, 30  ;;  %v2004_v58 = vadd.s32 %v2002_v54, %v2000_v42  ;;  %v2014_v43 = vmul.u32 %v2010_v4, %v1986_v41  ;;  %v5020_v56 = vsel %vm4986_vm8, %v5920_v63, %v1594_v15 }
 0x1c8   :  { %v1736_v14 = vsub.s32 32, %v4997_v1  ;;  %v1741_v25 = vadd.s32 127, %v1740_v19  ;;  %v2017_v33 = vshll.u32 %v2013_v46, 16  ;;  %v1952_v27 = vshrl.u32 %v5838_v0, %v4900_v2 }
 0x1c9   :  { %v1973_v32 = vsel %vm1971_vm12, %v4933_v9, 2102212464  ;;  %vm2019_vm5 = vc.u32 %v2011_v60, %v2015_v36  ;;  %v2021_v62 = vadd.s32 %v2015_v36, %v2011_v60  ;;  %v1996_v22 = vshrl.u32 %v1991_v23, 16 }
 0x1ca   :  { %v2005_v41 = vadd.s32 %v2004_v58, %v1994_v38  ;;  %v2020_v4 = vsel %vm2019_vm5, 1, %v5833_v55  ;;  %v2095_v8 = vshrl.u32 %v2094_v48, 23  ;;  %v1882_v11 = vshll.u32 %v5015_v47, 30 }
 0x1cb   :  { %v2016_v21 = vshrl.u32 %v2012_v12, 16  ;;  %v2022_v15 = vadd.s32 %v2020_v4, %v2014_v43  ;;  %vm2023_vm4 = vc.u32 %v2021_v62, %v2017_v33  ;;  %v5032_v19 = vmul.f32 %v5020_v56, %v5020_v56 }
 0x1cc   :  { %v1737_v2 = vshll.u32 %v4881_v50, %v4997_v1  ;;  %v2024_v9 = vsel %vm2023_vm4, 1, %v5833_v55  ;;  %v2711_v3 = vadd.s32 4294967169, %v2095_v8  ;;  %v1738_v23 = vshrl.u32 %v1720_v59, %v1736_v14 }
 0x1cd   :  { %v1972_v42 = vsel %vm1968_vm0, %v1952_v27, %v4927_v31  ;;  %v2018_v60 = vshrl.u32 %v2013_v46, 16  ;;  %v2026_v36 = vadd.s32 %v2024_v9, %v2022_v15  ;;  %v1974_v12 = vsel %vm1970_vm1, %v4929_v61, %v1973_v32  ;;  %v5925_v9 = vld [vmem:[#allocation20_spill] sm:$0xff] }
 0x1ce   :  { %v5043_v38 = vadd.s32 %v2005_v41, %v1996_v22  ;;  %v5045_v54 = vadd.s32 %v2021_v62, %v2017_v33  ;;  %v2101_v48 = vadd.s32 1, %v2711_v3  ;;  %v5049_v50 = vsel %vm1307_vm2, %v1310_v53, %v1313_v49 }
 0x1cf   :  { %v1742_v1 = vshll.u32 %v1741_v25, 23  ;;  %v5052_v59 = vsub.s32 %v4993_v10, %v1882_v11  ;;  %v2027_v31 = vadd.s32 %v2026_v36, %v2016_v21  ;;  %v1450_v46 = vadd.f32 1.0, %v1449_v44 }
 0x1d0   :  { %v5054_v58 = vand.u32 3, %v1460_v28  ;;  %v5059_v61 = vsel %vm1473_vm6, %v1595_v17, %v4668_v34  ;;  %vm2102_vm3 = vcmp.gt.s32.totalorder %v2101_v48, 0  ;;  %v1458_v43 = vmul.f32 %v1457_v45, %v4853_v51 }
 0x1d1   :  { %v1975_v26 = vsel %vm1969_vm9, %v1972_v42, %v1974_v12  ;;  %v2028_v49 = vadd.s32 %v2027_v31, %v2018_v60  ;;  %v2103_v53 = vsel %vm2102_vm3, %v2101_v48, 0  ;;  %v1607_v10 = vmul.f32 -0.00019511016, %v5032_v19 }
 0x1d2   :  { %v1739_v14 = vor.u32 %v1738_v23, %v1737_v2  ;;  %vm2031_vm0 = vc.u32 %v5043_v38, %v5045_v54  ;;  %v2105_v44 = vand.u32 31, %v2103_v53  ;;  %v1743_v28 = vor.u32 4788187, %v1742_v1 }
 0x1d3   :  { %v1885_v25 = vsub.s32 0, %v5052_v59  ;;  %v2032_v34 = vadd.s32 1, %v2028_v49  ;;  %v5808_v17 = vand.u32 2147483647, %v5924_v16  ;;  %vm1463_vm7 = vcmp.eq.s32.totalorder %v5054_v58, 0 }
 0x1d4   :  { %vm1884_vm1 = vcmp.lt.s32.totalorder %v5052_v59, 0  ;;  %v2029_v51 = vmul.u32 %v4954_v24, %v1975_v26  ;;  %v5072_v7 = vsub.s32 32, %v2105_v44  ;;  %vm1462_vm12 = vcmp.lt.s32.totalorder %v5054_v58, 2 }
 0x1d5   :  { %vm1466_vm13 = vcmp.eq.s32.totalorder %v5054_v58, 2  ;;  %v1467_v45 = vxor.u32 2147483648, %v1450_v46  ;;  %v1598_v33 = vsel %vm4986_vm8, 0, %v5059_v61  ;;  %v2033_v27 = vsel %vm2031_vm0, %v2032_v34, %v2028_v49 }
 0x1d6   :  { %v1464_v32 = vxor.u32 2147483648, %v1458_v43  ;;  %v1600_v62 = vmul.f32 -0.001358992, %v5032_v19  ;;  %v1608_v22 = vadd.f32 0.008332121, %v1607_v10  ;;  %v1746_v41 = vcvt.s32.f32 %v1739_v14 }
 0x1d7   :  { %v1744_v4 = vand.u32 2147483647, %v1743_v28  ;;  %v1886_v24 = vsel %vm1884_vm1, %v1885_v25, %v5052_v59  ;;  %v2098_v8 = vand.u32 8388607, %v5808_v17  ;;  %v2117_v11 = vshll.u32 %v5866_v52, %v2105_v44 }
 0x1d8   :  { %v5084_v21 = vadd.s32 %v2033_v27, %v2029_v51  ;;  %v5086_v15 = vshrl.u32 %v2103_v53, 5  ;;  %v2111_v6 = vshll.u32 %v5868_v57, %v2105_v44  ;;  %v2118_v2 = vshrl.u32 %v5839_v5, %v5072_v7 }
 0x1d9   :  { %vm1628_vm9 = vcmp.lt.s32.totalorder %v5925_v9, 0  ;;  %v2112_v3 = vshrl.u32 %v5869_v13, %v5072_v7  ;;  %v2114_v23 = vshll.u32 %v5869_v13, %v2105_v44  ;;  %v2115_v42 = vshrl.u32 %v5866_v52, %v5072_v7 }
 0x1da   :  { %v2120_v60 = vshll.u32 %v5839_v5, %v2105_v44  ;;  %v1468_v36 = vsel %vm1466_vm13, %v1467_v45, %v1458_v43  ;;  %v1601_v12 = vadd.f32 0.041655596, %v1600_v62  ;;  %v2108_v48 = vshll.u32 %v5838_v0, %v2105_v44 }
 0x1db   :  { %v2109_v1 = vshrl.u32 %v5868_v57, %v5072_v7  ;;  %vm1304_vm6 = vweird.f32 %v5902_v30  ;;  %vm1459_vm11 = vweird.f32 %v5912_v35  ;;  %v1609_v31 = vmul.f32 %v1608_v22, %v5032_v19 }
 0x1dc   :  { %v2099_v61 = vor.u32 8388608, %v2098_v8  ;;  %v2119_v26 = vor.u32 %v2118_v2, %v2117_v11  ;;  %v2121_v49 = vshrl.u32 %v5870_v39, %v5072_v7  ;;  %v1465_v43 = vsel %vm1463_vm7, %v1450_v46, %v1464_v32 }
 0x1dd   :  { %v5926_v53 = vand.u32 2147483647, %v5925_v9  ;;  %v1747_v14 = vmul.f32 %v1746_v41, %v1744_v4  ;;  %v1887_v44 = vclz %v1886_v24  ;;  %v2035_v28 = vadd.s32 536870912, %v5084_v21 }
 0x1de   :  { %v5117_v25 = vor.u32 %v2112_v3, %v2111_v6  ;;  %v2116_v34 = vor.u32 %v2115_v42, %v2114_v23  ;;  %v2122_v51 = vor.u32 %v2121_v49, %v2120_v60  ;;  %vm2126_vm14 = vcmp.lt.s32.totalorder %v5086_v15, 4  ;;  %v5929_v23 = vld [vmem:[#allocation24_spill] sm:$0xff] }
 0x1df   :  { %vm5112_vm8 = vcmp.le.f32.partialorder %v5926_v53, 0.7853982  ;;  %v1602_v45 = vmul.f32 %v1601_v12, %v5032_v19  ;;  %v1750_v46 = vsub.s32 4, %v4855_v29  ;;  %v2110_v27 = vor.u32 %v2109_v1, %v2108_v48 }
 0x1e0   :  { %vm2123_vm10 = vcmp.lt.s32.totalorder %v5086_v15, 1  ;;  %v1610_v32 = vadd.f32 -0.16666654, %v1609_v31  ;;  %vm2125_vm2 = vcmp.lt.s32.totalorder %v5086_v15, 3  ;;  %v2132_v62 = vsel %vm2126_vm14, %v2119_v26, 920167782 }
 0x1e1   :  { %v5126_v22 = vshll.u32 %v2099_v61, 8  ;;  %v1469_v41 = vsel %vm1462_vm12, %v1465_v43, %v1468_v36  ;;  %v1615_v4 = vadd.s32 3, %v1598_v33  ;;  %v1748_v24 = vxor.u32 2147483648, %v1747_v14 }
 0x1e2   :  { %v5130_v8 = vshrl.u32 %v2035_v28, 30  ;;  %v2706_v11 = vadd.s32 4294967294, %v1887_v44  ;;  %vm2124_vm15 = vcmp.lt.s32.totalorder %v5086_v15, 2  ;;  %v2135_v6 = vsel %vm2123_vm10, %v5117_v25, %v2116_v34 }
 0x1e3   :  { %v2136_v2 = vsel %vm2126_vm14, %v2122_v51, 1326507024  ;;  %v1603_v3 = vadd.f32 -0.4999988, %v1602_v45  ;;  %v2131_v58 = vsel %vm2123_vm10, %v2110_v27, %v5117_v25  ;;  %v2133_v33 = vsel %vm2125_vm2, %v2116_v34, %v2132_v62 }
 0x1e4   :  { %v2249_v42 = vand.u32 2139095040, %v5929_v23  ;;  %v1611_v60 = vmul.f32 %v1610_v32, %v5032_v19  ;;  %v5148_v36 = vsel %vm1628_vm9, %v1750_v46, %v4855_v29  ;;  %v2137_v12 = vsel %vm2125_vm2, %v2119_v26, %v2136_v2 }
 0x1e5   :  { %v2140_v48 = vand.u32 65535, %v5126_v22  ;;  %v1749_v1 = vsel %vm1628_vm9, %v1748_v24, %v1747_v14  ;;  %v2037_v31 = vshll.u32 %v5130_v8, 30  ;;  %v2138_v61 = vsel %vm2124_vm15, %v2135_v6, %v2137_v12 }
 0x1e6   :  { %v2141_v49 = vshrl.u32 %v5126_v22, 16  ;;  %vm2707_vm5 = vcmp.lt.s32.totalorder %v2706_v11, 0  ;;  %v2134_v29 = vsel %vm2124_vm15, %v2131_v58, %v2133_v33  ;;  %v2142_v43 = vand.u32 65535, %v2138_v61 }
 0x1e7   :  { %v2143_v53 = vshrl.u32 %v2138_v61, 16  ;;  %v5164_v26 = vsel %vm1304_vm6, nan, %v5049_v50  ;;  %v5168_v14 = vsel %vm1459_vm11, nan, %v1469_v41  ;;  %v5170_v44 = vand.u32 3, %v1615_v4 }
 0x1e8   :  { %5930 = vst [vmem:[#allocation17_spill] sm:$0xff] %v5164_v26  ;;  %v2250_v28 = vshrl.u32 %v2249_v42, 23  ;;  %v5175_v51 = vsel %vm5112_vm8, %v5925_v9, %v1749_v1  ;;  %v2107_v30 = vshrl.u32 %v5838_v0, %v5072_v7  ;;  %v5182_v46 = vsel %vm2707_vm5, 0, %v2706_v11 }
 0x1e9   :  { %5931 = vst [vmem:[#allocation21_spill] sm:$0xff] %v5168_v14  ;;  %v2145_v50 = vmul.u32 %v2143_v53, %v2140_v48  ;;  %v5185_v35 = vsub.s32 %v5084_v21, %v2037_v31  ;;  %v2146_v32 = vmul.u32 %v2142_v43, %v2141_v49  ;;  %v2165_v62 = vshrl.u32 %v2134_v29, 16 }
 0x1ea   :  { %v1604_v41 = vmul.f32 %v1603_v3, %v5032_v19  ;;  %v1612_v4 = vadd.f32 1.0, %v1611_v60  ;;  %v2144_v24 = vmul.u32 %v2142_v43, %v2140_v48  ;;  %v2164_v6 = vand.u32 65535, %v2134_v29 }
 0x1eb   :  { %v5190_v2 = vmul.f32 %v5175_v51, %v5175_v51  ;;  %v1875_v7 = vadd.s32 %v4941_v20, %v4937_v37  ;;  %v1891_v11 = vsub.s32 32, %v5182_v46  ;;  %v2714_v58 = vadd.s32 4294967169, %v2250_v28 }
 0x1ec   :  { %v1895_v21 = vsub.s32 4294967266, %v5182_v46  ;;  %v2127_v33 = vsel %vm2123_vm10, %v2107_v30, %v2110_v27  ;;  %v2147_v42 = vmul.u32 %v2143_v53, %v2141_v49  ;;  %v2148_v19 = vshll.u32 %v2145_v50, 16 }
 0x1ed   :  { %v2040_v3 = vsub.s32 0, %v5185_v35  ;;  %v2128_v60 = vsel %vm2126_vm14, %v2116_v34, 2102212464  ;;  %v2150_v12 = vshll.u32 %v2146_v32, 16  ;;  %v2167_v1 = vmul.u32 %v2165_v62, %v2140_v48 }
 0x1ee   :  { %vm2039_vm4 = vcmp.lt.s32.totalorder %v5185_v35, 0  ;;  %vm2152_vm3 = vc.u32 %v2144_v24, %v2148_v19  ;;  %v2154_v37 = vadd.s32 %v2148_v19, %v2144_v24  ;;  %v2166_v20 = vmul.u32 %v2164_v6, %v2140_v48 }
 0x1ef   :  { %v2153_v31 = vsel %vm2152_vm3, 1, %v5833_v55  ;;  %v2168_v61 = vmul.u32 %v2164_v6, %v2141_v49  ;;  %v2170_v29 = vshll.u32 %v2167_v1, 16  ;;  %v2256_v43 = vadd.s32 1, %v2714_v58 }
 0x1f0   :  { %v2149_v27 = vshrl.u32 %v2145_v50, 16  ;;  %v2155_v53 = vadd.s32 %v2153_v31, %v2147_v42  ;;  %vm2156_vm0 = vc.u32 %v2154_v37, %v2150_v12  ;;  %v2169_v28 = vmul.u32 %v2165_v62, %v2141_v49 }
 0x1f1   :  { %v2041_v30 = vsel %vm2039_vm4, %v2040_v3, %v5185_v35  ;;  %v2129_v34 = vsel %vm2125_vm2, %v5117_v25, %v2128_v60  ;;  %v2157_v17 = vsel %vm2156_vm0, 1, %v5833_v55  ;;  %v2172_v45 = vshll.u32 %v2168_v61, 16 }
 0x1f2   :  { %v2151_v24 = vshrl.u32 %v2146_v32, 16  ;;  %v2159_v48 = vadd.s32 %v2157_v17, %v2155_v53  ;;  %vm2174_vm7 = vc.u32 %v2166_v20, %v2170_v29  ;;  %v2176_v19 = vadd.s32 %v2170_v29, %v2166_v20 }
 0x1f3   :  { %v1896_v6 = vadd.s32 127, %v1895_v21  ;;  %v2175_v58 = vsel %vm2174_vm7, 1, %v5833_v55  ;;  %v5809_v50 = vand.u32 2147483647, %v5929_v23  ;;  %vm2257_vm1 = vcmp.gt.s32.totalorder %v2256_v43, 0 }
 0x1f4   :  { %v2160_v49 = vadd.s32 %v2159_v48, %v2149_v27  ;;  %v2171_v62 = vshrl.u32 %v2167_v1, 16  ;;  %v2177_v42 = vadd.s32 %v2175_v58, %v2169_v28  ;;  %vm2178_vm12 = vc.u32 %v2176_v19, %v2172_v45 }
 0x1f5   :  { %v2042_v3 = vclz %v2041_v30  ;;  %v2130_v25 = vsel %vm2124_vm15, %v2127_v33, %v2129_v34  ;;  %v2179_v60 = vsel %vm2178_vm12, 1, %v5833_v55  ;;  %v2258_v32 = vsel %vm2257_vm1, %v2256_v43, 0 }
 0x1f6   :  { %v5213_v17 = vadd.s32 %v2160_v49, %v2151_v24  ;;  %v2173_v12 = vshrl.u32 %v2168_v61, 16  ;;  %v5215_v21 = vadd.s32 %v2176_v19, %v2172_v45  ;;  %v2181_v37 = vadd.s32 %v2179_v60, %v2177_v42 }
 0x1f7   :  { %v5217_v20 = vadd.f32 1.0, %v1604_v41  ;;  %v5220_v31 = vmul.f32 %v1612_v4, %v5020_v56  ;;  %v1755_v1 = vmul.f32 -0.001358992, %v5190_v2  ;;  %v2260_v29 = vand.u32 31, %v2258_v32 }
 0x1f8   :  { %v1892_v15 = vshll.u32 %v5052_v59, %v5182_v46  ;;  %v1893_v33 = vshrl.u32 %v1875_v7, %v1891_v11  ;;  %v1897_v27 = vshll.u32 %v1896_v6, 23  ;;  %v2182_v43 = vadd.s32 %v2181_v37, %v2171_v62 }
 0x1f9   :  { %v2709_v53 = vadd.s32 4294967294, %v2042_v3  ;;  %v2184_v61 = vmul.u32 %v5126_v22, %v2130_v25  ;;  %v2253_v45 = vand.u32 8388607, %v5809_v50  ;;  %v5228_v41 = vsub.s32 32, %v2260_v29 }
 0x1fa   :  { %vm1621_vm13 = vcmp.eq.s32.totalorder %v5170_v44, 2  ;;  %v2183_v56 = vadd.s32 %v2182_v43, %v2173_v12  ;;  %vm2186_vm9 = vc.u32 %v5213_v17, %v5215_v21  ;;  %v5233_v4 = vshrl.u32 %v2258_v32, 5 }
 0x1fb   :  { %v2263_v59 = vshll.u32 %v5838_v0, %v2260_v29  ;;  %v2264_v46 = vshrl.u32 %v5868_v57, %v5228_v41  ;;  %v2266_v22 = vshll.u32 %v5868_v57, %v2260_v29  ;;  %v2267_v7 = vshrl.u32 %v5869_v13, %v5228_v41 }
 0x1fc   :  { %v2272_v11 = vshll.u32 %v5866_v52, %v2260_v29  ;;  %v2187_v28 = vadd.s32 1, %v2183_v56  ;;  %v2269_v30 = vshll.u32 %v5869_v13, %v2260_v29  ;;  %v2270_v34 = vshrl.u32 %v5866_v52, %v5228_v41 }
 0x1fd   :  { %v2273_v24 = vshrl.u32 %v5839_v5, %v5228_v41  ;;  %v1622_v48 = vxor.u32 2147483648, %v5217_v20  ;;  %v1894_v19 = vor.u32 %v1893_v33, %v1892_v15  ;;  %v1898_v6 = vor.u32 4788187, %v1897_v27 }
 0x1fe   :  { %v2254_v58 = vor.u32 8388608, %v2253_v45  ;;  %vm2710_vm6 = vcmp.lt.s32.totalorder %v2709_v53, 0  ;;  %v2188_v49 = vsel %vm2186_vm9, %v2187_v28, %v2183_v56  ;;  %v5251_v62 = vor.u32 %v2264_v46, %v2263_v59 }
 0x1ff   :  { %v2275_v42 = vshll.u32 %v5839_v5, %v2260_v29  ;;  %v2189_v3 = vadd.s32 %v2188_v49, %v2184_v61  ;;  %v5254_v25 = vor.u32 %v2267_v7, %v2266_v22  ;;  %v2274_v60 = vor.u32 %v2273_v24, %v2272_v11 }
 0x200   :  { %v2276_v32 = vshrl.u32 %v5870_v39, %v5228_v41  ;;  %v1756_v12 = vadd.f32 0.041655596, %v1755_v1  ;;  %v1762_v37 = vmul.f32 -0.00019511016, %v5190_v2  ;;  %v5259_v15 = vor.u32 %v2270_v34, %v2269_v30 }
 0x201   :  { %vm2278_vm11 = vcmp.lt.s32.totalorder %v5233_v4, 1  ;;  %v1901_v33 = vcvt.s32.f32 %v1894_v19  ;;  %v2190_v27 = vadd.s32 536870912, %v2189_v3  ;;  %vm2280_vm14 = vcmp.lt.s32.totalorder %v5233_v4, 3 }
 0x202   :  { %vm2281_vm10 = vcmp.lt.s32.totalorder %v5233_v4, 4  ;;  %v1899_v29 = vand.u32 2147483647, %v1898_v6  ;;  %v5265_v43 = vsel %vm2710_vm6, 0, %v2709_v53  ;;  %v2277_v61 = vor.u32 %v2276_v32, %v2275_v42 }
 0x203   :  { %vm2279_vm2 = vcmp.lt.s32.totalorder %v5233_v4, 2  ;;  %vm1783_vm15 = vcmp.lt.s32.totalorder %v5906_v18, 0  ;;  %v5269_v1 = vshrl.u32 %v2190_v27, 30  ;;  %v2286_v45 = vsel %vm2278_vm11, %v5251_v62, %v5254_v25 }
 0x204   :  { %v2287_v56 = vsel %vm2281_vm10, %v2274_v60, 920167782  ;;  %v5277_v59 = vshll.u32 %v2254_v58, 8  ;;  %v1757_v46 = vmul.f32 %v1756_v12, %v5190_v2  ;;  %v1763_v22 = vadd.f32 0.008332121, %v1762_v37 }
 0x205   :  { %v2288_v7 = vsel %vm2280_vm14, %v5259_v15, %v2287_v56  ;;  %v5287_v11 = vsel %vm1621_vm13, %v1622_v48, %v5220_v31  ;;  %v2192_v28 = vshll.u32 %v5269_v1, 30  ;;  %v2290_v34 = vsel %vm2278_vm11, %v5254_v25, %v5259_v15 }
 0x206   :  { %v2289_v30 = vsel %vm2279_vm2, %v2286_v45, %v2288_v7  ;;  %v5932_v24 = vsel %vm5112_vm8, 0, %v5148_v36  ;;  %v1902_v6 = vmul.f32 %v1901_v33, %v1899_v29  ;;  %v2050_v48 = vsub.s32 4294967266, %v5265_v43 }
 0x207   :  { %v5300_v19 = vadd.s32 3, %v5932_v24  ;;  %v2291_v58 = vsel %vm2281_vm10, %v2277_v61, 1326507024  ;;  %v5305_v49 = vsub.s32 %v2189_v3, %v2192_v28  ;;  %v2295_v32 = vand.u32 65535, %v5277_v59 }
 0x208   :  { %v2292_v42 = vsel %vm2280_vm14, %v2274_v60, %v2291_v58  ;;  %v2296_v12 = vshrl.u32 %v5277_v59, 16  ;;  %v5311_v10 = vadd.f32 -0.4999988, %v1757_v46  ;;  %v1764_v36 = vmul.f32 %v1763_v22, %v5190_v2 }
 0x209   :  { %v2293_v37 = vsel %vm2279_vm2, %v2290_v34, %v2292_v42  ;;  %v2320_v33 = vshrl.u32 %v2289_v30, 16  ;;  %vm2194_vm8 = vcmp.lt.s32.totalorder %v5305_v49, 0  ;;  %v2195_v3 = vsub.s32 0, %v5305_v49 }
 0x20a   :  { %v2297_v27 = vand.u32 65535, %v2293_v37  ;;  %v2298_v29 = vshrl.u32 %v2293_v37, 16  ;;  %v1903_v61 = vxor.u32 2147483648, %v1902_v6  ;;  %v2030_v60 = vadd.s32 %v5045_v54, %v5043_v38 }
 0x20b   :  { %v2046_v45 = vsub.s32 32, %v5265_v43  ;;  %v2051_v56 = vadd.s32 127, %v2050_v48  ;;  %v2196_v46 = vsel %vm2194_vm8, %v2195_v3, %v5305_v49  ;;  %v5322_v34 = vadd.f32 -0.16666654, %v1764_v36 }
 0x20c   :  { %v2299_v22 = vmul.u32 %v2297_v27, %v2295_v32  ;;  %v2300_v7 = vmul.u32 %v2298_v29, %v2295_v32  ;;  %v2301_v28 = vmul.u32 %v2297_v27, %v2296_v12  ;;  %v1905_v24 = vsub.s32 4, %v5015_v47 }
 0x20d   :  { %v2197_v58 = vclz %v2196_v46  ;;  %v2319_v42 = vand.u32 65535, %v2289_v30  ;;  %v5933_v37 = vand.u32 2147483647, %v5906_v18  ;;  %v2302_v38 = vmul.u32 %v2298_v29, %v2296_v12 }
 0x20e   :  { %v2303_v54 = vshll.u32 %v2300_v7, 16  ;;  %v2305_v48 = vshll.u32 %v2301_v28, 16  ;;  %v2322_v53 = vmul.u32 %v2320_v33, %v2295_v32  ;;  %v1904_v3 = vsel %vm1783_vm15, %v1903_v61, %v1902_v6 }
 0x20f   :  { %vm5327_vm5 = vcmp.le.f32.partialorder %v5933_v37, 0.7853982  ;;  %v2047_v36 = vshll.u32 %v5185_v35, %v5265_v43  ;;  %v2048_v27 = vshrl.u32 %v2030_v60, %v2046_v45  ;;  %v2712_v14 = vadd.s32 4294967294, %v2197_v58  ;;  %v5936_v60 = vld [vmem:[#allocation25_spill] sm:$0xff] }
 0x210   :  { %v2052_v46 = vshll.u32 %v2051_v56, 23  ;;  %v2262_v30 = vshrl.u32 %v5838_v0, %v5228_v41  ;;  %vm2307_vm4 = vc.u32 %v2299_v22, %v2303_v54  ;;  %v2309_v37 = vadd.s32 %v2303_v54, %v2299_v22 }
 0x211   :  { %vm2713_vm3 = vcmp.lt.s32.totalorder %v2712_v14, 0  ;;  %v2308_v29 = vsel %vm2307_vm4, 1, %v5833_v55  ;;  %v2321_v26 = vmul.u32 %v2319_v42, %v2295_v32  ;;  %v2323_v9 = vmul.u32 %v2319_v42, %v2296_v12 }
 0x212   :  { %vm1618_vm0 = vcmp.eq.s32.totalorder %v5170_v44, 0  ;;  %v2200_v63 = vsel %vm2713_vm3, 0, %v2712_v14  ;;  %v2310_v6 = vadd.s32 %v2308_v29, %v2302_v38  ;;  %vm2311_vm7 = vc.u32 %v2309_v37, %v2305_v48 }
 0x213   :  { %v2325_v61 = vshll.u32 %v2322_v53, 16  ;;  %v2283_v35 = vsel %vm2281_vm10, %v5259_v15, 2102212464  ;;  %v2304_v43 = vshrl.u32 %v2300_v7, 16  ;;  %v2312_v41 = vsel %vm2311_vm7, 1, %v5833_v55 }
 0x214   :  { %v2404_v45 = vand.u32 2139095040, %v5936_v60  ;;  %v2049_v56 = vor.u32 %v2048_v27, %v2047_v36  ;;  %v2205_v22 = vsub.s32 4294967266, %v2200_v63  ;;  %v2314_v58 = vadd.s32 %v2312_v41, %v2310_v6 }
 0x215   :  { %v2324_v32 = vmul.u32 %v2320_v33, %v2296_v12  ;;  %v2053_v42 = vor.u32 4788187, %v2052_v46  ;;  %v2185_v14 = vadd.s32 %v5215_v21, %v5213_v17  ;;  %v2282_v38 = vsel %vm2278_vm11, %v2262_v30, %v5251_v62 }
 0x216   :  { %v2327_v54 = vshll.u32 %v2323_v9, 16  ;;  %v2284_v15 = vsel %vm2280_vm14, %v5254_v25, %v2283_v35  ;;  %v2306_v7 = vshrl.u32 %v2301_v28, 16  ;;  %vm2329_vm1 = vc.u32 %v2321_v26, %v2325_v61 }
 0x217   :  { %v2331_v48 = vadd.s32 %v2325_v61, %v2321_v26  ;;  %v2315_v36 = vadd.s32 %v2314_v58, %v2304_v43  ;;  %v2326_v27 = vshrl.u32 %v2322_v53, 16  ;;  %v2330_v12 = vsel %vm2329_vm1, 1, %v5833_v55 }
 0x218   :  { %v2405_v33 = vshrl.u32 %v2404_v45, 23  ;;  %v2201_v46 = vsub.s32 32, %v2200_v63  ;;  %v2206_v37 = vadd.s32 127, %v2205_v22  ;;  %v2332_v17 = vadd.s32 %v2330_v12, %v2324_v32 }
 0x219   :  { %vm2333_vm12 = vc.u32 %v2331_v48, %v2327_v54  ;;  %v1906_v21 = vsel %vm1783_vm15, %v1905_v24, %v5015_v47  ;;  %v5359_v62 = vsel %vm5327_vm5, %v5906_v18, %v1904_v3  ;;  %v2054_v53 = vand.u32 2147483647, %v2053_v42 }
 0x21a   :  { %v2334_v26 = vsel %vm2333_vm12, 1, %v5833_v55  ;;  %v2717_v25 = vadd.s32 4294967169, %v2405_v33  ;;  %v2056_v28 = vcvt.s32.f32 %v2049_v56  ;;  %v2328_v30 = vshrl.u32 %v2323_v9, 16 }
 0x21b   :  { %v2336_v29 = vadd.s32 %v2334_v26, %v2332_v17  ;;  %v2285_v6 = vsel %vm2279_vm2, %v2282_v38, %v2284_v15  ;;  %v5364_v61 = vadd.s32 %v2315_v36, %v2306_v7  ;;  %v5366_v35 = vadd.s32 %v2331_v48, %v2327_v54  ;;  %v5949_v38 = vld [vmem:[#allocation20_spill] sm:$0xff] }
 0x21c   :  { %v2411_v47 = vadd.s32 1, %v2717_v25  ;;  %v2202_v24 = vshll.u32 %v5305_v49, %v2200_v63  ;;  %v2203_v43 = vshrl.u32 %v2185_v14, %v2201_v46  ;;  %v2207_v3 = vshll.u32 %v2206_v37, 23 }
 0x21d   :  { %v2337_v41 = vadd.s32 %v2336_v29, %v2326_v27  ;;  %v5937_v45 = vxor.u32 2147483648, %v5220_v31  ;;  %v1759_v4 = vmul.f32 %v5311_v10, %v5190_v2  ;;  %v1766_v56 = vmul.f32 %v5322_v34, %v5190_v2 }
 0x21e   :  { %vm2412_vm13 = vcmp.gt.s32.totalorder %v2411_v47, 0  ;;  %v1908_v63 = vsel %vm5327_vm5, 0, %v1906_v21  ;;  %v5384_v49 = vmul.f32 %v5359_v62, %v5359_v62  ;;  %v2057_v58 = vmul.f32 %v2056_v28, %v2054_v53 }
 0x21f   :  { %v5374_v9 = vsel %vm1618_vm0, %v5217_v20, %v5937_v45  ;;  %v2338_v31 = vadd.s32 %v2337_v41, %v2328_v30  ;;  %v2413_v22 = vsel %vm2412_vm13, %v2411_v47, 0  ;;  %v2339_v20 = vmul.u32 %v5277_v59, %v2285_v6 }
 0x220   :  { %vm2341_vm9 = vc.u32 %v5364_v61, %v5366_v35  ;;  %v2415_v10 = vand.u32 31, %v2413_v22  ;;  %v2204_v32 = vor.u32 %v2203_v43, %v2202_v24  ;;  %v2208_v42 = vor.u32 4788187, %v2207_v3 }
 0x221   :  { %v2342_v2 = vadd.s32 1, %v2338_v31  ;;  %v5812_v34 = vand.u32 2147483647, %v5936_v60  ;;  %v5391_v50 = vand.u32 3, %v5300_v19  ;;  %v5938_v14 = vand.u32 2147483647, %v5910_v40 }
 0x222   :  { %vm1938_vm11 = vcmp.lt.s32.totalorder %v5910_v40, 0  ;;  %v5400_v59 = vsub.s32 32, %v2415_v10  ;;  %v5402_v54 = vadd.f32 1.0, %v1759_v4  ;;  %v5404_v15 = vadd.f32 1.0, %v1766_v56 }
 0x223   :  { %vm5395_vm6 = vcmp.le.f32.partialorder %v5938_v14, 0.7853982  ;;  %v5406_v7 = vadd.s32 3, %v1908_v63  ;;  %v2343_v48 = vsel %vm2341_vm9, %v2342_v2, %v2338_v31  ;;  %v1910_v19 = vmul.f32 -0.001358992, %v5384_v49 }
 0x224   :  { %v1917_v36 = vmul.f32 -0.00019511016, %v5384_v49  ;;  %v2058_v27 = vxor.u32 2147483648, %v2057_v58  ;;  %v2344_v12 = vadd.s32 %v2343_v48, %v2339_v20  ;;  %v2209_v33 = vand.u32 2147483647, %v2208_v42 }
 0x225   :  { %v2211_v46 = vcvt.s32.f32 %v2204_v32  ;;  %v2408_v37 = vand.u32 8388607, %v5812_v34  ;;  %v2427_v17 = vshll.u32 %v5866_v52, %v2415_v10  ;;  %v5413_v26 = vshrl.u32 %v2413_v22, 5 }
 0x226   :  { %v2345_v21 = vadd.s32 536870912, %v2344_v12  ;;  %v2421_v25 = vshll.u32 %v5868_v57, %v2415_v10  ;;  %v2428_v53 = vshrl.u32 %v5839_v5, %v5400_v59  ;;  %v2422_v28 = vshrl.u32 %v5869_v13, %v5400_v59 }
 0x227   :  { %v2424_v30 = vshll.u32 %v5869_v13, %v2415_v10  ;;  %v2425_v29 = vshrl.u32 %v5866_v52, %v5400_v59  ;;  %v2430_v6 = vshll.u32 %v5839_v5, %v2415_v10  ;;  %vm2093_vm14 = vcmp.lt.s32.totalorder %v5924_v16, 0 }
 0x228   :  { %v5425_v47 = vshrl.u32 %v2345_v21, 30  ;;  %v2418_v24 = vshll.u32 %v5838_v0, %v2415_v10  ;;  %v2419_v43 = vshrl.u32 %v5868_v57, %v5400_v59  ;;  %vm1617_vm10 = vcmp.lt.s32.totalorder %v5170_v44, 2 }
 0x229   :  { %v1911_v3 = vadd.f32 0.041655596, %v1910_v19  ;;  %v2409_v41 = vor.u32 8388608, %v2408_v37  ;;  %v2429_v45 = vor.u32 %v2428_v53, %v2427_v17  ;;  %v2431_v13 = vshrl.u32 %v5870_v39, %v5400_v59 }
 0x22a   :  { %v1918_v52 = vadd.f32 0.008332121, %v1917_v36  ;;  %v2059_v5 = vsel %vm1938_vm11, %v2058_v27, %v2057_v58  ;;  %v2212_v4 = vmul.f32 %v2211_v46, %v2209_v33  ;;  %v2347_v56 = vshll.u32 %v5425_v47, 30 }
 0x22b   :  { %v5436_v63 = vor.u32 %v2422_v28, %v2421_v25  ;;  %v5438_v31 = vor.u32 %v2425_v29, %v2424_v30  ;;  %v2432_v57 = vor.u32 %v2431_v13, %v2430_v6  ;;  %vm2436_vm2 = vcmp.lt.s32.totalorder %v5413_v26, 4 }
 0x22c   :  { %v5941_v22 = vand.u32 2147483647, %v5924_v16  ;;  %v2348_v39 = vsub.s32 %v2344_v12, %v2347_v56  ;;  %v5447_v10 = vor.u32 %v2419_v43, %v2418_v24  ;;  %vm2433_vm8 = vcmp.lt.s32.totalorder %v5413_v26, 1 }
 0x22d   :  { %v5453_v58 = vsel %vm5395_vm6, %v5910_v40, %v2059_v5  ;;  %vm2435_vm5 = vcmp.lt.s32.totalorder %v5413_v26, 3  ;;  %v2442_v32 = vsel %vm2436_vm2, %v2429_v45, 920167782  ;;  %v5458_v42 = vshll.u32 %v2409_v41, 8 }
 0x22e   :  { %vm5443_vm15 = vcmp.le.f32.partialorder %v5941_v22, 0.7853982  ;;  %v1912_v2 = vmul.f32 %v1911_v3, %v5384_v49  ;;  %v2213_v14 = vxor.u32 2147483648, %v2212_v4  ;;  %vm2349_vm4 = vcmp.lt.s32.totalorder %v2348_v39, 0 }
 0x22f   :  { %v2350_v48 = vsub.s32 0, %v2348_v39  ;;  %v1919_v19 = vmul.f32 %v1918_v52, %v5384_v49  ;;  %vm2434_vm3 = vcmp.lt.s32.totalorder %v5413_v26, 2  ;;  %v2445_v36 = vsel %vm2433_vm8, %v5436_v63, %v5438_v31 }
 0x230   :  { %v2446_v27 = vsel %vm2436_vm2, %v2432_v57, 1326507024  ;;  %v5471_v12 = vmul.f32 %v5453_v58, %v5453_v58  ;;  %v2441_v46 = vsel %vm2433_vm8, %v5447_v10, %v5436_v63  ;;  %v2443_v37 = vsel %vm2435_vm5, %v5438_v31, %v2442_v32 }
 0x231   :  { %v2351_v33 = vsel %vm2349_vm4, %v2350_v48, %v2348_v39  ;;  %v2447_v25 = vsel %vm2435_vm5, %v2429_v45, %v2446_v27  ;;  %v2450_v53 = vand.u32 65535, %v5458_v42  ;;  %v5484_v28 = vadd.f32 -0.4999988, %v1912_v2 }
 0x232   :  { %v2352_v21 = vclz %v2351_v33  ;;  %v2214_v30 = vsel %vm2093_vm14, %v2213_v14, %v2212_v4  ;;  %v2448_v29 = vsel %vm2434_vm3, %v2445_v36, %v2447_v25  ;;  %v2451_v6 = vshrl.u32 %v5458_v42, 16 }
 0x233   :  { %v2444_v43 = vsel %vm2434_vm3, %v2441_v46, %v2443_v37  ;;  %v2452_v3 = vand.u32 65535, %v2448_v29  ;;  %v2453_v41 = vshrl.u32 %v2448_v29, 16  ;;  %v5497_v45 = vsel %vm1617_vm10, %v5374_v9, %v5287_v11 }
 0x234   :  { %v2715_v24 = vadd.s32 4294967294, %v2352_v21  ;;  %v1920_v13 = vadd.f32 -0.16666654, %v1919_v19  ;;  %v2065_v52 = vmul.f32 -0.001358992, %v5471_v12  ;;  %v5504_v4 = vsel %vm5443_vm15, %v5924_v16, %v2214_v30 }
 0x235   :  { %v2072_v5 = vmul.f32 -0.00019511016, %v5471_v12  ;;  %v2340_v56 = vadd.s32 %v5366_v35, %v5364_v61  ;;  %v2455_v57 = vmul.u32 %v2453_v41, %v2450_v53  ;;  %v2456_v32 = vmul.u32 %v2452_v3, %v2451_v6 }
 0x236   :  { %vm2716_vm0 = vcmp.lt.s32.totalorder %v2715_v24, 0  ;;  %v2474_v44 = vand.u32 65535, %v2444_v43  ;;  %v2475_v11 = vshrl.u32 %v2444_v43, 16  ;;  %v2454_v48 = vmul.u32 %v2452_v3, %v2450_v53 }
 0x237   :  { %v2355_v22 = vsel %vm2716_vm0, 0, %v2715_v24  ;;  %v1921_v19 = vmul.f32 %v1920_v13, %v5384_v49  ;;  %v2066_v36 = vadd.f32 0.041655596, %v2065_v52  ;;  %v2073_v27 = vadd.f32 0.008332121, %v2072_v5 }
 0x238   :  { %v2356_v9 = vsub.s32 32, %v2355_v22  ;;  %v2357_v2 = vshll.u32 %v2348_v39, %v2355_v22  ;;  %v2360_v14 = vsub.s32 4294967266, %v2355_v22  ;;  %v5511_v33 = vmul.f32 %v5504_v4, %v5504_v4 }
 0x239   :  { %v2457_v35 = vmul.u32 %v2453_v41, %v2451_v6  ;;  %v2458_v37 = vshll.u32 %v2455_v57, 16  ;;  %v2459_v21 = vshrl.u32 %v2455_v57, 16  ;;  %v2460_v25 = vshll.u32 %v2456_v32, 16 }
 0x23a   :  { %v2358_v46 = vshrl.u32 %v2340_v56, %v2356_v9  ;;  %v2361_v61 = vadd.s32 127, %v2360_v14  ;;  %v2476_v30 = vmul.u32 %v2474_v44, %v2450_v53  ;;  %v2477_v29 = vmul.u32 %v2475_v11, %v2450_v53 }
 0x23b   :  { %vm2462_vm7 = vc.u32 %v2454_v48, %v2458_v37  ;;  %v2464_v43 = vadd.s32 %v2458_v37, %v2454_v48  ;;  %v2478_v13 = vmul.u32 %v2474_v44, %v2451_v6  ;;  %v2479_v52 = vmul.u32 %v2475_v11, %v2451_v6 }
 0x23c   :  { %v2359_v24 = vor.u32 %v2358_v46, %v2357_v2  ;;  %v2362_v39 = vshll.u32 %v2361_v61, 23  ;;  %v2463_v3 = vsel %vm2462_vm7, 1, %v5833_v55  ;;  %v2480_v5 = vshll.u32 %v2477_v29, 16 }
 0x23d   :  { %v2465_v17 = vadd.s32 %v2463_v3, %v2457_v35  ;;  %vm2466_vm1 = vc.u32 %v2464_v43, %v2460_v25  ;;  %v2417_v41 = vshrl.u32 %v5838_v0, %v5400_v59  ;;  %v2438_v53 = vsel %vm2436_vm2, %v5438_v31, 2102212464 }
 0x23e   :  { %v2363_v22 = vor.u32 4788187, %v2362_v39  ;;  %v2366_v34 = vcvt.s32.f32 %v2359_v24  ;;  %v2467_v56 = vsel %vm2466_vm1, 1, %v5833_v55  ;;  %v2482_v57 = vshll.u32 %v2478_v13, 16 }
 0x23f   :  { %v2469_v2 = vadd.s32 %v2467_v56, %v2465_v17  ;;  %vm2484_vm12 = vc.u32 %v2476_v30, %v2480_v5  ;;  %v2486_v44 = vadd.s32 %v2480_v5, %v2476_v30  ;;  %v2227_v6 = vmul.f32 -0.00019511016, %v5511_v33 }
 0x240   :  { %v2364_v9 = vand.u32 2147483647, %v2363_v22  ;;  %v2461_v11 = vshrl.u32 %v2456_v32, 16  ;;  %v2481_v14 = vshrl.u32 %v2477_v29, 16  ;;  %v2485_v48 = vsel %vm2484_vm12, 1, %v5833_v55 }
 0x241   :  { %v2470_v61 = vadd.s32 %v2469_v2, %v2459_v21  ;;  %v2487_v0 = vadd.s32 %v2485_v48, %v2479_v52  ;;  %vm2488_vm13 = vc.u32 %v2486_v44, %v2482_v57  ;;  %vm2248_vm9 = vcmp.lt.s32.totalorder %v5929_v23, 0 }
 0x242   :  { %v2367_v46 = vmul.f32 %v2366_v34, %v2364_v9  ;;  %v2437_v59 = vsel %vm2433_vm8, %v2417_v41, %v5447_v10  ;;  %v2439_v31 = vsel %vm2435_vm5, %v5436_v63, %v2438_v53  ;;  %v2489_v17 = vsel %vm2488_vm13, 1, %v5833_v55 }
 0x243   :  { %v2074_v32 = vmul.f32 %v2073_v27, %v5471_v12  ;;  %v2483_v37 = vshrl.u32 %v2478_v13, 16  ;;  %v2491_v34 = vadd.s32 %v2489_v17, %v2487_v0  ;;  %v2220_v21 = vmul.f32 -0.001358992, %v5511_v33 }
 0x244   :  { %v2368_v35 = vxor.u32 2147483648, %v2367_v46  ;;  %v5944_v25 = vand.u32 2147483647, %v5929_v23  ;;  %v5538_v10 = vadd.s32 %v2470_v61, %v2461_v11  ;;  %v5540_v29 = vadd.s32 %v2486_v44, %v2482_v57  ;;  %v5948_v61 = vld [vmem:[#allocation19_spill] sm:$0xff] }
 0x245   :  { %v2228_v63 = vadd.f32 0.008332121, %v2227_v6  ;;  %v2440_v27 = vsel %vm2434_vm3, %v2437_v59, %v2439_v31  ;;  %v2492_v24 = vadd.s32 %v2491_v34, %v2481_v14  ;;  %v1768_v39 = vmul.f32 %v5404_v15, %v5175_v51 }
 0x246   :  { %vm5534_vm10 = vcmp.le.f32.partialorder %v5944_v25, 0.7853982  ;;  %v2369_v55 = vsel %vm2248_vm9, %v2368_v35, %v2367_v46  ;;  %vm1773_vm2 = vcmp.eq.s32.totalorder %v5391_v50, 0  ;;  %v1914_v43 = vmul.f32 %v5484_v28, %v5384_v49 }
 0x247   :  { %v1922_v3 = vadd.f32 1.0, %v1921_v19  ;;  %v2067_v13 = vmul.f32 %v2066_v36, %v5471_v12  ;;  %v2075_v52 = vadd.f32 -0.16666654, %v2074_v32  ;;  %v5555_v5 = vsel %vm5534_vm10, %v5929_v23, %v2369_v55 }
 0x248   :  { %v2493_v26 = vadd.s32 %v2492_v24, %v2483_v37  ;;  %v1777_v22 = vxor.u32 2147483648, %v5402_v54  ;;  %v2221_v41 = vadd.f32 0.041655596, %v2220_v21  ;;  %v2494_v51 = vmul.u32 %v5458_v42, %v2440_v27 }
 0x249   :  { %vm2496_vm8 = vc.u32 %v5538_v10, %v5540_v29  ;;  %v1926_v49 = vand.u32 3, %v5406_v7  ;;  %v5947_v15 = vsub.s32 4, %v5130_v8  ;;  %v2229_v19 = vmul.f32 %v2228_v63, %v5511_v33 }
 0x24a   :  { %v2497_v36 = vadd.s32 1, %v2493_v26  ;;  %vm1772_vm5 = vcmp.lt.s32.totalorder %v5391_v50, 2  ;;  %vm1776_vm4 = vcmp.eq.s32.totalorder %v5391_v50, 2  ;;  %v1915_v53 = vadd.f32 1.0, %v1914_v43 }
 0x24b   :  { %v2061_v28 = vsel %vm1938_vm11, %v5947_v15, %v5130_v8  ;;  %v2215_v42 = vsub.s32 4, %v5269_v1  ;;  %v5573_v56 = vmul.f32 %v5555_v5, %v5555_v5  ;;  %v1923_v7 = vmul.f32 %v1922_v3, %v5359_v62 }
 0x24c   :  { %v2068_v57 = vadd.f32 -0.4999988, %v2067_v13  ;;  %v2076_v9 = vmul.f32 %v2075_v52, %v5471_v12  ;;  %v2498_v8 = vsel %vm2496_vm8, %v2497_v36, %v2493_v26  ;;  %v1774_v2 = vxor.u32 2147483648, %v1768_v39 }
 0x24d   :  { %v2063_v44 = vsel %vm5395_vm6, 0, %v2061_v28  ;;  %v2222_v6 = vmul.f32 %v2221_v41, %v5511_v33  ;;  %v2499_v11 = vadd.s32 %v2498_v8, %v2494_v51  ;;  %v1778_v14 = vsel %vm1776_vm4, %v1777_v22, %v1768_v39 }
 0x24e   :  { %vm1931_vm11 = vcmp.eq.s32.totalorder %v1926_v49, 2  ;;  %v2230_v48 = vadd.f32 -0.16666654, %v2229_v19  ;;  %v2375_v46 = vmul.f32 -0.001358992, %v5573_v56  ;;  %vm1614_vm3 = vweird.f32 %v5948_v61  ;;  %v2557_v61 = vld [vmem:[#allocation2 + $0x8] sm:$0xff] }
 0x24f   :  { %v1932_v0 = vxor.u32 2147483648, %v1915_v53  ;;  %v2216_v62 = vsel %vm2093_vm14, %v2215_v42, %v5269_v1  ;;  %v2382_v59 = vmul.f32 -0.00019511016, %v5573_v56  ;;  %v2500_v31 = vadd.s32 536870912, %v2499_v11 }
 0x250   :  { %vm1769_vm6 = vweird.f32 %v5949_v38  ;;  %v1929_v17 = vxor.u32 2147483648, %v1923_v7  ;;  %v2069_v32 = vmul.f32 %v2068_v57, %v5471_v12  ;;  %v2077_v35 = vadd.f32 1.0, %v2076_v9 }
 0x251   :  { %v2080_v37 = vadd.s32 3, %v2063_v44  ;;  %vm1928_vm0 = vcmp.eq.s32.totalorder %v1926_v49, 0  ;;  %v2223_v34 = vadd.f32 -0.4999988, %v2222_v6  ;;  %v2370_v21 = vsub.s32 4, %v5425_v47 }
 0x252   :  { %v5589_v25 = vshrl.u32 %v2500_v31, 30  ;;  %v1775_v1 = vsel %vm1773_vm2, %v5402_v54, %v1774_v2  ;;  %v2218_v63 = vsel %vm5443_vm15, 0, %v2216_v62  ;;  %v2231_v55 = vmul.f32 %v2230_v48, %v5511_v33 }
 0x253   :  { %v2376_v27 = vadd.f32 0.041655596, %v2375_v46  ;;  %vm1927_vm14 = vcmp.lt.s32.totalorder %v1926_v49, 2  ;;  %v1933_v12 = vsel %vm1931_vm11, %v1932_v0, %v1923_v7  ;;  %v2383_v24 = vadd.f32 0.008332121, %v2382_v59  ;;  %v2558_v0 = vld [vmem:[#allocation2 + $0x10] sm:$0xff] }
 0x254   :  { %v2502_v39 = vshll.u32 %v5589_v25, 30  ;;  %v1930_v43 = vsel %vm1928_vm0, %v1915_v53, %v1929_v17  ;;  %v2070_v3 = vadd.f32 1.0, %v2069_v32  ;;  %v2078_v13 = vmul.f32 %v2077_v35, %v5453_v58  ;;  %v2559_v17 = vld [vmem:[#allocation2 + $0x18] sm:$0xff] }
 0x255   :  { %v2081_v52 = vand.u32 3, %v2080_v37  ;;  %v2224_v26 = vmul.f32 %v2223_v34, %v5511_v33  ;;  %v2235_v54 = vadd.s32 3, %v2218_v63  ;;  %v2371_v20 = vsel %vm2248_vm9, %v2370_v21, %v5425_v47  ;;  %v2560_v34 = vld [vmem:[#allocation2 + $0x20] sm:$0xff] }
 0x256   :  { %v5604_v22 = vsub.s32 %v2499_v11, %v2502_v39  ;;  %v1779_v41 = vsel %vm1772_vm5, %v1775_v1, %v1778_v14  ;;  %vm1924_vm15 = vweird.f32 %v5906_v18  ;;  %v2232_v51 = vadd.f32 1.0, %v2231_v55  ;;  %v2556_v14 = vld [vmem:[#allocation2] sm:$0xff] }
 0x257   :  { %v2377_v15 = vmul.f32 %v2376_v27, %v5573_v56  ;;  %v1934_v58 = vsel %vm1927_vm14, %v1930_v43, %v1933_v12  ;;  %v2384_v28 = vmul.f32 %v2383_v24, %v5573_v56  ;;  %vm2083_vm1 = vcmp.eq.s32.totalorder %v2081_v52, 0 }
 0x258   :  { %vm2504_vm7 = vcmp.lt.s32.totalorder %v5604_v22, 0  ;;  %v2505_v33 = vsub.s32 0, %v5604_v22  ;;  %v2084_v47 = vxor.u32 2147483648, %v2078_v13  ;;  %v2087_v19 = vxor.u32 2147483648, %v2070_v3 }
 0x259   :  { %v2373_v50 = vsel %vm5534_vm10, 0, %v2371_v20  ;;  %vm2086_vm12 = vcmp.eq.s32.totalorder %v2081_v52, 2  ;;  %v2225_v36 = vadd.f32 1.0, %v2224_v26  ;;  %v5616_v53 = vand.u32 3, %v2235_v54  ;;  %v2563_v26 = vld [vmem:[#allocation2 + $0x38] sm:$0xff]  ;;  %v2564_v54 = vld [vmem:[#allocation2 + $0x40] sm:$0xff] }
 0x25a   :  { %v2506_v42 = vsel %vm2504_vm7, %v2505_v33, %v5604_v22  ;;  %v5622_v49 = vsel %vm1614_vm3, nan, %v5497_v45  ;;  %v2233_v7 = vmul.f32 %v2232_v51, %v5504_v4  ;;  %v2378_v57 = vadd.f32 -0.4999988, %v2377_v15  ;;  %v2565_v20 = vld [vmem:[#allocation2 + $0x48] sm:$0xff]  ;;  %v2566_v15 = vld [vmem:[#allocation2 + $0x50] sm:$0xff] }
 0x25b   :  { %v2507_v9 = vclz %v2506_v42  ;;  %v5627_v8 = vsel %vm1769_vm6, nan, %v1779_v41  ;;  %v5631_v30 = vsel %vm1924_vm15, nan, %v1934_v58  ;;  %v2385_v2 = vadd.f32 -0.16666654, %v2384_v28 }
 0x25c   :  { %v2390_v44 = vadd.s32 3, %v2373_v50  ;;  %vm2082_vm13 = vcmp.lt.s32.totalorder %v2081_v52, 2  ;;  %v2085_v6 = vsel %vm2083_vm1, %v2070_v3, %v2084_v47  ;;  %v2088_v11 = vsel %vm2086_vm12, %v2087_v19, %v2078_v13 }
 0x25d   :  { %v2718_v45 = vadd.s32 4294967294, %v2507_v9  ;;  %vm2238_vm9 = vcmp.eq.s32.totalorder %v5616_v53, 0  ;;  %vm2241_vm10 = vcmp.eq.s32.totalorder %v5616_v53, 2  ;;  %v2242_v4 = vxor.u32 2147483648, %v2225_v36 }
 0x25e   :  { %vm2403_vm2 = vcmp.lt.s32.totalorder %v5936_v60, 0  ;;  %v2239_v48 = vxor.u32 2147483648, %v2233_v7  ;;  %v2379_v18 = vmul.f32 %v2378_v57, %v5573_v56  ;;  %v2495_v46 = vadd.s32 %v5540_v29, %v5538_v10  ;;  %v2561_v10 = vld [vmem:[#allocation2 + $0x28] sm:$0xff]  ;;  %v2562_v29 = vld [vmem:[#allocation2 + $0x30] sm:$0xff] }
 0x25f   :  { %vm2719_vm8 = vcmp.lt.s32.totalorder %v2718_v45, 0  ;;  %v2386_v62 = vmul.f32 %v2385_v2, %v5573_v56  ;;  %v5641_v59 = vand.u32 3, %v2390_v44  ;;  %v2525_v38 = vsub.s32 4, %v5589_v25  ;;  %v2567_v2 = vld [vmem:[#allocation2 + $0x58] sm:$0xff]  ;;  %v2568_v44 = vld [vmem:[#allocation2 + $0x60] sm:$0xff] }
 0x260   :  { %v2510_v31 = vsel %vm2719_vm8, 0, %v2718_v45  ;;  %v2572_v21 = vmul.f32 -9.869604, %v2556_v14  ;;  %v5646_v1 = vsel %vm2082_vm13, %v2085_v6, %v2088_v11  ;;  %v2573_v63 = vmul.f32 -9.869604, %v2557_v61  ;;  %v2570_v61 = vld [vmem:[#allocation2 + $0x70] sm:$0xff] }
 0x261   :  { %v2511_v32 = vsub.s32 32, %v2510_v31  ;;  %v2512_v35 = vshll.u32 %v5604_v22, %v2510_v31  ;;  %v2515_v37 = vsub.s32 4294967266, %v2510_v31  ;;  %v2574_v55 = vmul.f32 -9.869604, %v2558_v0 }
 0x262   :  { %v5648_v56 = vadd.f32 1.0, %v2379_v18  ;;  %v5950_v27 = vand.u32 2147483647, %v5936_v60  ;;  %v2575_v43 = vmul.f32 -9.869604, %v2559_v17  ;;  %v5658_v3 = vsel %vm2238_vm9, %v2225_v36, %v2239_v48  ;;  %v2569_v48 = vld [vmem:[#allocation2 + $0x68] sm:$0xff] }
 0x263   :  { %v2513_v24 = vshrl.u32 %v2495_v46, %v2511_v32  ;;  %v2516_v39 = vadd.s32 127, %v2515_v37  ;;  %v5662_v13 = vsel %vm2241_vm10, %v2242_v4, %v2233_v7  ;;  %v2387_v52 = vadd.f32 1.0, %v2386_v62 }
 0x264   :  { %vm5652_vm5 = vcmp.le.f32.partialorder %v5950_v27, 0.7853982  ;;  %v2576_v22 = vmul.f32 -9.869604, %v2560_v34  ;;  %v2577_v58 = vmul.f32 -9.869604, %v2561_v10  ;;  %v5667_v33 = vsel %vm2403_vm2, %v2525_v38, %v5589_v25 }
 0x265   :  { %v2514_v41 = vor.u32 %v2513_v24, %v2512_v35  ;;  %v2517_v51 = vshll.u32 %v2516_v39, 23  ;;  %v2578_v28 = vmul.f32 -9.869604, %v2562_v29  ;;  %v2588_v47 = vmul.f32 1.442695, %v2572_v21  ;;  %v5953_v24 = vld [vmem:[#allocation30_spill] sm:$0xff] }
 0x266   :  { %v2590_v19 = vmul.f32 1.442695, %v2573_v63  ;;  %v2592_v50 = vmul.f32 1.442695, %v2574_v55  ;;  %vm2396_vm4 = vcmp.eq.s32.totalorder %v5641_v59, 2  ;;  %v5671_v9 = vmul.f32 %v2387_v52, %v5555_v5 }
 0x267   :  { %v2518_v36 = vor.u32 4788187, %v2517_v51  ;;  %v2521_v42 = vcvt.s32.f32 %v2514_v41  ;;  %v2579_v7 = vmul.f32 -9.869604, %v2563_v26  ;;  %v2594_v57 = vmul.f32 1.442695, %v2575_v43 }
 0x268   :  { %v2580_v6 = vmul.f32 -9.869604, %v2564_v54  ;;  %2732 = vpow2.f32 %v2588_v47  ;;  %v2596_v11 = vmul.f32 1.442695, %v2576_v22  ;;  %vm2393_vm11 = vcmp.eq.s32.totalorder %v5641_v59, 0  ;;  %v5954_v54 = vld [vmem:[#allocation11_spill] sm:$0xff] }
 0x269   :  { %v2519_v25 = vand.u32 2147483647, %v2518_v36  ;;  %v2581_v45 = vmul.f32 -9.869604, %v2565_v20  ;;  %2734 = vpow2.f32 %v2590_v19  ;;  %v2598_v4 = vmul.f32 1.442695, %v2577_v58 }
 0x26a   :  { %v2397_v14 = vxor.u32 2147483648, %v5648_v56  ;;  %v2582_v18 = vmul.f32 -9.869604, %v2566_v15  ;;  %2736 = vpow2.f32 %v2592_v50  ;;  %v2600_v46 = vmul.f32 1.442695, %v2578_v28  ;;  %v2571_v51 = vld [vmem:[#allocation2 + $0x78] sm:$0xff] }
 0x26b   :  { %vm2237_vm3 = vcmp.lt.s32.totalorder %v5616_v53, 2  ;;  %v2522_v5 = vmul.f32 %v2521_v42, %v2519_v25  ;;  %v2583_v0 = vmul.f32 -9.869604, %v2567_v2  ;;  %2738 = vpow2.f32 %v2594_v57  ;;  %v5955_v58 = vld [vmem:[#allocation28_spill] sm:$0xff]  ;;  %v5956_v19 = vld [vmem:[#allocation26_spill] sm:$0xff]  ;;  %v5957_v57 = vld [vmem:[#allocation29_spill] sm:$0xff] }
 0x26c   :  { %v2602_v62 = vmul.f32 1.442695, %v2579_v7  ;;  %vm2392_vm6 = vcmp.lt.s32.totalorder %v5641_v59, 2  ;;  %v2528_v31 = vsel %vm5652_vm5, 0, %v5667_v33  ;;  %v2584_v38 = vmul.f32 -9.869604, %v2568_v44 }
 0x26d   :  { %2740 = vpow2.f32 %v2596_v11  ;;  %v2604_v17 = vmul.f32 1.442695, %v2580_v6  ;;  %vm2079_vm0 = vweird.f32 %v5910_v40  ;;  %v2523_v32 = vxor.u32 2147483648, %v2522_v5 }
 0x26e   :  { %v2585_v35 = vmul.f32 -9.869604, %v2569_v48  ;;  %2742 = vpow2.f32 %v2598_v4  ;;  %v2606_v37 = vmul.f32 1.442695, %v2581_v45  ;;  %v2733_v34 = vpop.eup %2732  ;;  %vm2234_vm14 = vweird.f32 %v5924_v16  ;;  %v5959_v48 = vld [vmem:[#allocation27_spill] sm:$0xff] }
 0x26f   :  { %v2394_v21 = vxor.u32 2147483648, %v5671_v9  ;;  %v2586_v10 = vmul.f32 -9.869604, %v2570_v61  ;;  %2744 = vpow2.f32 %v2600_v46  ;;  %v2608_v29 = vmul.f32 1.442695, %v2582_v18  ;;  %v2735_v63 = vpop.eup %2734 }
 0x270   :  { %vm2389_vm15 = vweird.f32 %v5929_v23  ;;  %v2524_v55 = vsel %vm2403_vm2, %v2523_v32, %v2522_v5  ;;  %2746 = vpow2.f32 %v2602_v62  ;;  %v2610_v27 = vmul.f32 1.442695, %v2583_v0  ;;  %v2737_v43 = vpop.eup %2736 }
 0x271   :  { %v2620_v39 = vmul.f32 %v2733_v34, %v5953_v24  ;;  %v5690_v52 = vsel %vm5652_vm5, %v5936_v60, %v2524_v55  ;;  %2748 = vpow2.f32 %v2604_v17  ;;  %v2612_v26 = vmul.f32 1.442695, %v2584_v38  ;;  %v2739_v22 = vpop.eup %2738 }
 0x272   :  { %v2621_v20 = vmul.f32 %v2735_v63, %v5954_v54  ;;  %v2529_v41 = vmul.f32 %v5690_v52, %v5690_v52  ;;  %2750 = vpow2.f32 %v2606_v37  ;;  %v2614_v15 = vmul.f32 1.442695, %v2585_v35  ;;  %v5961_v35 = vld [vmem:[#allocation21_spill] sm:$0xff] }
 0x273   :  { %v2622_v28 = vmul.f32 %v2737_v43, %v5955_v58  ;;  %2636 = vst [vmem:[#allocation7] sm:$0xff] %v2620_v39  ;;  %v2741_v33 = vpop.eup %2740  ;;  %v2398_v12 = vsel %vm2396_vm4, %v2397_v14, %v5671_v9  ;;  %2752 = vpow2.f32 %v2608_v29  ;;  %v2616_v47 = vmul.f32 1.442695, %v2586_v10  ;;  %v5958_v9 = vld [vmem:[#allocation13_spill] sm:$0xff] }
 0x274   :  { %v2623_v50 = vmul.f32 %v2739_v22, %v5956_v19  ;;  %2637 = vst [vmem:[#allocation7 + $0x8] sm:$0xff] %v2621_v20  ;;  %v2743_v36 = vpop.eup %2742  ;;  %v2530_v42 = vmul.f32 -0.001358992, %v2529_v41  ;;  %v2537_v7 = vmul.f32 -0.00019511016, %v2529_v41  ;;  %2754 = vpow2.f32 %v2610_v27 }
 0x275   :  { %v2624_v2 = vmul.f32 %v2741_v33, %v5957_v57  ;;  %2638 = vst [vmem:[#allocation7 + $0x10] sm:$0xff] %v2622_v28  ;;  %v2745_v44 = vpop.eup %2744  ;;  %v2395_v6 = vsel %vm2393_vm11, %v5648_v56, %v2394_v21  ;;  %v2587_v11 = vmul.f32 -9.869604, %v2571_v51  ;;  %2756 = vpow2.f32 %v2612_v26  ;;  %v5960_v56 = vld [vmem:[#allocation17_spill] sm:$0xff] }
 0x276   :  { %v2625_v25 = vmul.f32 %v2743_v36, %v5958_v9  ;;  %2639 = vst [vmem:[#allocation7 + $0x18] sm:$0xff] %v2623_v50  ;;  %v2747_v45 = vpop.eup %2746  ;;  %v2531_v4 = vadd.f32 0.041655596, %v2530_v42  ;;  %v2538_v14 = vadd.f32 0.008332121, %v2537_v7  ;;  %2758 = vpow2.f32 %v2614_v15 }
 0x277   :  { %v2626_v18 = vmul.f32 %v2745_v44, %v5959_v48  ;;  %2640 = vst [vmem:[#allocation7 + $0x20] sm:$0xff] %v2624_v2  ;;  %v2749_v46 = vpop.eup %2748  ;;  %v2244_v5 = vsel %vm2237_vm3, %v5658_v3, %v5662_v13  ;;  %v2545_v61 = vadd.s32 3, %v2528_v31  ;;  %2760 = vpow2.f32 %v2616_v47 }
 0x278   :  { %v2627_v0 = vmul.f32 %v2747_v45, %v5960_v56  ;;  %2641 = vst [vmem:[#allocation7 + $0x28] sm:$0xff] %v2625_v25  ;;  %v2751_v62 = vpop.eup %2750  ;;  %v2399_v38 = vsel %vm2392_vm6, %v2395_v6, %v2398_v12  ;;  %v2532_v17 = vmul.f32 %v2531_v4, %v2529_v41  ;;  %v2539_v32 = vmul.f32 %v2538_v14, %v2529_v41 }
 0x279   :  { %v2628_v37 = vmul.f32 %v2749_v46, %v5961_v35  ;;  %2642 = vst [vmem:[#allocation7 + $0x30] sm:$0xff] %v2626_v18  ;;  %v2753_v34 = vpop.eup %2752  ;;  %v2090_v53 = vsel %vm2079_vm0, nan, %v5646_v1  ;;  %v2618_v3 = vmul.f32 1.442695, %v2587_v11  ;;  %v2629_v13 = vmul.f32 %v2751_v62, %v5622_v49 }
 0x27a   :  { %2643 = vst [vmem:[#allocation7 + $0x38] sm:$0xff] %v2627_v0  ;;  %v2755_v31 = vpop.eup %2754  ;;  %v2245_v21 = vsel %vm2234_vm14, nan, %v2244_v5  ;;  %v2533_v59 = vadd.f32 -0.4999988, %v2532_v17  ;;  %v2540_v10 = vadd.f32 -0.16666654, %v2539_v32  ;;  %v2630_v29 = vmul.f32 %v2753_v34, %v5627_v8 }
 0x27b   :  { %2644 = vst [vmem:[#allocation7 + $0x40] sm:$0xff] %v2628_v37  ;;  %v2757_v63 = vpop.eup %2756  ;;  %v2400_v55 = vsel %vm2389_vm15, nan, %v2399_v38  ;;  %v2546_v27 = vand.u32 3, %v2545_v61  ;;  %v2631_v40 = vmul.f32 %v2755_v31, %v5631_v30  ;;  %2762 = vpow2.f32 %v2618_v3 }
 0x27c   :  { %2645 = vst [vmem:[#allocation7 + $0x48] sm:$0xff] %v2629_v13  ;;  %v2759_v1 = vpop.eup %2758  ;;  %v2534_v49 = vmul.f32 %v2533_v59, %v2529_v41  ;;  %v2541_v24 = vmul.f32 %v2540_v10, %v2529_v41  ;;  %v2632_v39 = vmul.f32 %v2757_v63, %v2090_v53  ;;  %vm2544_vm13 = vweird.f32 %v5936_v60 }
 0x27d   :  { %2646 = vst [vmem:[#allocation7 + $0x50] sm:$0xff] %v2630_v29  ;;  %v2761_v16 = vpop.eup %2760  ;;  %v2633_v43 = vmul.f32 %v2759_v1, %v2245_v21  ;;  %vm2551_vm7 = vcmp.eq.s32.totalorder %v2546_v27, 2  ;;  %vm2548_vm1 = vcmp.eq.s32.totalorder %v2546_v27, 0  ;;  %vm2547_vm12 = vcmp.lt.s32.totalorder %v2546_v27, 2 }
 0x27e   :  { %2647 = vst [vmem:[#allocation7 + $0x58] sm:$0xff] %v2631_v40  ;;  %v2535_v26 = vadd.f32 1.0, %v2534_v49  ;;  %v2542_v54 = vadd.f32 1.0, %v2541_v24  ;;  %v2634_v8 = vmul.f32 %v2761_v16, %v2400_v55 }
 0x27f   :  { %2648 = vst [vmem:[#allocation7 + $0x60] sm:$0xff] %v2632_v39 }
 0x280   :  { %2649 = vst [vmem:[#allocation7 + $0x68] sm:$0xff] %v2633_v43  ;;  %v2543_v23 = vmul.f32 %v2542_v54, %v5690_v52  ;;  %v2552_v20 = vxor.u32 2147483648, %v2535_v26 }
 0x281   :  { %2650 = vst [vmem:[#allocation7 + $0x70] sm:$0xff] %v2634_v8  ;;  %v2763_v41 = vpop.eup %2762 }
 0x282   :  { %v2549_v30 = vxor.u32 2147483648, %v2543_v23  ;;  %v2553_v22 = vsel %vm2551_vm7, %v2552_v20, %v2543_v23 }
 0x284   :  { %v2550_v51 = vsel %vm2548_vm1, %v2535_v26, %v2549_v30 }
 0x285   :  { %v2554_v15 = vsel %vm2547_vm12, %v2550_v51, %v2553_v22 }
 0x286   :  { %v2555_v58 = vsel %vm2544_vm13, nan, %v2554_v15 }
 0x287   :  { %v2635_v28 = vmul.f32 %v2763_v41, %v2555_v58 }
 0x289   :  { %2651 = vst [vmem:[#allocation7 + $0x78] sm:$0xff] %v2635_v28 }
 0x28a   :  { %2664 = dma.vmem_to_hbm [thread:$0]  %s2657_s1, 2048, %s2659_s23, [#allocation4], %s2843_s17, %s2843_s17, %s2844_s18  }
 0x28b   :  { %2840 = dma.done.wait [#allocation4], 2048  }
 0x28c   :  { %2841 = vsyncadd [#allocation4], 4294965248 }
 0x28d   :  { %2669 = vsyncpa [#allocation3], 1 }
 0x28e   :  { %2670 = vsyncpa [#allocation6], 1 }
 0x28f   :  { %2671 = vsyncpa [#allocation4], 1 }

</bundles_post_ra>
